<compile_context>
chip_gen: v6e
topology: v6e:2x2x1
jax: 0.10.0
libtpu: 0.0.40
codegen_flags: <defaults>
</compile_context>

<pallas_src>
import jax
import jax.numpy as jnp
from jax import lax
from jax.experimental import pallas as pl
from jax.experimental.pallas import tpu as pltpu

EPS = 1e-5
LANE = 128
# Above every generation's default scoped-VMEM limit (v5e 16 MiB, v6e/v7x
# 32 MiB), below v7x's 64 MiB physical capacity.
VMEM_LIMIT = 48 * 1024 * 1024


def _zero_border(pad_ref):
    """Zero only the 1-pixel spatial border of the (1, H+2, W+2, Cp) scratch."""
    _, Hp, Wp, Cp = pad_ref.shape
    H, W = Hp - 2, Wp - 2
    zrow = jnp.zeros((1, 1, Wp, Cp), pad_ref.dtype)
    pad_ref[:, 0:1, :, :] = zrow
    pad_ref[:, H + 1:H + 2, :, :] = zrow
    zcol = jnp.zeros((1, H, 1, Cp), pad_ref.dtype)
    pad_ref[:, 1:H + 1, 0:1, :] = zcol
    pad_ref[:, 1:H + 1, W + 1:W + 2, :] = zcol


def _conv3x3_from_pad(pad_ref, w_ref, out_ref, stat_ref):
    """3x3 stride-1 conv via im2col: one bf16 MXU matmul (K = 9*Cp) per row chunk.

    pad_ref:  (1, H+2, W+2, Cp) bf16 scratch, border zeroed, interior filled.
    w_ref:    (9*Cp, Cp) bf16 weights, rows flattened in (kh, kw, ci) order.
    out_ref:  (1, H, W, Cp) bf16 conv output window.
    stat_ref: (1, 2, Cp) f32 per-image (sum, sum-of-squares) BN partials.
    """
    _, Hp, Wp, Cp = pad_ref.shape
    H, W = Hp - 2, Wp - 2
    row_chunk = max(1, min(H, 1024 // max(W, 1)))   # bounds the im2col buffer
    wmat = w_ref[...]                               # hoisted, loaded once
    s = jnp.zeros((1, Cp), jnp.float32)
    ss = jnp.zeros((1, Cp), jnp.float32)
    for r0 in range(0, H, row_chunk):
        rc = min(row_chunk, H - r0)
        # 9 shifted windows read straight from the ref (loads only), then
        # concatenated along the lane axis -> (rc*W, 9*Cp) bf16 im2col block.
        taps = [pad_ref[:, r0 + kh:r0 + kh + rc, kw:kw + W, :]
                for kh in range(3) for kw in range(3)]
        patches = jnp.concatenate(taps, axis=-1).reshape(rc * W, 9 * Cp)
        acc = jnp.dot(patches, wmat, preferred_element_type=jnp.float32)
        out_ref[:, r0:r0 + rc, :, :] = acc.reshape(1, rc, W, Cp).astype(out_ref.dtype)
        s = s + jnp.sum(acc, axis=0, keepdims=True)
        ss = ss + jnp.sum(acc * acc, axis=0, keepdims=True)
    stat_ref[:, 0:1, :] = s.reshape(1, 1, Cp)
    stat_ref[:, 1:2, :] = ss.reshape(1, 1, Cp)


def _conv1_kernel(x_ref, w1_ref, y1_ref, s1_ref, pad_ref):
    """conv1 on one image + per-image BN1 partials (bf16 end-to-end into MXU)."""
    _, H, W, Cp = x_ref.shape
    _zero_border(pad_ref)
    pad_ref[:, 1:H + 1, 1:W + 1, :] = x_ref[...]
    _conv3x3_from_pad(pad_ref, w1_ref, y1_ref, s1_ref)


def _conv2_kernel(y1_ref, sc1_ref, sh1_ref, w2_ref, z2_ref, s2_ref, pad_ref):
    """bn1 + relu1 + conv2 on one image + per-image BN2 partials."""
    _, H, W, Cp = y1_ref.shape
    scale = sc1_ref[...].reshape(1, 1, 1, Cp)
    shift = sh1_ref[...].reshape(1, 1, 1, Cp)
    a = jnp.maximum(y1_ref[...].astype(jnp.float32) * scale + shift, 0.0)
    _zero_border(pad_ref)
    pad_ref[:, 1:H + 1, 1:W + 1, :] = a.astype(jnp.bfloat16)
    _conv3x3_from_pad(pad_ref, w2_ref, z2_ref, s2_ref)


def _finalize_kernel(z2_ref, sc2_ref, sh2_ref, res_ref, out_ref):
    """bn2 + residual add + relu2 (pure elementwise; bf16 inputs, f32 math)."""
    Cp = z2_ref.shape[-1]
    scale = sc2_ref[...].reshape(1, 1, 1, Cp)
    shift = sh2_ref[...].reshape(1, 1, 1, Cp)
    z = z2_ref[...].astype(jnp.float32)
    r = res_ref[...].astype(jnp.float32)
    out_ref[...] = jnp.maximum(z * scale + shift + r, 0.0)


def _scale_shift(stats, gamma, beta, count):
    """Fold global batch stats + BN affine into per-channel scale/shift (1, Cp)."""
    s = jnp.sum(stats[:, 0, :], axis=0, keepdims=True)
    ss = jnp.sum(stats[:, 1, :], axis=0, keepdims=True)
    mean = s / count
    var = jnp.maximum(ss / count - mean * mean, 0.0)
    scale = gamma * lax.rsqrt(var + EPS)
    return scale, beta - mean * scale


def basic_block_forward(x_nchw, params):
    """BasicBlockV1b forward (default config). x_nchw: (N,C,H,W) f32 -> NCHW f32."""
    x = jnp.transpose(x_nchw, (0, 2, 3, 1)).astype(jnp.float32)   # NHWC
    N, H, W, C = x.shape
    planes = params["w1"].shape[-1]
    assert planes == C, "identity-residual config requires in_channel == planes"
    Cp = ((C + LANE - 1) // LANE) * LANE
    cpad = Cp - C

    # Lane-dense channel padding, bf16 once; no wrapper-side spatial padding
    # (the conv halo is built in-kernel).  Padded channels carry zeros end to
    # end (zero weights, zero gamma/beta), so they never leak into real ones.
    x_pc = jnp.pad(x, ((0, 0), (0, 0), (0, 0), (0, cpad))).astype(jnp.bfloat16)

    def pad_w(w):   # (3,3,Ci,Co) -> (9*Cp, Cp) bf16, rows in (kh, kw, ci) order
        wp = jnp.pad(w, ((0, 0), (0, 0), (0, Cp - w.shape[2]),
                         (0, Cp - w.shape[3])))
        return wp.reshape(9 * Cp, Cp).astype(jnp.bfloat16)

    def pad_v(v):   # (1,1,1,C) -> (1,Cp) f32
        return jnp.pad(v.reshape(1, -1), ((0, 0), (0, cpad)))

    w1, w2 = pad_w(params["w1"]), pad_w(params["w2"])
    g1, b1 = pad_v(params["g1"]), pad_v(params["b1"])
    g2, b2 = pad_v(params["g2"]), pad_v(params["b2"])

    par = pltpu.CompilerParams(dimension_semantics=("parallel",),
                               vmem_limit_bytes=VMEM_LIMIT)
    img_spec = pl.BlockSpec((1, H, W, Cp), lambda n: (n, 0, 0, 0))
    vec_spec = pl.BlockSpec((1, Cp), lambda n: (0, 0))
    wgt_spec = pl.BlockSpec((9 * Cp, Cp), lambda n: (0, 0))
    stats_spec = pl.BlockSpec((1, 2, Cp), lambda n: (n, 0, 0))
    fmap_bf16 = jax.ShapeDtypeStruct((N, H, W, Cp), jnp.bfloat16)
    fmap_f32 = jax.ShapeDtypeStruct((N, H, W, Cp), jnp.float32)
    stats_shape = jax.ShapeDtypeStruct((N, 2, Cp), jnp.float32)
    pad_scratch = pltpu.VMEM((1, H + 2, W + 2, Cp), jnp.bfloat16)

    conv_flops = 2 * N * H * W * 9 * Cp * Cp
    fmap_b16 = N * H * W * Cp * 2

    # ---- pass 1: conv1 + per-image BN1 partial sums ----
    y1, s1 = pl.pallas_call(
        _conv1_kernel,
        grid=(N,),
        in_specs=[img_spec, wgt_spec],
        out_specs=(img_spec, stats_spec),
        out_shape=(fmap_bf16, stats_shape),
        scratch_shapes=[pad_scratch],
        compiler_params=par,
        cost_estimate=pl.CostEstimate(
            flops=conv_flops, transcendentals=0,
            bytes_accessed=2 * fmap_b16 + w1.size * 2),
    )(x_pc, w1)

    count = N * H * W
    scale1, shift1 = _scale_shift(s1, g1, b1, count)

    # ---- pass 2: bn1 + relu1 + conv2 + per-image BN2 partial sums ----
    z2, s2 = pl.pallas_call(
        _conv2_kernel,
        grid=(N,),
        in_specs=[img_spec, vec_spec, vec_spec, wgt_spec],
        out_specs=(img_spec, stats_spec),
        out_shape=(fmap_bf16, stats_shape),
        scratch_shapes=[pad_scratch],
        compiler_params=par,
        cost_estimate=pl.CostEstimate(
            flops=conv_flops, transcendentals=0,
            bytes_accessed=2 * fmap_b16 + w2.size * 2),
    )(y1, scale1, shift1, w2)

    scale2, shift2 = _scale_shift(s2, g2, b2, count)

    # ---- pass 3: bn2 + residual add + relu2 ----
    out = pl.pallas_call(
        _finalize_kernel,
        grid=(N,),
        in_specs=[img_spec, vec_spec, vec_spec, img_spec],
        out_specs=img_spec,
        out_shape=fmap_f32,
        compiler_params=par,
        cost_estimate=pl.CostEstimate(
            flops=3 * N * H * W * Cp, transcendentals=0,
            bytes_accessed=2 * fmap_b16 + 2 * fmap_b16),
    )(z2, scale2, shift2, x_pc)

    return jnp.transpose(out[..., :C], (0, 3, 1, 2))   # back to NCHW


def basic_block_reference(x_nchw, params):
    """Pure-JAX f32 reference (training-mode BN), for correctness checking."""
    x = jnp.transpose(x_nchw, (0, 2, 3, 1)).astype(jnp.float32)

    def conv(v, w):
        return lax.conv_general_dilated(
            v, w, window_strides=(1, 1), padding=((1, 1), (1, 1)),
            dimension_numbers=("NHWC", "HWIO", "NHWC"))

    def bn(v, g, b):
        m = jnp.mean(v, axis=(0, 1, 2), keepdims=True)
        s = jnp.mean((v - m) ** 2, axis=(0, 1, 2), keepdims=True)
        return (v - m) * lax.rsqrt(s + EPS) * g + b

    y = jnp.maximum(bn(conv(x, params["w1"]), params["g1"], params["b1"]), 0.0)
    z = bn(conv(y, params["w2"]), params["g2"], params["b2"])
    out = jnp.maximum(z + x, 0.0)
    return jnp.transpose(out, (0, 3, 1, 2))


def init_params(key, in_channel, planes):
    """Deterministic synthetic parameters (HWIO conv weights, BN gamma/beta)."""
    k1, k2, k3, k4, k5, k6 = jax.random.split(key, 6)
    w1 = 0.1 * jax.random.normal(k1, (3, 3, in_channel, planes), jnp.float32)
    w2 = 0.1 * jax.random.normal(k2, (3, 3, planes, planes), jnp.float32)
    g1 = 1.0 + 0.1 * jax.random.normal(k3, (1, 1, 1, planes), jnp.float32)
    b1 = 0.1 * jax.random.normal(k4, (1, 1, 1, planes), jnp.float32)
    g2 = 1.0 + 0.1 * jax.random.normal(k5, (1, 1, 1, planes), jnp.float32)
    b2 = 0.1 * jax.random.normal(k6, (1, 1, 1, planes), jnp.float32)
    return dict(w1=w1, g1=g1, b1=b1, w2=w2, g2=g2, b2=b2)


if __name__ == "__main__":
    key = jax.random.PRNGKey(0)
    kx, kp = jax.random.split(key)

    N, C, H, W = 2, 8, 16, 16      # in_channel == planes == 8, stride 1
    x = jax.random.normal(kx, (N, C, H, W), jnp.float32)
    params = init_params(kp, C, C)

    out = jax.block_until_ready(basic_block_forward(x, params))
    ref = jax.block_until_ready(basic_block_reference(x, params))

    assert out.shape == (N, C, H, W)
    max_err = float(jnp.max(jnp.abs(out - ref)))
    # tolerance absorbs bf16 operand / inter-pass rounding (accumulation & BN are f32)
    assert jnp.allclose(out, ref, rtol=5e-2, atol=5e-2), max_err

    print("KERNEL_OK")
</pallas_src>

<mosaic_0001>
module attributes {stable_mosaic.version = 11 : i64} {
  func.func @_conv1_kernel(%arg0: i32, %arg1: memref<1x16x16x128xbf16, #tpu.memory_space<vmem>>, %arg2: memref<1152x128xbf16, #tpu.memory_space<vmem>>, %arg3: memref<1x16x16x128xbf16, #tpu.memory_space<vmem>>, %arg4: memref<1x2x128xf32, #tpu.memory_space<vmem>>, %arg5: memref<1x18x18x128xbf16, #tpu.memory_space<vmem>>) attributes {dimension_semantics = [#tpu.dimension_semantics<parallel>], iteration_bounds = array<i64: 2>, scalar_prefetch = 0 : i64, scratch_operands = 1 : i64, tpu.core_type = #tpu.core_type<tc>, window_params = [{transform_indices = @transform_0, window_bounds = array<i64: 1, 16, 16, 128>}, {pipeline_mode = #tpu.pipeline_mode<synchronous>, transform_indices = @transform_1, window_bounds = array<i64: 1152, 128>}, {transform_indices = @transform_2, window_bounds = array<i64: 1, 16, 16, 128>}, {transform_indices = @transform_3, window_bounds = array<i64: 1, 2, 128>}]} {
    %cst = arith.constant 0.000000e+00 : bf16
    %0 = vector.broadcast %cst : bf16 to vector<1x1x18x128xbf16>
    %c0 = arith.constant 0 : index
    %c0_0 = arith.constant 0 : index
    %c0_1 = arith.constant 0 : index
    %c0_2 = arith.constant 0 : index
    %1 = vector.load %arg5[%c0, %c0_0, %c0_1, %c0_2] : memref<1x18x18x128xbf16, #tpu.memory_space<vmem>>, vector<1x1x18x128xbf16>
    tpu.vector_store %arg5[%c0, %c0_0, %c0_1, %c0_2], %0 {strides = array<i32>} : memref<1x18x18x128xbf16, #tpu.memory_space<vmem>>, vector<1x1x18x128xbf16>,
    %c0_3 = arith.constant 0 : index
    %c17 = arith.constant 17 : index
    %c0_4 = arith.constant 0 : index
    %c0_5 = arith.constant 0 : index
    %2 = vector.load %arg5[%c0_3, %c17, %c0_4, %c0_5] : memref<1x18x18x128xbf16, #tpu.memory_space<vmem>>, vector<1x1x18x128xbf16>
    tpu.vector_store %arg5[%c0_3, %c17, %c0_4, %c0_5], %0 {strides = array<i32>} : memref<1x18x18x128xbf16, #tpu.memory_space<vmem>>, vector<1x1x18x128xbf16>,
    %cst_6 = arith.constant 0.000000e+00 : bf16
    %3 = vector.broadcast %cst_6 : bf16 to vector<1x16x1x128xbf16>
    %c0_7 = arith.constant 0 : index
    %c1 = arith.constant 1 : index
    %c0_8 = arith.constant 0 : index
    %c0_9 = arith.constant 0 : index
    %4 = vector.load %arg5[%c0_7, %c1, %c0_8, %c0_9] : memref<1x18x18x128xbf16, #tpu.memory_space<vmem>>, vector<1x16x1x128xbf16>
    tpu.vector_store %arg5[%c0_7, %c1, %c0_8, %c0_9], %3 {strides = array<i32>} : memref<1x18x18x128xbf16, #tpu.memory_space<vmem>>, vector<1x16x1x128xbf16>,
    %c0_10 = arith.constant 0 : index
    %c1_11 = arith.constant 1 : index
    %c17_12 = arith.constant 17 : index
    %c0_13 = arith.constant 0 : index
    %5 = vector.load %arg5[%c0_10, %c1_11, %c17_12, %c0_13] : memref<1x18x18x128xbf16, #tpu.memory_space<vmem>>, vector<1x16x1x128xbf16>
    tpu.vector_store %arg5[%c0_10, %c1_11, %c17_12, %c0_13], %3 {strides = array<i32>} : memref<1x18x18x128xbf16, #tpu.memory_space<vmem>>, vector<1x16x1x128xbf16>,
    %c0_14 = arith.constant 0 : index
    %c0_15 = arith.constant 0 : index
    %c0_16 = arith.constant 0 : index
    %c0_17 = arith.constant 0 : index
    %6 = vector.load %arg1[%c0_14, %c0_15, %c0_16, %c0_17] : memref<1x16x16x128xbf16, #tpu.memory_space<vmem>>, vector<1x16x16x128xbf16>
    %c0_18 = arith.constant 0 : index
    %c1_19 = arith.constant 1 : index
    %c1_20 = arith.constant 1 : index
    %c0_21 = arith.constant 0 : index
    %7 = vector.load %arg5[%c0_18, %c1_19, %c1_20, %c0_21] : memref<1x18x18x128xbf16, #tpu.memory_space<vmem>>, vector<1x16x16x128xbf16>
    tpu.vector_store %arg5[%c0_18, %c1_19, %c1_20, %c0_21], %6 {strides = array<i32>} : memref<1x18x18x128xbf16, #tpu.memory_space<vmem>>, vector<1x16x16x128xbf16>,
    %c0_22 = arith.constant 0 : index
    %c0_23 = arith.constant 0 : index
    %8 = vector.load %arg2[%c0_22, %c0_23] : memref<1152x128xbf16, #tpu.memory_space<vmem>>, vector<1152x128xbf16>
    %cst_24 = arith.constant 0.000000e+00 : f32
    %9 = vector.broadcast %cst_24 : f32 to vector<1x128xf32>
    %cst_25 = arith.constant 0.000000e+00 : f32
    %10 = vector.broadcast %cst_25 : f32 to vector<1x128xf32>
    %c0_26 = arith.constant 0 : index
    %c0_27 = arith.constant 0 : index
    %c0_28 = arith.constant 0 : index
    %c0_29 = arith.constant 0 : index
    %11 = vector.load %arg5[%c0_26, %c0_27, %c0_28, %c0_29] : memref<1x18x18x128xbf16, #tpu.memory_space<vmem>>, vector<1x16x16x128xbf16>
    %c0_30 = arith.constant 0 : index
    %c0_31 = arith.constant 0 : index
    %c1_32 = arith.constant 1 : index
    %c0_33 = arith.constant 0 : index
    %12 = vector.load %arg5[%c0_30, %c0_31, %c1_32, %c0_33] : memref<1x18x18x128xbf16, #tpu.memory_space<vmem>>, vector<1x16x16x128xbf16>
    %c0_34 = arith.constant 0 : index
    %c0_35 = arith.constant 0 : index
    %c2 = arith.constant 2 : index
    %c0_36 = arith.constant 0 : index
    %13 = vector.load %arg5[%c0_34, %c0_35, %c2, %c0_36] : memref<1x18x18x128xbf16, #tpu.memory_space<vmem>>, vector<1x16x16x128xbf16>
    %c0_37 = arith.constant 0 : index
    %c1_38 = arith.constant 1 : index
    %c0_39 = arith.constant 0 : index
    %c0_40 = arith.constant 0 : index
    %14 = vector.load %arg5[%c0_37, %c1_38, %c0_39, %c0_40] : memref<1x18x18x128xbf16, #tpu.memory_space<vmem>>, vector<1x16x16x128xbf16>
    %c0_41 = arith.constant 0 : index
    %c1_42 = arith.constant 1 : index
    %c1_43 = arith.constant 1 : index
    %c0_44 = arith.constant 0 : index
    %15 = vector.load %arg5[%c0_41, %c1_42, %c1_43, %c0_44] : memref<1x18x18x128xbf16, #tpu.memory_space<vmem>>, vector<1x16x16x128xbf16>
    %c0_45 = arith.constant 0 : index
    %c1_46 = arith.constant 1 : index
    %c2_47 = arith.constant 2 : index
    %c0_48 = arith.constant 0 : index
    %16 = vector.load %arg5[%c0_45, %c1_46, %c2_47, %c0_48] : memref<1x18x18x128xbf16, #tpu.memory_space<vmem>>, vector<1x16x16x128xbf16>
    %c0_49 = arith.constant 0 : index
    %c2_50 = arith.constant 2 : index
    %c0_51 = arith.constant 0 : index
    %c0_52 = arith.constant 0 : index
    %17 = vector.load %arg5[%c0_49, %c2_50, %c0_51, %c0_52] : memref<1x18x18x128xbf16, #tpu.memory_space<vmem>>, vector<1x16x16x128xbf16>
    %c0_53 = arith.constant 0 : index
    %c2_54 = arith.constant 2 : index
    %c1_55 = arith.constant 1 : index
    %c0_56 = arith.constant 0 : index
    %18 = vector.load %arg5[%c0_53, %c2_54, %c1_55, %c0_56] : memref<1x18x18x128xbf16, #tpu.memory_space<vmem>>, vector<1x16x16x128xbf16>
    %c0_57 = arith.constant 0 : index
    %c2_58 = arith.constant 2 : index
    %c2_59 = arith.constant 2 : index
    %c0_60 = arith.constant 0 : index
    %19 = vector.load %arg5[%c0_57, %c2_58, %c2_59, %c0_60] : memref<1x18x18x128xbf16, #tpu.memory_space<vmem>>, vector<1x16x16x128xbf16>
    %20 = tpu.concatenate %11, %12, %13, %14, %15, %16, %17, %18, %19 in 3 : vector<1x16x16x128xbf16>, vector<1x16x16x128xbf16>, vector<1x16x16x128xbf16>, vector<1x16x16x128xbf16>, vector<1x16x16x128xbf16>, vector<1x16x16x128xbf16>, vector<1x16x16x128xbf16>, vector<1x16x16x128xbf16>, vector<1x16x16x128xbf16> -> vector<1x16x16x1152xbf16>
    %21 = vector.shape_cast %20 : vector<1x16x16x1152xbf16> to vector<256x1152xbf16>
    %cst_61 = arith.constant dense<0.000000e+00> : vector<256x128xf32>
    %22 = tpu.matmul %21, %8, %cst_61 {dimension_numbers = #tpu.dot_dimension_numbers<[1], [0], [0], [1], [0, 0, 1, 1], [], []>} : vector<256x1152xbf16>, vector<1152x128xbf16>, vector<256x128xf32> -> vector<256x128xf32>
    %23 = vector.shape_cast %22 : vector<256x128xf32> to vector<1x16x16x128xf32>
    %24 = arith.truncf %23 : vector<1x16x16x128xf32> to vector<1x16x16x128xbf16>
    %c0_62 = arith.constant 0 : index
    %c0_63 = arith.constant 0 : index
    %c0_64 = arith.constant 0 : index
    %c0_65 = arith.constant 0 : index
    %25 = vector.load %arg3[%c0_62, %c0_63, %c0_64, %c0_65] : memref<1x16x16x128xbf16, #tpu.memory_space<vmem>>, vector<1x16x16x128xbf16>
    tpu.vector_store %arg3[%c0_62, %c0_63, %c0_64, %c0_65], %24 {strides = array<i32>} : memref<1x16x16x128xbf16, #tpu.memory_space<vmem>>, vector<1x16x16x128xbf16>,
    %cst_66 = arith.constant dense<0.000000e+00> : vector<128xf32>
    %26 = vector.multi_reduction <add>, %22, %cst_66 [0] : vector<256x128xf32> to vector<128xf32>
    %27 = vector.shape_cast %26 : vector<128xf32> to vector<1x128xf32>
    %28 = arith.addf %9, %27 : vector<1x128xf32>
    %29 = arith.mulf %22, %22 : vector<256x128xf32>
    %cst_67 = arith.constant dense<0.000000e+00> : vector<128xf32>
    %30 = vector.multi_reduction <add>, %29, %cst_67 [0] : vector<256x128xf32> to vector<128xf32>
    %31 = vector.shape_cast %30 : vector<128xf32> to vector<1x128xf32>
    %32 = arith.addf %10, %31 : vector<1x128xf32>
    %33 = vector.shape_cast %28 : vector<1x128xf32> to vector<1x1x128xf32>
    %c0_68 = arith.constant 0 : index
    %c0_69 = arith.constant 0 : index
    %c0_70 = arith.constant 0 : index
    %34 = vector.load %arg4[%c0_68, %c0_69, %c0_70] : memref<1x2x128xf32, #tpu.memory_space<vmem>>, vector<1x1x128xf32>
    tpu.vector_store %arg4[%c0_68, %c0_69, %c0_70], %33 {strides = array<i32>} : memref<1x2x128xf32, #tpu.memory_space<vmem>>, vector<1x1x128xf32>,
    %35 = vector.shape_cast %32 : vector<1x128xf32> to vector<1x1x128xf32>
    %c0_71 = arith.constant 0 : index
    %c1_72 = arith.constant 1 : index
    %c0_73 = arith.constant 0 : index
    %36 = vector.load %arg4[%c0_71, %c1_72, %c0_73] : memref<1x2x128xf32, #tpu.memory_space<vmem>>, vector<1x1x128xf32>
    tpu.vector_store %arg4[%c0_71, %c1_72, %c0_73], %35 {strides = array<i32>} : memref<1x2x128xf32, #tpu.memory_space<vmem>>, vector<1x1x128xf32>,
    return
  }
  func.func @transform_0(%arg0: i32) -> (i32, i32, i32, i32) {
    %c0_i32 = arith.constant 0 : i32
    %c0_i32_0 = arith.constant 0 : i32
    %c0_i32_1 = arith.constant 0 : i32
    %c0_i32_2 = arith.constant 0 : i32
    return %arg0, %c0_i32, %c0_i32_0, %c0_i32_1 : i32, i32, i32, i32
  }
  func.func @transform_1(%arg0: i32) -> (i32, i32) {
    %c0_i32 = arith.constant 0 : i32
    %c0_i32_0 = arith.constant 0 : i32
    %c0_i32_1 = arith.constant 0 : i32
    return %c0_i32, %c0_i32_0 : i32, i32
  }
  func.func @transform_2(%arg0: i32) -> (i32, i32, i32, i32) {
    %c0_i32 = arith.constant 0 : i32
    %c0_i32_0 = arith.constant 0 : i32
    %c0_i32_1 = arith.constant 0 : i32
    %c0_i32_2 = arith.constant 0 : i32
    return %arg0, %c0_i32, %c0_i32_0, %c0_i32_1 : i32, i32, i32, i32
  }
  func.func @transform_3(%arg0: i32) -> (i32, i32, i32) {
    %c0_i32 = arith.constant 0 : i32
    %c0_i32_0 = arith.constant 0 : i32
    %c0_i32_1 = arith.constant 0 : i32
    return %arg0, %c0_i32, %c0_i32_0 : i32, i32, i32
  }
}

</mosaic_0001>

<bundles_post_ra>
// kernel: tpu_custom_call.1
= control target key start
LH: loop header
LB: loop body
LE: loop exit
PB: predicated region body
PF: predicated region fallthrough
CT: control target
= control target key end

     0   :  { %9 = vsyncpa [#allocation4], 0  ;;  %s7066_s0 = inlined_call_operand.hbm [shape: bf16[2,16,16,128], index: 0, kind: input, shape index: {}]   ;;  %s7067_s1 = inlined_call_operand.hbm [shape: bf16[1152,128], index: 1, kind: input, shape index: {}]   ;;  %s7068_s2 = inlined_call_operand.hbm [shape: bf16[2,16,16,128], index: 2, kind: output, shape index: {0}]   ;;  %s7069_s3 = inlined_call_operand.hbm [shape: f32[2,2,128], index: 3, kind: output, shape index: {1}]  }
   0x1   :  { %11 = vsyncpa [#allocation4 + $0x1], 0 }
   0x2   :  { %12 = vsyncpa [#allocation7], 0 }
   0x3   :  { %13 = vsyncpa [#allocation5], 0 }
   0x4   :  { %15 = vsyncpa [#allocation5 + $0x1], 0 }
   0x5   :  { %16 = vsyncpa [#allocation10], 0 }
   0x6   :  { %18 = vsyncpa [#allocation10 + $0x1], 0  ;;  %s5584_s12 = smov 0   ;;  %s5586_s13 = smov 0  }
   0x7   :  { %s5588_s14 = smov 0   ;;  %s5590_s15 = smov 0  }
   0x8 LB: > { %s5605_s16 = sadd.s32 4294967295, %s5553_s15   ;;  %s4178_s17 = sadd.s32 4294967294, %s5553_s15   ;;  %s5553_s15 = sphi %s5590_s15, %s7151_s15   ;;  %s5549_s14 = sphi %s5588_s14, %s7150_s14   ;;  %s5545_s13 = sphi %s5586_s13, %s7149_s13   ;;  %s5541_s12 = sphi %s5584_s12, %s7148_s12  }
   0x9   : > { %p44_p0 = scmp.ne.s32.totalorder %s5545_s13, %s5541_s12  ;;  %p7070_p1 = scmp.eq.s32.totalorder %s5605_s16, 0 }
   0xa   : > { %p95_p3 = scmp.eq.s32.totalorder %s4178_s17, 1  ;;  %p4179_p5 = scmp.ge.s32.totalorder %s5553_s15, 1 }
   0xb   : > { %p5614_p4 = por %p7070_p1, %p44_p0  ;;  %p128_p7 = scmp.lt.s32.totalorder %s5553_s15, 3 }
   0xc   : > { %p5619_p6 = por %p95_p3, %p44_p0  ;;  %s5555_s21 = smov [#allocation6]  }
   0xd   : > { %s7074_s18 = scalar_select %p5614_p4, 1, 0 }
   0xe   : > { %s7075_s19 = scalar_select %p5619_p6, 1, 0 }
   0xf   : > { %p5624_p8 = pnand %p4179_p5, %p128_p7  ;;  %s140_s22 = sshll.u32 %s5555_s21, 4  ;;  %s141_s22 = int_to_ptr.vmem [resolvable:$true] %s140_s22 }
  0x10   : > { %s5638_s24 = sadd.s32 1, %s5553_s15   ;;  %s31_s25 = sadd.s32 1, %s5549_s14 }
  0x11   : > { %s7076_s20 = scalar_select %p5624_p8, 1, 0 }
  0x12   : > { %p5120_p9 = pneg %p5624_p8  ;;  %s28_s26 = ssub.s32 %s5553_s15, %s5638_s24 }
  0x13   : > { %s5412_s27 = scalar_lea.vmem %s141_s22, 9216  ;;  %p5420_p5 = scmp.lt.s32.totalorder %s141_s22, %s141_s22 }
  0x14   : > { %p5633_p11 = pnand %p5120_p9, %p7070_p1  ;;  %p5413_p13 = scmp.ne.s32.totalorder %s141_s22, %s5412_s27 }
  0x15   : > { %p5421_p7 = scmp.lt.s32.totalorder %s5412_s27, %s5412_s27 }
  0x16   : > { %p5403_p12 = pneg %p5633_p11 }
  0x17   : > { %p5422_p10 = por %p5421_p7, %p5420_p5 }
  0x18   : > { %p5415_p0 = pnand %p5413_p13, %p5403_p12 }
  0x1a   : > { %p5416_p3 = pneg %p5415_p0 }
  0x1c   : > { %p5423_p2 = pnand %p5422_p10, %p5416_p3 }
  0x1e   : > { %5426 = shalt.err (!%p5423_p2)
}
  0x1f   : > { %s5556_s28 = smov 64   ;;  %s5557_s29 = smov 4  }
  0x20   : > { %5123 = dma.hbm_to_vmem [thread:$0]  (!%p5633_p11), %s7067_s1, 9216, %s141_s22, [#allocation7], %s5556_s28, %s5556_s28, %s5557_s29  }
  0x21   : > { %p29_p2 = scmp.eq.s32.totalorder %s28_s26, 0  ;;  %p38_p9 = scmp.ne.s32.totalorder %s5549_s14, %s5545_s13 }
  0x22   : > { %p39_p10 = scmp.eq.s32.totalorder %s5553_s15, 0  ;;  %p5136_p12 = scmp.lt.s32.totalorder %s5553_s15, 2 }
  0x23   : > { %s5658_s5 = scalar_select %p29_p2, %s5549_s14, %s31_s25  }
  0x24   : > { %p40_p13 = por %p39_p10, %p38_p9  ;;  %p7078_p0 = scmp.eq.s32.totalorder %s5605_s16, 1 }
  0x25   : > { %s154_s7 = sand.u32 1, %s5549_s14   ;;  %s4445_s8 = sshll.u32 %s5553_s15, 11 }
  0x26   : > { %p5662_p3 = por %p7078_p0, %p38_p9  ;;  %s4182_s9 = sshll.u32 %s154_s7, 7 }
  0x27   : > { %s5671_s17 = scalar_lea.hbm %s7066_s0, %s4445_s8  ;;  %s158_s21 = scalar_lea.vmem [#allocation3], %s4182_s9 }
  0x28   : > { %s7079_s6 = scalar_select %p5662_p3, 1, 0 }
  0x29   : > { %s165_s22 = sshll.u32 %s158_s21, 4  ;;  %p5673_p11 = pnand %p5136_p12, %p40_p13  ;;  %s5677_s22 = int_to_ptr.vmem [resolvable:$true] %s165_s22 }
  0x2a   : > { %s5679_s25 = scalar_lea.sflag [#allocation4], %s154_s7  ;;  %s5427_s26 = scalar_lea.hbm %s5671_s17, 2048 }
  0x2b   : > { %p5428_p5 = scmp.ne.s32.totalorder %s5671_s17, %s5427_s26  ;;  %p5429_p7 = pneg %p5673_p11 }
  0x2c   : > { %s5432_s4 = scalar_lea.hbm %s7066_s0, 4096  ;;  %p5433_p10 = scmp.lt.s32.totalorder %s5671_s17, %s7066_s0 }
  0x2d   : > { %p5430_p2 = pnand %p5429_p7, %p5428_p5  ;;  %p5434_p12 = scmp.lt.s32.totalorder %s5432_s4, %s5427_s26 }
  0x2f   : > { %p5431_p9 = pneg %p5430_p2  ;;  %p5435_p13 = por %p5434_p12, %p5433_p10 }
  0x31   : > { %p5436_p0 = pnand %p5435_p13, %p5431_p9 }
  0x33   : > { %5439 = shalt.err (!%p5436_p0)
}
  0x34   : > { %s5440_s7 = scalar_lea.vmem %s5677_s22, 2048  ;;  %s5558_s10 = smov [#allocation3]  }
  0x35   : > { %p5441_p1 = scmp.ne.s32.totalorder %s5677_s22, %s5440_s7  ;;  %s5445_s11 = sshll.u32 %s5558_s10, 4  ;;  %s5446_s11 = int_to_ptr.vmem [resolvable:$false] %s5445_s11 }
  0x36   : > { %s5447_s21 = scalar_lea.vmem %s5446_s11, 4096  ;;  %p5448_p2 = scmp.lt.s32.totalorder %s5677_s22, %s5446_s11 }
  0x37   : > { %p5443_p6 = pnand %p5441_p1, %p5429_p7  ;;  %p5449_p3 = scmp.lt.s32.totalorder %s5447_s21, %s5440_s7 }
  0x39   : > { %p5444_p5 = pneg %p5443_p6  ;;  %p5450_p4 = por %p5449_p3, %p5448_p2 }
  0x3b   : > { %p5451_p8 = pnand %p5450_p4, %p5444_p5 }
  0x3d   : > { %5454 = shalt.err (!%p5451_p8)
}
  0x3e   : > { %5127 = dma.hbm_to_vmem [thread:$0]  (!%p5673_p11), %s5671_s17, 2048, %s5677_s22, %s5679_s25, %s5556_s28, %s5556_s28, %s5557_s29  }
  0x3f   : > { %p7081_p1 = scmp.ne.s32.totalorder %s7076_s20, 0 }
  0x41   : > { %177 = sbr.rel (%p7081_p1) target bundleno = 672 (0x2a0), region = 28 }
  0x46   : > { %s5706_s26 = sand.u32 1, %s5545_s13   ;;  %p7082_p4 = scmp.ne.s32.totalorder %s7074_s18, 0 }
  0x47   : > { %s4186_s27 = sshll.u32 %s5706_s26, 7  ;;  %s180_s30 = scalar_lea.sflag [#allocation4], %s5706_s26 }
  0x48   : > { %s5712_s23 = scalar_lea.vmem [#allocation3], %s4186_s27 }
  0x49   : > { %5524 = dma.done.wait (%p7082_p4), %s180_s30, 2048  }
  0x4a   : > { %5526 = vsyncadd (%p7082_p4), %s180_s30, 4294965248  ;;  %p7083_p6 = scmp.eq.s32.totalorder %s5605_s16, 0 }
  0x4c   : > { %5528 = dma.done.wait (%p7083_p6), [#allocation7], 9216   ;;  %p7084_p8 = pmov %p7083_p6 }
  0x4d   : > { %v5559_v0 = vmov 0   ;;  %v5177_v1 = vld [vmem:[#allocation6 + $0x78] sm:$0xff]   ;;  %v5179_v3 = vld [vmem:[#allocation6 + $0x70] sm:$0xff]   ;;  %v5181_v5 = vld [vmem:[#allocation6 + $0x68] sm:$0xff]   ;;  %vm224_vm0 = vcmask 1040384   ;;  %vm679_vm7 = vcmask 1043456  }
  0x4e   : > { %5530 = vsyncadd (%p7084_p8), [#allocation7], 4294958080  ;;  %216 = vst [vmem:[#allocation2] sm:$0xf] %v5559_v0  ;;  %v5178_v2 = vld [vmem:[#allocation6 + $0x38] sm:$0xff]   ;;  %4574 = vmatprep.subr.bf16.mxu0 %v5177_v1  ;;  %5094 = vmatprep.subr.bf16.mxu1 %v5177_v1  ;;  %v5180_v4 = vld [vmem:[#allocation6 + $0x30] sm:$0xff]  }
  0x4f   : > { %217 = vst [vmem:[#allocation2 + $0x4] sm:$0xf] %v5559_v0  ;;  %218 = vst [vmem:[#allocation2 + $0x8] sm:$0x1] %v5559_v0  ;;  %4575 = vmatpush3.bf16.msra.mxu0 %v5178_v2  ;;  %5102 = vmatpush3.bf16.msra.mxu1 %v5178_v2  ;;  %v5182_v6 = vld [vmem:[#allocation6 + $0x28] sm:$0xff]   ;;  %v5183_v7 = vld [vmem:[#allocation6 + $0x60] sm:$0xff]  }
  0x50   : > { %220 = vst [vmem:[#allocation2 + $0xcc] sm:$0xf] %v5559_v0  ;;  %221 = vst [vmem:[#allocation2 + $0xd0] sm:$0xf] %v5559_v0  ;;  %4576 = vmatprep.subr.bf16.mxu0 %v5179_v3  ;;  %5095 = vmatprep.subr.bf16.mxu1 %v5179_v3  ;;  %vm225_vm1 = vsmask.f32 256 }
  0x51   : > { %222 = vst [vmem:[#allocation2 + $0xd4] sm:$0x1] %v5559_v0  ;;  %vm275_vm2 = vsmask.f32 7938  ;;  %v5184_v8 = vld [vmem:[#allocation6 + $0x20] sm:$0xff]   ;;  %v5185_v9 = vld [vmem:[#allocation6 + $0x58] sm:$0xff]   ;;  %vm5724_vm3 = vmand %vm224_vm0, %vm225_vm1 }
  0x52   : > { %vm357_vm4 = vsmask.f32 4368  ;;  %v5186_v11 = vld [vmem:[#allocation6 + $0x18] sm:$0xff]   ;;  %vm1274_vm5 = vsmask.f32 7424  ;;  %v5187_v12 = vld [vmem:[#allocation6 + $0x50] sm:$0xff]   ;;  %vm5737_vm6 = vmand %vm224_vm0, %vm275_vm2 }
  0x53   : > { %4577 = vmatpush3.bf16.msra.mxu0 %v5180_v4  ;;  %5103 = vmatpush3.bf16.msra.mxu1 %v5180_v4  ;;  %v260_v17 = vld [vmem:[#allocation2 + $0x90] sm:$0x1]  ;;  %v5188_v19 = vld [vmem:[#allocation6 + $0x10] sm:$0xff]   ;;  %v310_v21 = vld [vmem:[#allocation2 + $0x98] sm:$0x1]  ;;  %vm1531_vm10 = vcmask 1046528  }
  0x54   : > { %4578 = vmatprep.subr.bf16.mxu0 %v5181_v5  ;;  %5096 = vmatprep.subr.bf16.mxu1 %v5181_v5  ;;  %v261_v20 = vsel %vm5724_vm3, 0, %v260_v17  ;;  %v347_v22 = vld [vmem:[%s5712_s23 + $0x58] sm:$0xf]  ;;  %v5189_v23 = vld [vmem:[#allocation6 + $0x48] sm:$0xff]   ;;  %v348_v27 = vld [vmem:[%s5712_s23 + $0x5c] sm:$0xf] }
  0x55   : > { %v937_v13 = vld [vmem:[#allocation2] sm:$0xf]  ;;  %262 = vst [vmem:[#allocation2 + $0x90] sm:$0x1] %v261_v20  ;;  %v311_v28 = vsel %vm5737_vm6, 0, %v310_v21  ;;  %v547_v29 = vshrl.u32 %v347_v22, 16  ;;  %vm5752_vm8 = vmor %vm225_vm1, %vm357_vm4 }
  0x56   : > { %v5728_v14 = vld [vmem:[#allocation2 + $0x4] sm:$0xf]  ;;  %v5733_v16 = vld [vmem:[#allocation2 + $0x8] ss:$0 sps:$4 sm:$0x11]   ;;  %v550_v30 = vshll.u32 %v347_v22, 16  ;;  %vm5758_vm9 = vmand %vm679_vm7, %vm275_vm2 }
  0x57   : > { %4579 = vmatpush3.bf16.msra.mxu0 %v5182_v6  ;;  %5104 = vmatpush3.bf16.msra.mxu1 %v5182_v6  ;;  %v5731_v15 = vcombine.low %v937_v13, %v5728_v14  ;;  %v1283_v26 = vshll.u32 %v5733_v16, 16  ;;  %v555_v31 = vshrl.u32 %v348_v27, 16  ;;  %v5190_v32 = vld [vmem:[#allocation6 + $0x8] sm:$0xff]   ;;  %312 = vst [vmem:[#allocation2 + $0x98] sm:$0x1] %v311_v28  ;;  %v558_v35 = vshll.u32 %v348_v27, 16 }
  0x58   : > { %4580 = vmatprep.subr.bf16.mxu0 %v5183_v7  ;;  %5097 = vmatprep.subr.bf16.mxu1 %v5183_v7  ;;  %v549_v37 = vrot.slane %v547_v29, 7  ;;  %v5191_v40 = vld [vmem:[#allocation6 + $0x40] sm:$0xff]   ;;  %v5197_v50 = vld [vmem:[#allocation6 + $0xf8] sm:$0xff]   ;;  %v227_v53 = vld [vmem:[#allocation2 + $0xc] sm:$0x1]  ;;  %s6872_s18 = scalar_lea.vmem [#allocation8], %s4186_s27 }
  0x59   : > { %v1276_v24 = vshrl.u32 %v5731_v15, 16  ;;  %v1278_v25 = vshll.u32 %v5731_v15, 16  ;;  %v1285_v34 = vrot.slane %v1283_v26, 1  ;;  %v557_v38 = vrot.slane %v555_v31, 7  ;;  %v5192_v46 = vld [vmem:[#allocation6] sm:$0xff]   ;;  %v5198_v51 = vld [vmem:[#allocation6 + $0x178] sm:$0xff]  }
  0x5a   : > { %v552_v41 = vor.u32 %v550_v30, %v549_v37  ;;  %v553_v42 = vrot.slane %v549_v37, 4  ;;  %v277_v54 = vld [vmem:[#allocation2 + $0x14] sm:$0x1]  ;;  %v325_v55 = vld [vmem:[%s5712_s23] sm:$0xf]  ;;  %v228_v57 = vsel %vm5724_vm3, 0, %v227_v53 }
  0x5b   : > { %4581 = vmatpush3.bf16.msra.mxu0 %v5184_v8  ;;  %5105 = vmatpush3.bf16.msra.mxu1 %v5184_v8  ;;  %v1280_v33 = vrot.slane %v1278_v25, 1  ;;  %v560_v43 = vor.u32 %v558_v35, %v557_v38  ;;  %v562_v44 = vrot.slane %v557_v38, 4  ;;  %v278_v58 = vsel %vm5737_vm6, 0, %v277_v54  ;;  %v326_v59 = vld [vmem:[%s5712_s23 + $0x4] sm:$0xf]  ;;  %v5200_v61 = vld [vmem:[#allocation6 + $0x138] sm:$0xff]  }
  0x5c   : > { %4582 = vmatprep.subr.bf16.mxu0 %v5185_v9  ;;  %5098 = vmatprep.subr.bf16.mxu1 %v5185_v9  ;;  %v758_v49 = vld [vmem:[#allocation2 + $0x90] sm:$0xf]  ;;  %229 = vst [vmem:[#allocation2 + $0xc] sm:$0x1] %v228_v57  ;;  %279 = vst [vmem:[#allocation2 + $0x14] sm:$0x1] %v278_v58 }
  0x5d   : > { %v1281_v39 = vor.u32 %v1280_v33, %v1276_v24  ;;  %v561_v48 = vsel %vm5752_vm8, %v553_v42, %v560_v43  ;;  %v759_v52 = vsel %vm5758_vm9, %v552_v41, %v758_v49  ;;  %v360_v62 = vshrl.u32 %v325_v55, 16  ;;  %v263_v1 = vld [vmem:[#allocation2 + $0x9c] sm:$0x1]  ;;  %v313_v4 = vld [vmem:[#allocation2 + $0xa4] sm:$0x1]  ;;  %s4478_s20 = sshll.u32 %s5605_s16, 11 }
  0x5e   : > { %761 = vst [vmem:[#allocation2 + $0x94] sm:$0xf] %v561_v48  ;;  %760 = vst [vmem:[#allocation2 + $0x90] sm:$0xf] %v759_v52  ;;  %v762_v56 = vld [vmem:[#allocation2 + $0x98] sm:$0x1]  ;;  %s7001_s22 = scalar_lea.hbm %s7068_s2, %s4478_s20 }
  0x5f   : > { %4583 = vmatpush3.bf16.msra.mxu0 %v5186_v11  ;;  %5106 = vmatpush3.bf16.msra.mxu1 %v5186_v11  ;;  %v1286_v47 = vsel %vm1274_vm5, %v1281_v39, %v1285_v34  ;;  %v763_v60 = vsel %vm5724_vm3, %v562_v44, %v762_v56  ;;  %v363_v63 = vshll.u32 %v325_v55, 16  ;;  %v368_v0 = vshrl.u32 %v326_v59, 16  ;;  %v349_v5 = vld [vmem:[%s5712_s23 + $0x60] sm:$0xf]  ;;  %v350_v9 = vld [vmem:[%s5712_s23 + $0x64] sm:$0xf] }
  0x60   : > { %4584 = vmatprep.subr.bf16.mxu0 %v5187_v12  ;;  %5099 = vmatprep.subr.bf16.mxu1 %v5187_v12  ;;  %764 = vst [vmem:[#allocation2 + $0x98] sm:$0x1] %v763_v60  ;;  %v371_v2 = vshll.u32 %v326_v59, 16  ;;  %v264_v3 = vsel %vm5724_vm3, 0, %v263_v1  ;;  %v362_v6 = vrot.slane %v360_v62, 7  ;;  %v314_v8 = vsel %vm5737_vm6, 0, %v313_v4 }
  0x61   : > { %2988 = vmatprep.mubr.bf16.mxu0 %v1286_v47  ;;  %v370_v7 = vrot.slane %v368_v0, 7  ;;  %265 = vst [vmem:[#allocation2 + $0x9c] sm:$0x1] %v264_v3  ;;  %v564_v11 = vshrl.u32 %v349_v5, 16  ;;  %315 = vst [vmem:[#allocation2 + $0xa4] sm:$0x1] %v314_v8 }
  0x62   : > { %v567_v12 = vshll.u32 %v349_v5, 16  ;;  %v572_v13 = vshrl.u32 %v350_v9, 16  ;;  %v575_v17 = vshll.u32 %v350_v9, 16  ;;  %v366_v20 = vrot.slane %v362_v6, 4  ;;  %v230_v53 = vld [vmem:[#allocation2 + $0x18] sm:$0x1] }
  0x63   : > { %4585 = vmatpush3.bf16.msra.mxu0 %v5188_v19  ;;  %5107 = vmatpush3.bf16.msra.mxu1 %v5188_v19  ;;  %v365_v19 = vor.u32 %v363_v63, %v362_v6  ;;  %v373_v21 = vor.u32 %v371_v2, %v370_v7  ;;  %v375_v22 = vrot.slane %v370_v7, 4  ;;  %v566_v24 = vrot.slane %v564_v11, 7  ;;  %v681_v29 = vld [vmem:[#allocation2 + $0xc] sm:$0xf]  ;;  %v685_v30 = vld [vmem:[#allocation2 + $0x14] sm:$0x1] }
  0x64   : > { %4586 = vmatprep.subr.bf16.mxu0 %v5189_v23  ;;  %5100 = vmatprep.subr.bf16.mxu1 %v5189_v23  ;;  %v574_v25 = vrot.slane %v572_v13, 7  ;;  %v280_v54 = vld [vmem:[#allocation2 + $0x20] sm:$0x1]  ;;  %v231_v57 = vsel %vm5724_vm3, 0, %v230_v53  ;;  %v328_v59 = vld [vmem:[%s5712_s23 + $0xc] sm:$0xf] }
  0x65   : > { %v962_v23 = vld [vmem:[#allocation2 + $0x94] sm:$0xf]  ;;  %v961_v26 = vld [vmem:[#allocation2 + $0x90] sm:$0xf]  ;;  %v374_v27 = vsel %vm5752_vm8, %v366_v20, %v373_v21  ;;  %v569_v31 = vor.u32 %v567_v12, %v566_v24  ;;  %v682_v35 = vsel %vm5758_vm9, %v365_v19, %v681_v29  ;;  %v327_v55 = vld [vmem:[%s5712_s23 + $0x8] sm:$0xf] }
  0x66   : > { %v4202_v28 = vcombine.low %v961_v26, %v962_v23  ;;  %684 = vst [vmem:[#allocation2 + $0x10] sm:$0xf] %v374_v27  ;;  %v577_v33 = vor.u32 %v575_v17, %v574_v25  ;;  %v579_v37 = vrot.slane %v574_v25, 4  ;;  %683 = vst [vmem:[#allocation2 + $0xc] sm:$0xf] %v682_v35  ;;  %v281_v58 = vsel %vm5737_vm6, 0, %v280_v54 }
  0x67   : > { %4587 = vmatpush3.bf16.msra.mxu0 %v5190_v32  ;;  %5108 = vmatpush3.bf16.msra.mxu1 %v5190_v32  ;;  %v570_v32 = vrot.slane %v566_v24, 4  ;;  %v5196_v34 = vld [vmem:[#allocation2 + $0x98] ss:$0 sps:$4 sm:$0x11]   ;;  %232 = vst [vmem:[#allocation2 + $0x18] sm:$0x1] %v231_v57 }
  0x68   : > { %4588 = vmatprep.subr.bf16.mxu0 %v5191_v40  ;;  %5101 = vmatprep.subr.bf16.mxu1 %v5191_v40  ;;  %v1420_v38 = vshrl.u32 %v4202_v28, 16  ;;  %v1422_v39 = vshll.u32 %v4202_v28, 16  ;;  %v765_v41 = vld [vmem:[#allocation2 + $0x9c] sm:$0xf]  ;;  %v1427_v42 = vshll.u32 %v5196_v34, 16  ;;  %v377_v62 = vshrl.u32 %v327_v55, 16 }
  0x69   : > { %v578_v40 = vsel %vm5752_vm8, %v570_v32, %v577_v33  ;;  %v766_v43 = vsel %vm5758_vm9, %v569_v31, %v765_v41  ;;  %v769_v44 = vld [vmem:[#allocation2 + $0xa4] sm:$0x1]  ;;  %282 = vst [vmem:[#allocation2 + $0x20] sm:$0x1] %v281_v58  ;;  %v380_v63 = vshll.u32 %v327_v55, 16  ;;  %v385_v0 = vshrl.u32 %v328_v59, 16 }
  0x6a   : > { %768 = vst [vmem:[#allocation2 + $0xa0] sm:$0xf] %v578_v40  ;;  %v1424_v47 = vrot.slane %v1422_v39, 1  ;;  %767 = vst [vmem:[#allocation2 + $0x9c] sm:$0xf] %v766_v43  ;;  %v770_v48 = vsel %vm5724_vm3, %v579_v37, %v769_v44  ;;  %v1429_v49 = vrot.slane %v1427_v42, 1 }
  0x6b   : > { %4589 = vmatpush3.bf16.msra.mxu0 %v5192_v46  ;;  %5109 = vmatpush3.bf16.msra.mxu1 %v5192_v46  ;;  %v5210_v46 = vld [vmem:[#allocation6 + $0x170] sm:$0xff]   ;;  %771 = vst [vmem:[#allocation2 + $0xa4] sm:$0x1] %v770_v48  ;;  %v388_v3 = vshll.u32 %v328_v59, 16  ;;  %v379_v8 = vrot.slane %v377_v62, 7  ;;  %v387_v12 = vrot.slane %v385_v0, 7 }
  0x6c   : > { %4686 = vmatprep.subr.bf16.mxu1 %v5197_v50  ;;  %4798 = vmatprep.subr.bf16.mxu0 %v5198_v51  ;;  %v5199_v50 = vld [vmem:[#allocation6 + $0xb8] sm:$0xff]   ;;  %v5212_v51 = vld [vmem:[#allocation6 + $0x130] sm:$0xff]   ;;  %v1425_v52 = vor.u32 %v1424_v47, %v1420_v38  ;;  %v5208_v24 = vld [vmem:[#allocation6 + $0xa8] sm:$0xff]   ;;  %s4050_s28 = sshll.u32 %s6872_s18, 4  ;;  %s4032_s25 = scalar_lea.sflag [#allocation5], %s5706_s26  ;;  %s7003_s28 = int_to_ptr.vmem [resolvable:$true] %s4050_s28 }
  0x6d   : > { %v5795_v56 = vld [vmem:[#allocation2 + $0x10] sm:$0xf]  ;;  %v266_v1 = vld [vmem:[#allocation2 + $0xa8] sm:$0x1]  ;;  %v939_v2 = vld [vmem:[#allocation2 + $0xc] sm:$0xf]  ;;  %v382_v25 = vor.u32 %v380_v63, %v379_v8  ;;  %v390_v27 = vor.u32 %v388_v3, %v387_v12 }
  0x6e   : > { %2989 = vmatmul.mubr.bf16.vlgmr.msra.gmra.mxu0 %v5731_v15  ;;  %v686_v15 = vsel %vm5724_vm3, %v375_v22, %v685_v30  ;;  %v1430_v60 = vsel %vm1274_vm5, %v1425_v52, %v1429_v49  ;;  %v267_v4 = vsel %vm5724_vm3, 0, %v266_v1  ;;  %v4191_v5 = vcombine.low %v939_v2, %v5795_v56  ;;  %v5202_v9 = vld [vmem:[#allocation6 + $0xb0] sm:$0xff]   ;;  %v316_v13 = vld [vmem:[#allocation2 + $0xb0] sm:$0x1]  ;;  %v5207_v22 = vld [vmem:[#allocation6 + $0xe8] sm:$0xff]   ;;  %s5455_s4 = scalar_lea.vmem %s7003_s28, 2048 }
  0x6f   : > { %4799 = vmatpush3.bf16.msra.mxu0 %v5200_v61  ;;  %687 = vst [vmem:[#allocation2 + $0x14] sm:$0x1] %v686_v15  ;;  %v5201_v61 = vld [vmem:[#allocation6 + $0xf0] sm:$0xff]   ;;  %3084 = vmatprep.mubr.bf16.mxu1 %v1430_v60  ;;  %268 = vst [vmem:[#allocation2 + $0xa8] sm:$0x1] %v267_v4  ;;  %v383_v26 = vrot.slane %v379_v8, 4  ;;  %p5456_p3 = scmp.ne.s32.totalorder %s7003_s28, %s5455_s4 }
  0x70   : > { %4800 = vmatprep.subr.bf16.mxu0 %v5210_v46  ;;  %3085 = vmatmul.mubr.bf16.vlgmr.msra.gmra.mxu1 %v4202_v28  ;;  %v1288_v17 = vshrl.u32 %v4191_v5, 16  ;;  %v1290_v19 = vshll.u32 %v4191_v5, 16  ;;  %v392_v28 = vrot.slane %v387_v12, 4  ;;  %v351_v33 = vld [vmem:[%s5712_s23 + $0x68] sm:$0xf]  ;;  %v317_v38 = vsel %vm5737_vm6, 0, %v316_v13 }
  0x71   : > { %v964_v7 = vld [vmem:[#allocation2 + $0xa0] sm:$0xf]  ;;  %4687 = vmatpush3.bf16.msra.mxu1 %v5199_v50  ;;  %v963_v11 = vld [vmem:[#allocation2 + $0x9c] sm:$0xf]  ;;  %v391_v35 = vsel %vm5752_vm8, %v383_v26, %v390_v27  ;;  %v688_v15 = vld [vmem:[#allocation2 + $0x18] sm:$0xf] }
  0x72   : > { %4688 = vmatprep.subr.bf16.mxu1 %v5201_v61  ;;  %v4203_v21 = vcombine.low %v963_v11, %v964_v7  ;;  %v5206_v23 = vld [vmem:[#allocation2 + $0xa4] ss:$0 sps:$4 sm:$0x11]   ;;  %v1292_v29 = vrot.slane %v1290_v19, 1  ;;  %v692_v37 = vld [vmem:[#allocation2 + $0x20] sm:$0x1]  ;;  %v689_v42 = vsel %vm5758_vm9, %v382_v25, %v688_v15 }
  0x73   : > { %4801 = vmatpush3.bf16.msra.mxu0 %v5212_v51  ;;  %v1439_v34 = vshll.u32 %v5206_v23, 16  ;;  %v5209_v41 = vld [vmem:[#allocation6 + $0xe0] sm:$0xff]   ;;  %691 = vst [vmem:[#allocation2 + $0x1c] sm:$0xf] %v391_v35  ;;  %v693_v43 = vsel %vm5724_vm3, %v392_v28, %v692_v37  ;;  %318 = vst [vmem:[#allocation2 + $0xb0] sm:$0x1] %v317_v38 }
  0x74   : > { %v1432_v31 = vshrl.u32 %v4203_v21, 16  ;;  %v1434_v32 = vshll.u32 %v4203_v21, 16  ;;  %v1293_v39 = vor.u32 %v1292_v29, %v1288_v17  ;;  %v352_v44 = vld [vmem:[%s5712_s23 + $0x6c] sm:$0xf]  ;;  %v5211_v47 = vld [vmem:[#allocation6 + $0xa0] sm:$0xff]   ;;  %v581_v48 = vshrl.u32 %v351_v33, 16 }
  0x75   : > { %4689 = vmatpush3.bf16.msra.mxu1 %v5202_v9  ;;  %v1441_v46 = vrot.slane %v1439_v34, 1  ;;  %690 = vst [vmem:[#allocation2 + $0x18] sm:$0xf] %v689_v42  ;;  %694 = vst [vmem:[#allocation2 + $0x20] sm:$0x1] %v693_v43  ;;  %v584_v49 = vshll.u32 %v351_v33, 16 }
  0x76   : > { %v5806_v6 = vld [vmem:[#allocation2 + $0x14] ss:$0 sps:$4 sm:$0x11]   ;;  %v1436_v40 = vrot.slane %v1434_v32, 1  ;;  %4690 = vmatprep.subr.bf16.mxu1 %v5207_v22  ;;  %v589_v50 = vshrl.u32 %v352_v44, 16  ;;  %v592_v53 = vshll.u32 %v352_v44, 16 }
  0x77   : > { %v1295_v20 = vshll.u32 %v5806_v6, 16  ;;  %v772_v54 = vld [vmem:[#allocation2 + $0xa8] sm:$0xf]  ;;  %v5217_v55 = vld [vmem:[#allocation6 + $0xd8] sm:$0xff]   ;;  %v5226_v57 = vld [vmem:[#allocation6 + $0x168] sm:$0xff]   ;;  %v583_v58 = vrot.slane %v581_v48, 7 }
  0x78   : > { %v1437_v52 = vor.u32 %v1436_v40, %v1432_v31  ;;  %v591_v59 = vrot.slane %v589_v50, 7  ;;  %v5218_v1 = vld [vmem:[#allocation6 + $0x98] sm:$0xff]   ;;  %v233_v2 = vld [vmem:[#allocation2 + $0x24] sm:$0x1]  ;;  %v283_v3 = vld [vmem:[#allocation2 + $0x2c] sm:$0x1]  ;;  %4802 = vmatprep.subr.bf16.mxu0 %v5226_v57 }
  0x79   : > { %v1297_v30 = vrot.slane %v1295_v20, 1  ;;  %4691 = vmatpush3.bf16.msra.mxu1 %v5208_v24  ;;  %v586_v61 = vor.u32 %v584_v49, %v583_v58  ;;  %v587_v62 = vrot.slane %v583_v58, 4  ;;  %v5219_v4 = vld [vmem:[#allocation6 + $0xd0] sm:$0xff]   ;;  %v234_v7 = vsel %vm5724_vm3, 0, %v233_v2  ;;  %v269_v29 = vld [vmem:[#allocation2 + $0xb4] sm:$0x1] }
  0x7a   : > { %v1442_v60 = vsel %vm1274_vm5, %v1437_v52, %v1441_v46  ;;  %4692 = vmatprep.subr.bf16.mxu1 %v5209_v41  ;;  %v594_v63 = vor.u32 %v592_v53, %v591_v59  ;;  %v596_v0 = vrot.slane %v591_v59, 4  ;;  %v284_v8 = vsel %vm5737_vm6, 0, %v283_v3  ;;  %v330_v9 = vld [vmem:[%s5712_s23 + $0x14] sm:$0xf]  ;;  %v5827_v11 = vld [vmem:[#allocation2 + $0x1c] sm:$0xf] }
  0x7b   : > { %v1298_v51 = vsel %vm1274_vm5, %v1293_v39, %v1297_v30  ;;  %3092 = vmatprep.mubr.bf16.mxu1 %v1442_v60  ;;  %v773_v13 = vsel %vm5758_vm9, %v586_v61, %v772_v54  ;;  %v776_v17 = vld [vmem:[#allocation2 + $0xb0] sm:$0x1]  ;;  %235 = vst [vmem:[#allocation2 + $0x24] sm:$0x1] %v234_v7  ;;  %285 = vst [vmem:[#allocation2 + $0x2c] sm:$0x1] %v284_v8 }
  0x7c   : > { %2996 = vmatprep.mubr.bf16.mxu0 %v1298_v51  ;;  %3093 = vmatmul.mubr.bf16.gmra.mxu1 %v4203_v21  ;;  %v595_v12 = vsel %vm5752_vm8, %v587_v62, %v594_v63  ;;  %v941_v21 = vld [vmem:[#allocation2 + $0x18] sm:$0xf]  ;;  %774 = vst [vmem:[#allocation2 + $0xa8] sm:$0xf] %v773_v13  ;;  %v777_v22 = vsel %vm5724_vm3, %v596_v0, %v776_v17  ;;  %v402_v23 = vshrl.u32 %v330_v9, 16  ;;  %v405_v24 = vshll.u32 %v330_v9, 16 }
  0x7d   : > { %2997 = vmatmul.mubr.bf16.gmra.mxu0 %v4191_v5  ;;  %v329_v5 = vld [vmem:[%s5712_s23 + $0x10] sm:$0xf]  ;;  %4693 = vmatpush3.bf16.msra.mxu1 %v5211_v47  ;;  %775 = vst [vmem:[#allocation2 + $0xac] sm:$0xf] %v595_v12  ;;  %v4192_v25 = vcombine.low %v941_v21, %v5827_v11  ;;  %778 = vst [vmem:[#allocation2 + $0xb0] sm:$0x1] %v777_v22 }
  0x7e   : > { %v394_v19 = vshrl.u32 %v329_v5, 16  ;;  %v397_v20 = vshll.u32 %v329_v5, 16  ;;  %4694 = vmatprep.subr.bf16.mxu1 %v5217_v55  ;;  %v5836_v26 = vld [vmem:[#allocation2 + $0x20] ss:$0 sps:$4 sm:$0x11]   ;;  %v5220_v27 = vld [vmem:[#allocation6 + $0x90] sm:$0xff]  }
  0x7f   : > { %v404_v30 = vrot.slane %v402_v23, 7  ;;  %v270_v31 = vsel %vm5724_vm3, 0, %v269_v29  ;;  %v319_v32 = vld [vmem:[#allocation2 + $0xbc] sm:$0x1]  ;;  %v353_v33 = vld [vmem:[%s5712_s23 + $0x70] sm:$0xf] }
  0x80   : > { %v396_v28 = vrot.slane %v394_v19, 7  ;;  %v1300_v34 = vshrl.u32 %v4192_v25, 16  ;;  %v1302_v35 = vshll.u32 %v4192_v25, 16  ;;  %v1307_v15 = vshll.u32 %v5836_v26, 16  ;;  %271 = vst [vmem:[#allocation2 + $0xb4] sm:$0x1] %v270_v31 }
  0x81   : > { %4695 = vmatpush3.bf16.msra.mxu1 %v5218_v1  ;;  %v354_v38 = vld [vmem:[%s5712_s23 + $0x74] sm:$0xf]  ;;  %v5225_v39 = vld [vmem:[#allocation6 + $0xc8] sm:$0xff]   ;;  %v407_v41 = vor.u32 %v405_v24, %v404_v30  ;;  %v409_v42 = vrot.slane %v404_v30, 4  ;;  %v320_v43 = vsel %vm5737_vm6, 0, %v319_v32  ;;  %v598_v48 = vshrl.u32 %v353_v33, 16 }
  0x82   : > { %v399_v37 = vor.u32 %v397_v20, %v396_v28  ;;  %4696 = vmatprep.subr.bf16.mxu1 %v5219_v4  ;;  %v400_v40 = vrot.slane %v396_v28, 4  ;;  %v5228_v44 = vld [vmem:[#allocation6 + $0x128] sm:$0xff]   ;;  %v1304_v46 = vrot.slane %v1302_v35, 1  ;;  %v1309_v47 = vrot.slane %v1307_v15, 1  ;;  %321 = vst [vmem:[#allocation2 + $0xbc] sm:$0x1] %v320_v43 }
  0x83   : > { %v601_v49 = vshll.u32 %v353_v33, 16  ;;  %v5227_v50 = vld [vmem:[#allocation6 + $0x88] sm:$0xff]   ;;  %v699_v53 = vld [vmem:[#allocation2 + $0x2c] sm:$0x1]  ;;  %v606_v54 = vshrl.u32 %v354_v38, 16  ;;  %v609_v55 = vshll.u32 %v354_v38, 16  ;;  %4803 = vmatpush3.bf16.msra.mxu0 %v5228_v44 }
  0x84   : > { %v408_v51 = vsel %vm5752_vm8, %v400_v40, %v407_v41  ;;  %v695_v52 = vld [vmem:[#allocation2 + $0x24] sm:$0xf]  ;;  %v1305_v57 = vor.u32 %v1304_v46, %v1300_v34  ;;  %v965_v58 = vld [vmem:[#allocation2 + $0xa8] sm:$0xf]  ;;  %v966_v59 = vld [vmem:[#allocation2 + $0xac] sm:$0xf]  ;;  %v700_v61 = vsel %vm5724_vm3, %v409_v42, %v699_v53 }
  0x85   : > { %4697 = vmatpush3.bf16.msra.mxu1 %v5220_v27  ;;  %v696_v60 = vsel %vm5758_vm9, %v399_v37, %v695_v52  ;;  %698 = vst [vmem:[#allocation2 + $0x28] sm:$0xf] %v408_v51  ;;  %v600_v62 = vrot.slane %v598_v48, 7  ;;  %v5229_v63 = vld [vmem:[#allocation6 + $0xc0] sm:$0xff]   ;;  %v4204_v0 = vcombine.low %v965_v58, %v966_v59  ;;  %701 = vst [vmem:[#allocation2 + $0x2c] sm:$0x1] %v700_v61 }
  0x86   : > { %v5216_v1 = vld [vmem:[#allocation2 + $0xb0] ss:$0 sps:$4 sm:$0x11]   ;;  %697 = vst [vmem:[#allocation2 + $0x24] sm:$0xf] %v696_v60  ;;  %v608_v2 = vrot.slane %v606_v54, 7  ;;  %4698 = vmatprep.subr.bf16.mxu1 %v5225_v39  ;;  %v1310_v3 = vsel %vm1274_vm5, %v1305_v57, %v1309_v47 }
  0x87   : > { %v603_v4 = vor.u32 %v601_v49, %v600_v62  ;;  %v604_v7 = vrot.slane %v600_v62, 4  ;;  %3004 = vmatprep.mubr.bf16.mxu0 %v1310_v3  ;;  %v1444_v8 = vshrl.u32 %v4204_v0, 16  ;;  %v1446_v5 = vshll.u32 %v4204_v0, 16  ;;  %v779_v13 = vld [vmem:[#allocation2 + $0xb4] sm:$0xf]  ;;  %v5230_v17 = vld [vmem:[#allocation6 + $0x80] sm:$0xff]  }
  0x88   : > { %v1451_v9 = vshll.u32 %v5216_v1, 16  ;;  %v611_v12 = vor.u32 %v609_v55, %v608_v2  ;;  %3005 = vmatmul.mubr.bf16.gmra.mxu0 %v4192_v25  ;;  %v613_v19 = vrot.slane %v608_v2, 4  ;;  %v5236_v21 = vld [vmem:[#allocation6 + $0x1f8] sm:$0xff]   ;;  %v286_v15 = vld [vmem:[#allocation2 + $0x38] sm:$0x1]  ;;  %p7145_p11 = scmp.ne.s32.totalorder %s7079_s6, 0 }
  0x89   : > { %v780_v20 = vsel %vm5758_vm9, %v603_v4, %v779_v13  ;;  %4699 = vmatpush3.bf16.msra.mxu1 %v5227_v50  ;;  %v1448_v22 = vrot.slane %v1446_v5, 1  ;;  %v783_v27 = vld [vmem:[#allocation2 + $0xbc] sm:$0x1]  ;;  %v236_v31 = vld [vmem:[#allocation2 + $0x30] sm:$0x1]  ;;  %v287_v37 = vsel %vm5737_vm6, 0, %v286_v15 }
  0x8a   : > { %v1453_v23 = vrot.slane %v1451_v9, 1  ;;  %v612_v24 = vsel %vm5752_vm8, %v604_v7, %v611_v12  ;;  %781 = vst [vmem:[#allocation2 + $0xb4] sm:$0xf] %v780_v20  ;;  %4700 = vmatprep.subr.bf16.mxu1 %v5229_v63  ;;  %v784_v28 = vsel %vm5724_vm3, %v613_v19, %v783_v27  ;;  %v237_v35 = vsel %vm5724_vm3, 0, %v236_v31  ;;  %v331_v38 = vld [vmem:[%s5712_s23 + $0x18] sm:$0xf]  ;;  %p5457_p7 = pnand %p5456_p3, %p7145_p11 }
  0x8b   : > { %782 = vst [vmem:[#allocation2 + $0xb8] sm:$0xf] %v612_v24  ;;  %v1449_v25 = vor.u32 %v1448_v22, %v1444_v8  ;;  %785 = vst [vmem:[#allocation2 + $0xbc] sm:$0x1] %v784_v28  ;;  %v332_v39 = vld [vmem:[%s5712_s23 + $0x1c] sm:$0xf] }
  0x8c   : > { %v5858_v29 = vld [vmem:[#allocation2 + $0x28] sm:$0xf]  ;;  %v5862_v34 = vld [vmem:[#allocation2 + $0x2c] ss:$0 sps:$4 sm:$0x11]   ;;  %v5238_v40 = vld [vmem:[#allocation6 + $0x160] sm:$0xff]   ;;  %p5458_p9 = pneg %p5457_p7 }
  0x8d   : > { %v943_v30 = vld [vmem:[#allocation2 + $0x24] sm:$0xf]  ;;  %4701 = vmatpush3.bf16.msra.mxu1 %v5230_v17  ;;  %v1454_v32 = vsel %vm1274_vm5, %v1449_v25, %v1453_v23  ;;  %238 = vst [vmem:[#allocation2 + $0x30] sm:$0x1] %v237_v35  ;;  %v1319_v43 = vshll.u32 %v5862_v34, 16  ;;  %v411_v44 = vshrl.u32 %v331_v38, 16  ;;  %4804 = vmatprep.subr.bf16.mxu0 %v5238_v40 }
  0x8e   : > { %v4193_v33 = vcombine.low %v943_v30, %v5858_v29  ;;  %4910 = vmatprep.subr.bf16.mxu1 %v5236_v21  ;;  %3100 = vmatprep.mubr.bf16.mxu1 %v1454_v32  ;;  %288 = vst [vmem:[#allocation2 + $0x38] sm:$0x1] %v287_v37  ;;  %v414_v47 = vshll.u32 %v331_v38, 16  ;;  %v419_v48 = vshrl.u32 %v332_v39, 16  ;;  %v422_v49 = vshll.u32 %v332_v39, 16  ;;  %v5239_v50 = vld [vmem:[#allocation6 + $0x120] sm:$0xff]  }
  0x8f   : > { %3101 = vmatmul.mubr.bf16.gmra.mxu1 %v4204_v0  ;;  %v1321_v52 = vrot.slane %v1319_v43, 1  ;;  %v413_v54 = vrot.slane %v411_v44, 7  ;;  %4805 = vmatpush3.bf16.msra.mxu0 %v5239_v50  ;;  %v1001_v2 = vld [vmem:[#allocation2 + $0xc] sm:$0xf]  ;;  %v5871_v3 = vld [vmem:[#allocation2 + $0x10] sm:$0xf] }
  0x90   : > { %v1312_v41 = vshrl.u32 %v4193_v33, 16  ;;  %v1314_v42 = vshll.u32 %v4193_v33, 16  ;;  %v421_v58 = vrot.slane %v419_v48, 7  ;;  %v985_v4 = vld [vmem:[#allocation2] sm:$0xe]  ;;  %v5250_v7 = vld [vmem:[#allocation6 + $0x158] sm:$0xff]   ;;  %v5882_v24 = vcombine.low %v1001_v2, %v5871_v3 }
  0x91   : > { %v967_v46 = vld [vmem:[#allocation2 + $0xb4] sm:$0xf]  ;;  %v416_v60 = vor.u32 %v414_v47, %v413_v54  ;;  %v417_v61 = vrot.slane %v413_v54, 4  ;;  %4806 = vmatprep.subr.bf16.mxu0 %v5250_v7  ;;  %v4222_v23 = vcombine.low %v985_v4, %v5728_v14  ;;  %v239_v27 = vld [vmem:[#allocation2 + $0x3c] sm:$0x1]  ;;  %s5560_s8 = smov [#allocation8]  }
  0x92   : > { %v1316_v51 = vrot.slane %v1314_v42, 1  ;;  %v968_v53 = vld [vmem:[#allocation2 + $0xb8] sm:$0xf]  ;;  %v5224_v57 = vld [vmem:[#allocation2 + $0xbc] ss:$0 sps:$4 sm:$0x11]   ;;  %v424_v1 = vor.u32 %v422_v49, %v421_v58 }
  0x93   : > { %v4205_v55 = vcombine.low %v967_v46, %v968_v53  ;;  %v1463_v0 = vshll.u32 %v5224_v57, 16  ;;  %v426_v5 = vrot.slane %v421_v58, 4  ;;  %v240_v25 = vsel %vm5724_vm3, 0, %v239_v27  ;;  %v289_v30 = vld [vmem:[#allocation2 + $0x44] sm:$0x1]  ;;  %v5252_v32 = vld [vmem:[#allocation6 + $0x118] sm:$0xff]  }
  0x94   : > { %v1317_v59 = vor.u32 %v1316_v51, %v1312_v41  ;;  %v702_v9 = vld [vmem:[#allocation2 + $0x30] sm:$0xf]  ;;  %v425_v17 = vsel %vm5752_vm8, %v417_v61, %v424_v1  ;;  %v333_v31 = vld [vmem:[%s5712_s23 + $0x20] sm:$0xf]  ;;  %241 = vst [vmem:[#allocation2 + $0x3c] sm:$0x1] %v240_v25  ;;  %4807 = vmatpush3.bf16.msra.mxu0 %v5252_v32 }
  0x95   : > { %v1456_v62 = vshrl.u32 %v4205_v55, 16  ;;  %v1458_v63 = vshll.u32 %v4205_v55, 16  ;;  %v1465_v13 = vrot.slane %v1463_v0, 1  ;;  %v703_v19 = vsel %vm5758_vm9, %v416_v60, %v702_v9  ;;  %v706_v20 = vld [vmem:[#allocation2 + $0x38] sm:$0x1]  ;;  %v5259_v51 = vld [vmem:[#allocation6 + $0x150] sm:$0xff]  }
  0x96   : > { %v1322_v8 = vsel %vm1274_vm5, %v1317_v59, %v1321_v52  ;;  %704 = vst [vmem:[#allocation2 + $0x30] sm:$0xf] %v703_v19  ;;  %705 = vst [vmem:[#allocation2 + $0x34] sm:$0xf] %v425_v17  ;;  %v707_v21 = vsel %vm5724_vm3, %v426_v5, %v706_v20  ;;  %v290_v14 = vsel %vm5737_vm6, 0, %v289_v30  ;;  %v428_v15 = vshrl.u32 %v333_v31, 16  ;;  %4808 = vmatprep.subr.bf16.mxu0 %v5259_v51 }
  0x97   : > { %3012 = vmatprep.mubr.bf16.mxu0 %v1322_v8  ;;  %v1460_v12 = vrot.slane %v1458_v63, 1  ;;  %708 = vst [vmem:[#allocation2 + $0x38] sm:$0x1] %v707_v21  ;;  %v334_v35 = vld [vmem:[%s5712_s23 + $0x24] sm:$0xf]  ;;  %v431_v37 = vshll.u32 %v333_v31, 16 }
  0x98   : > { %3013 = vmatmul.mubr.bf16.gmra.mxu0 %v4193_v33  ;;  %v1533_v33 = vrot.slane %v5733_v16, 1  ;;  %v1532_v38 = vrot.slane %v4222_v23, 1  ;;  %291 = vst [vmem:[#allocation2 + $0x44] sm:$0x1] %v290_v14  ;;  %v436_v39 = vshrl.u32 %v334_v35, 16  ;;  %v439_v40 = vshll.u32 %v334_v35, 16 }
  0x99   : > { %v1461_v22 = vor.u32 %v1460_v12, %v1456_v62  ;;  %v1003_v41 = vld [vmem:[#allocation2 + $0x18] sm:$0xf]  ;;  %v1536_v42 = vrot.slane %v5806_v6, 1  ;;  %v430_v16 = vrot.slane %v428_v15, 7  ;;  %v5894_v43 = vld [vmem:[#allocation2 + $0x1c] sm:$0xf] }
  0x9a   : > { %v986_v44 = vld [vmem:[#allocation2 + $0xc] sm:$0xe]  ;;  %v1539_v46 = vrot.slane %v5836_v26, 1  ;;  %v438_v49 = vrot.slane %v436_v39, 7  ;;  %v5237_v54 = vld [vmem:[#allocation6 + $0x1b8] sm:$0xff]   ;;  %v1534_v58 = vsel %vm1531_vm10, %v1532_v38, %v1533_v33  ;;  %v5905_v61 = vcombine.low %v1003_v41, %v5894_v43  ;;  %v5266_v35 = vld [vmem:[#allocation6 + $0x1e8] sm:$0xff]  }
  0x9b   : > { %v1466_v28 = vsel %vm1274_vm5, %v1461_v22, %v1465_v13  ;;  %v4223_v50 = vcombine.low %v986_v44, %v5795_v56  ;;  %v434_v57 = vrot.slane %v430_v16, 4  ;;  %v242_v62 = vld [vmem:[#allocation2 + $0x48] sm:$0x1]  ;;  %v292_v7 = vld [vmem:[#allocation2 + $0x50] sm:$0x1]  ;;  %s5459_s9 = sshll.u32 %s5560_s8, 4  ;;  %s5460_s9 = int_to_ptr.vmem [resolvable:$false] %s5459_s9 }
  0x9c   : > { %3108 = vmatprep.mubr.bf16.mxu1 %v1466_v28  ;;  %v441_v59 = vor.u32 %v439_v40, %v438_v49  ;;  %v443_v60 = vrot.slane %v438_v49, 4  ;;  %v5251_v63 = vld [vmem:[#allocation6 + $0x1f0] sm:$0xff]   ;;  %v243_v4 = vsel %vm5724_vm3, 0, %v242_v62  ;;  %v709_v5 = vld [vmem:[#allocation2 + $0x3c] sm:$0xf]  ;;  %v293_v12 = vsel %vm5737_vm6, 0, %v292_v7  ;;  %p5462_p10 = scmp.lt.s32.totalorder %s7003_s28, %s5460_s9 }
  0x9d   : > { %3109 = vmatmul.mubr.bf16.gmra.mxu1 %v4205_v55  ;;  %v945_v47 = vld [vmem:[#allocation2 + $0x30] sm:$0xf]  ;;  %v5897_v48 = vld [vmem:[#allocation2 + $0x34] sm:$0xf]  ;;  %v433_v55 = vor.u32 %v431_v37, %v430_v16  ;;  %v5260_v56 = vld [vmem:[#allocation6 + $0x110] sm:$0xff]   ;;  %v1535_v9 = vrot.slane %v4223_v50, 1 }
  0x9e   : > { %3149 = vmatprep.mubr.bf16.mxu1 %v5882_v24  ;;  %v4194_v52 = vcombine.low %v945_v47, %v5897_v48  ;;  %v5901_v53 = vld [vmem:[#allocation2 + $0x38] ss:$0 sps:$4 sm:$0x11]   ;;  %v442_v8 = vsel %vm5752_vm8, %v434_v57, %v441_v59  ;;  %244 = vst [vmem:[#allocation2 + $0x48] sm:$0x1] %v243_v4  ;;  %4809 = vmatpush3.bf16.msra.mxu0 %v5260_v56  ;;  %v5253_v30 = vld [vmem:[#allocation6 + $0x1b0] sm:$0xff]  }
  0x9f   : > { %v1331_v2 = vshll.u32 %v5901_v53, 16  ;;  %v335_v13 = vld [vmem:[%s5712_s23 + $0x28] sm:$0xf]  ;;  %v710_v20 = vsel %vm5758_vm9, %v433_v55, %v709_v5  ;;  %712 = vst [vmem:[#allocation2 + $0x40] sm:$0xf] %v442_v8  ;;  %v1537_v49 = vsel %vm1531_vm10, %v1535_v9, %v1536_v42  ;;  %s5461_s7 = scalar_lea.vmem %s5460_s9, 4096 }
  0xa0   : > { %v1324_v0 = vshrl.u32 %v4194_v52, 16  ;;  %v1326_v1 = vshll.u32 %v4194_v52, 16  ;;  %v713_v21 = vld [vmem:[#allocation2 + $0x44] sm:$0x1]  ;;  %294 = vst [vmem:[#allocation2 + $0x50] sm:$0x1] %v293_v12  ;;  %p5463_p12 = scmp.lt.s32.totalorder %s5461_s7, %s5455_s4 }
  0xa1   : > { %v1333_v19 = vrot.slane %v1331_v2, 1  ;;  %v336_v22 = vld [vmem:[%s5712_s23 + $0x2c] sm:$0xf]  ;;  %711 = vst [vmem:[#allocation2 + $0x3c] sm:$0xf] %v710_v20  ;;  %v714_v23 = vsel %vm5724_vm3, %v443_v60, %v713_v21  ;;  %v445_v27 = vshrl.u32 %v335_v13, 16 }
  0xa2   : > { %v1328_v17 = vrot.slane %v1326_v1, 1  ;;  %v448_v28 = vshll.u32 %v335_v13, 16  ;;  %v453_v25 = vshrl.u32 %v336_v22, 16  ;;  %715 = vst [vmem:[#allocation2 + $0x44] sm:$0x1] %v714_v23  ;;  %v456_v32 = vshll.u32 %v336_v22, 16  ;;  %p5464_p13 = por %p5463_p12, %p5462_p10 }
  0xa3   : > { %v1005_v33 = vld [vmem:[#allocation2 + $0x24] sm:$0xf]  ;;  %v5921_v14 = vld [vmem:[#allocation2 + $0x28] sm:$0xf]  ;;  %v447_v15 = vrot.slane %v445_v27, 7 }
  0xa4   : > { %v1329_v31 = vor.u32 %v1328_v17, %v1324_v0  ;;  %v455_v37 = vrot.slane %v453_v25, 7  ;;  %v987_v38 = vld [vmem:[#allocation2 + $0x18] sm:$0xe]  ;;  %v5929_v51 = vcombine.low %v1005_v33, %v5921_v14  ;;  %v5267_v55 = vld [vmem:[#allocation6 + $0x1a8] sm:$0xff]   ;;  %v245_v59 = vld [vmem:[#allocation2 + $0x54] sm:$0x1]  ;;  %p5465_p0 = pnand %p5464_p13, %p5458_p9 }
  0xa5   : > { %3150 = vmatmul.mubr.bf16.vlgmr.msra.gmra.mxu1 %v1534_v58  ;;  %v4224_v40 = vcombine.low %v987_v38, %v5827_v11  ;;  %v450_v41 = vor.u32 %v448_v28, %v447_v15  ;;  %v451_v16 = vrot.slane %v447_v15, 4  ;;  %v716_v50 = vld [vmem:[#allocation2 + $0x48] sm:$0xf]  ;;  %v295_v60 = vld [vmem:[#allocation2 + $0x5c] sm:$0x1]  ;;  %v246_v56 = vsel %vm5724_vm3, 0, %v245_v59 }
  0xa6   : > { %4911 = vmatpush3.bf16.msra.mxu1 %v5237_v54  ;;  %3157 = vmatprep.mubr.bf16.mxu1 %v5905_v61  ;;  %v1334_v39 = vsel %vm1274_vm5, %v1329_v31, %v1333_v19  ;;  %v458_v44 = vor.u32 %v456_v32, %v455_v37  ;;  %v460_v47 = vrot.slane %v455_v37, 4  ;;  %v5931_v57 = vld [vmem:[#allocation2 + $0x40] sm:$0xf]  ;;  %247 = vst [vmem:[#allocation2 + $0x54] sm:$0x1] %v246_v56  ;;  %v296_v0 = vsel %vm5737_vm6, 0, %v295_v60 }
  0xa7   : > { %4912 = vmatprep.subr.bf16.mxu1 %v5251_v63  ;;  %3020 = vmatprep.mubr.bf16.mxu0 %v1334_v39  ;;  %v1538_v54 = vrot.slane %v4224_v40, 1  ;;  %v717_v58 = vsel %vm5758_vm9, %v450_v41, %v716_v50  ;;  %v337_v1 = vld [vmem:[%s5712_s23 + $0x30] sm:$0xf]  ;;  %v338_v2 = vld [vmem:[%s5712_s23 + $0x34] sm:$0xf]  ;;  %v5273_v4 = vld [vmem:[#allocation6 + $0x148] sm:$0xff]  }
  0xa8   : > { %3021 = vmatmul.mubr.bf16.gmra.mxu0 %v4194_v52  ;;  %v459_v11 = vsel %vm5752_vm8, %v451_v16, %v458_v44  ;;  %v720_v52 = vld [vmem:[#allocation2 + $0x50] sm:$0x1]  ;;  %v947_v6 = vld [vmem:[#allocation2 + $0x3c] sm:$0xf]  ;;  %718 = vst [vmem:[#allocation2 + $0x48] sm:$0xf] %v717_v58  ;;  %4810 = vmatprep.subr.bf16.mxu0 %v5273_v4 }
  0xa9   : > { %719 = vst [vmem:[#allocation2 + $0x4c] sm:$0xf] %v459_v11  ;;  %v721_v42 = vsel %vm5724_vm3, %v460_v47, %v720_v52  ;;  %v4195_v62 = vcombine.low %v947_v6, %v5931_v57  ;;  %v5940_v63 = vld [vmem:[#allocation2 + $0x44] ss:$0 sps:$4 sm:$0x11]   ;;  %v462_v9 = vshrl.u32 %v337_v1, 16  ;;  %v1540_v28 = vsel %vm1531_vm10, %v1538_v54, %v1539_v46 }
  0xaa   : > { %4913 = vmatpush3.bf16.msra.mxu1 %v5253_v30  ;;  %722 = vst [vmem:[#allocation2 + $0x50] sm:$0x1] %v721_v42  ;;  %v1343_v5 = vshll.u32 %v5940_v63, 16  ;;  %297 = vst [vmem:[#allocation2 + $0x5c] sm:$0x1] %v296_v0  ;;  %v465_v13 = vshll.u32 %v337_v1, 16 }
  0xab   : > { %4914 = vmatprep.subr.bf16.mxu1 %v5266_v35  ;;  %v1336_v7 = vshrl.u32 %v4195_v62, 16  ;;  %v1338_v8 = vshll.u32 %v4195_v62, 16  ;;  %v1007_v12 = vld [vmem:[#allocation2 + $0x30] sm:$0xf]  ;;  %v470_v17 = vshrl.u32 %v338_v2, 16  ;;  %v473_v19 = vshll.u32 %v338_v2, 16 }
  0xac   : > { %v5950_v20 = vld [vmem:[#allocation2 + $0x34] sm:$0xf]  ;;  %v1345_v22 = vrot.slane %v1343_v5, 1  ;;  %v464_v23 = vrot.slane %v462_v9, 7  ;;  %v5274_v27 = vld [vmem:[#allocation6 + $0x108] sm:$0xff]   ;;  %v5280_v32 = vld [vmem:[#allocation6 + $0x1e0] sm:$0xff]  }
  0xad   : > { %3158 = vmatmul.mubr.bf16.gmra.mxu1 %v1537_v49  ;;  %v1340_v21 = vrot.slane %v1338_v8, 1  ;;  %v472_v25 = vrot.slane %v470_v17, 7  ;;  %v5956_v30 = vcombine.low %v1007_v12, %v5950_v20  ;;  %v988_v31 = vld [vmem:[#allocation2 + $0x24] sm:$0xe]  ;;  %v1542_v39 = vrot.slane %v5862_v34, 1  ;;  %4811 = vmatpush3.bf16.msra.mxu0 %v5274_v27  ;;  %v5281_v11 = vld [vmem:[#allocation6 + $0x1a0] sm:$0xff]  }
  0xae   : > { %3165 = vmatprep.mubr.bf16.mxu1 %v5929_v51  ;;  %4915 = vmatpush3.bf16.msra.mxu1 %v5267_v55  ;;  %v467_v37 = vor.u32 %v465_v13, %v464_v23  ;;  %v468_v38 = vrot.slane %v464_v23, 4  ;;  %v4225_v16 = vcombine.low %v988_v31, %v5858_v29  ;;  %v723_v47 = vld [vmem:[#allocation2 + $0x54] sm:$0xf]  ;;  %v248_v6 = vld [vmem:[#allocation2 + $0x60] sm:$0x1] }
  0xaf   : > { %v1341_v33 = vor.u32 %v1340_v21, %v1336_v7  ;;  %v949_v35 = vld [vmem:[#allocation2 + $0x48] sm:$0xf]  ;;  %v475_v46 = vor.u32 %v473_v19, %v472_v25  ;;  %v477_v41 = vrot.slane %v472_v25, 4  ;;  %4916 = vmatprep.subr.bf16.mxu1 %v5280_v32  ;;  %v249_v60 = vsel %vm5724_vm3, 0, %v248_v6  ;;  %v339_v2 = vld [vmem:[%s5712_s23 + $0x38] sm:$0xf] }
  0xb0   : > { %v5958_v15 = vld [vmem:[#allocation2 + $0x4c] sm:$0xf]  ;;  %v724_v29 = vsel %vm5758_vm9, %v467_v37, %v723_v47  ;;  %v1541_v52 = vrot.slane %v4225_v16, 1  ;;  %v298_v56 = vld [vmem:[#allocation2 + $0x68] sm:$0x1]  ;;  %v5283_v7 = vld [vmem:[#allocation6 + $0x100] sm:$0xff]  }
  0xb1   : > { %v5962_v40 = vcombine.low %v949_v35, %v5958_v15  ;;  %v5964_v26 = vld [vmem:[#allocation2 + $0x50] ss:$0 sps:$4 sm:$0x11]   ;;  %v1346_v44 = vsel %vm1274_vm5, %v1341_v33, %v1345_v22  ;;  %v476_v54 = vsel %vm5752_vm8, %v468_v38, %v475_v46  ;;  %v727_v55 = vld [vmem:[#allocation2 + $0x5c] sm:$0x1]  ;;  %v299_v1 = vsel %vm5737_vm6, 0, %v298_v56 }
  0xb2   : > { %3028 = vmatprep.mubr.bf16.mxu0 %v1346_v44  ;;  %v1355_v50 = vshll.u32 %v5964_v26, 16  ;;  %726 = vst [vmem:[#allocation2 + $0x58] sm:$0xf] %v476_v54  ;;  %v728_v58 = vsel %vm5724_vm3, %v477_v41, %v727_v55  ;;  %725 = vst [vmem:[#allocation2 + $0x54] sm:$0xf] %v724_v29  ;;  %4917 = vmatpush3.bf16.msra.mxu1 %v5281_v11  ;;  %v1543_v0 = vsel %vm1531_vm10, %v1541_v52, %v1542_v39  ;;  %v5293_v17 = vld [vmem:[#allocation6 + $0x1d8] sm:$0xff]  }
  0xb3   : > { %v1348_v49 = vshrl.u32 %v5962_v40, 16  ;;  %v1350_v34 = vshll.u32 %v5962_v40, 16  ;;  %3029 = vmatmul.mubr.bf16.gmra.mxu0 %v4195_v62  ;;  %729 = vst [vmem:[#allocation2 + $0x5c] sm:$0x1] %v728_v58  ;;  %v5282_v62 = vld [vmem:[#allocation6 + $0x140] sm:$0xff]   ;;  %v479_v5 = vshrl.u32 %v339_v2, 16  ;;  %4918 = vmatprep.subr.bf16.mxu1 %v5293_v17 }
  0xb4   : > { %v1357_v59 = vrot.slane %v1355_v50, 1  ;;  %250 = vst [vmem:[#allocation2 + $0x60] sm:$0x1] %v249_v60  ;;  %v340_v4 = vld [vmem:[%s5712_s23 + $0x3c] sm:$0xf]  ;;  %v482_v9 = vshll.u32 %v339_v2, 16  ;;  %4812 = vmatprep.subr.bf16.mxu0 %v5282_v62 }
  0xb5   : > { %3166 = vmatmul.mubr.bf16.gmra.mxu1 %v1540_v28  ;;  %v1352_v42 = vrot.slane %v1350_v34, 1  ;;  %300 = vst [vmem:[#allocation2 + $0x68] sm:$0x1] %v299_v1  ;;  %v487_v12 = vshrl.u32 %v340_v4, 16  ;;  %v1009_v13 = vld [vmem:[#allocation2 + $0x3c] sm:$0xf]  ;;  %4813 = vmatpush3.bf16.msra.mxu0 %v5283_v7 }
  0xb6   : > { %3173 = vmatprep.mubr.bf16.mxu1 %v5956_v30  ;;  %v490_v19 = vshll.u32 %v340_v4, 16  ;;  %v5985_v21 = vld [vmem:[#allocation2 + $0x40] sm:$0xf]  ;;  %v1545_v22 = vrot.slane %v5901_v53, 1  ;;  %v481_v27 = vrot.slane %v479_v5, 7 }
  0xb7   : > { %v1353_v8 = vor.u32 %v1352_v42, %v1348_v49  ;;  %v489_v28 = vrot.slane %v487_v12, 7  ;;  %v5990_v25 = vcombine.low %v1009_v13, %v5985_v21  ;;  %v989_v31 = vld [vmem:[#allocation2 + $0x30] sm:$0xe]  ;;  %v251_v39 = vld [vmem:[#allocation2 + $0x6c] sm:$0x1]  ;;  %v1548_v13 = vrot.slane %v5940_v63, 1 }
  0xb8   : > { %v4226_v32 = vcombine.low %v989_v31, %v5897_v48  ;;  %v484_v35 = vor.u32 %v482_v9, %v481_v27  ;;  %v485_v37 = vrot.slane %v481_v27, 4  ;;  %v252_v49 = vsel %vm5724_vm3, 0, %v251_v39  ;;  %v301_v54 = vld [vmem:[#allocation2 + $0x74] sm:$0x1]  ;;  %v341_v55 = vld [vmem:[%s5712_s23 + $0x40] sm:$0xf] }
  0xb9   : > { %v1358_v23 = vsel %vm1274_vm5, %v1353_v8, %v1357_v59  ;;  %v5993_v33 = vld [vmem:[#allocation2 + $0x58] sm:$0xf]  ;;  %v492_v38 = vor.u32 %v490_v19, %v489_v28  ;;  %v494_v53 = vrot.slane %v489_v28, 4  ;;  %v951_v46 = vld [vmem:[#allocation2 + $0x54] sm:$0xf]  ;;  %v302_v59 = vsel %vm5737_vm6, 0, %v301_v54 }
  0xba   : > { %3036 = vmatprep.mubr.bf16.mxu0 %v1358_v23  ;;  %v1544_v41 = vrot.slane %v4226_v32, 1  ;;  %v4197_v16 = vcombine.low %v951_v46, %v5993_v33  ;;  %v5998_v44 = vld [vmem:[#allocation2 + $0x5c] ss:$0 sps:$4 sm:$0x11]   ;;  %253 = vst [vmem:[#allocation2 + $0x6c] sm:$0x1] %v252_v49 }
  0xbb   : > { %3037 = vmatmul.mubr.bf16.gmra.mxu0 %v5962_v40  ;;  %v493_v48 = vsel %vm5752_vm8, %v485_v37, %v492_v38  ;;  %v730_v47 = vld [vmem:[#allocation2 + $0x60] sm:$0xf]  ;;  %v1367_v58 = vshll.u32 %v5998_v44, 16  ;;  %v342_v6 = vld [vmem:[%s5712_s23 + $0x44] sm:$0xf]  ;;  %v6012_v42 = vld [vmem:[#allocation6 + $0x238] sm:$0xff]  }
  0xbc   : > { %v731_v34 = vsel %vm5758_vm9, %v484_v35, %v730_v47  ;;  %733 = vst [vmem:[#allocation2 + $0x64] sm:$0xf] %v493_v48  ;;  %v734_v50 = vld [vmem:[#allocation2 + $0x68] sm:$0x1]  ;;  %v1546_v40 = vsel %vm1531_vm10, %v1544_v41, %v1545_v22  ;;  %v1360_v11 = vshrl.u32 %v4197_v16, 16  ;;  %v1362_v29 = vshll.u32 %v4197_v16, 16  ;;  %5046 = vmatprep.subr.bf16.mxu0 %v6012_v42 }
  0xbd   : > { %3174 = vmatmul.mubr.bf16.gmra.mxu1 %v1543_v0  ;;  %732 = vst [vmem:[#allocation2 + $0x60] sm:$0xf] %v731_v34  ;;  %v735_v52 = vsel %vm5724_vm3, %v494_v53, %v734_v50  ;;  %v496_v60 = vshrl.u32 %v341_v55, 16  ;;  %v499_v56 = vshll.u32 %v341_v55, 16  ;;  %v504_v62 = vshrl.u32 %v342_v6, 16  ;;  %v5295_v41 = vld [vmem:[#allocation6 + $0x198] sm:$0xff]  }
  0xbe   : > { %3181 = vmatprep.mubr.bf16.mxu1 %v5990_v25  ;;  %736 = vst [vmem:[#allocation2 + $0x68] sm:$0x1] %v735_v52  ;;  %v1011_v0 = vld [vmem:[#allocation2 + $0x48] sm:$0xf]  ;;  %v1364_v1 = vrot.slane %v1362_v29, 1  ;;  %v1369_v2 = vrot.slane %v1367_v58, 1  ;;  %4919 = vmatpush3.bf16.msra.mxu1 %v5295_v41 }
  0xbf   : > { %303 = vst [vmem:[#allocation2 + $0x74] sm:$0x1] %v302_v59  ;;  %v507_v4 = vshll.u32 %v342_v6, 16  ;;  %v6016_v7 = vld [vmem:[#allocation2 + $0x4c] sm:$0xf]  ;;  %v498_v8 = vrot.slane %v496_v60, 7 }
  0xc0   : > { %v506_v5 = vrot.slane %v504_v62, 7  ;;  %v6020_v9 = vcombine.low %v1011_v0, %v6016_v7  ;;  %v990_v12 = vld [vmem:[#allocation2 + $0x3c] sm:$0xe]  ;;  %v1365_v17 = vor.u32 %v1364_v1, %v1360_v11  ;;  %v254_v28 = vld [vmem:[#allocation2 + $0x78] sm:$0x1]  ;;  %v5304_v52 = vld [vmem:[#allocation6 + $0x1d0] sm:$0xff]  }
  0xc1   : > { %v4227_v19 = vcombine.low %v990_v12, %v5931_v57  ;;  %v501_v22 = vor.u32 %v499_v56, %v498_v8  ;;  %v502_v23 = vrot.slane %v498_v8, 4  ;;  %v737_v37 = vld [vmem:[#allocation2 + $0x6c] sm:$0xf]  ;;  %v255_v39 = vsel %vm5724_vm3, 0, %v254_v28  ;;  %v304_v46 = vld [vmem:[#allocation2 + $0x80] sm:$0x1]  ;;  %4920 = vmatprep.subr.bf16.mxu1 %v5304_v52 }
  0xc2   : > { %v509_v27 = vor.u32 %v507_v4, %v506_v5  ;;  %v1370_v31 = vsel %vm1274_vm5, %v1365_v17, %v1369_v2  ;;  %v511_v35 = vrot.slane %v506_v5, 4  ;;  %256 = vst [vmem:[#allocation2 + $0x78] sm:$0x1] %v255_v39  ;;  %v305_v34 = vsel %vm5737_vm6, 0, %v304_v46  ;;  %v344_v54 = vld [vmem:[%s5712_s23 + $0x4c] sm:$0xf] }
  0xc3   : > { %v6026_v32 = vld [vmem:[#allocation2 + $0x64] sm:$0xf]  ;;  %v1547_v38 = vrot.slane %v4227_v19, 1  ;;  %3044 = vmatprep.mubr.bf16.mxu0 %v1370_v31  ;;  %v738_v57 = vsel %vm5758_vm9, %v501_v22, %v737_v37  ;;  %306 = vst [vmem:[#allocation2 + $0x80] sm:$0x1] %v305_v34  ;;  %v521_v60 = vshrl.u32 %v344_v54, 16 }
  0xc4   : > { %v953_v53 = vld [vmem:[#allocation2 + $0x60] sm:$0xf]  ;;  %v510_v63 = vsel %vm5752_vm8, %v502_v23, %v509_v27  ;;  %3045 = vmatmul.mubr.bf16.gmra.mxu0 %v4197_v16  ;;  %739 = vst [vmem:[#allocation2 + $0x6c] sm:$0xf] %v738_v57  ;;  %v1013_v58 = vld [vmem:[#allocation2 + $0x54] sm:$0xf] }
  0xc5   : > { %3182 = vmatmul.mubr.bf16.gmra.mxu1 %v1546_v40  ;;  %v4198_v48 = vcombine.low %v953_v53, %v6026_v32  ;;  %v6035_v47 = vld [vmem:[#allocation2 + $0x68] ss:$0 sps:$4 sm:$0x11]   ;;  %740 = vst [vmem:[#allocation2 + $0x70] sm:$0xf] %v510_v63  ;;  %v1549_v49 = vsel %vm1531_vm10, %v1547_v38, %v1548_v13  ;;  %v524_v56 = vshll.u32 %v344_v54, 16 }
  0xc6   : > { %3189 = vmatprep.mubr.bf16.mxu1 %v6020_v9  ;;  %v741_v50 = vld [vmem:[#allocation2 + $0x74] sm:$0x1]  ;;  %v343_v40 = vld [vmem:[%s5712_s23 + $0x48] sm:$0xf]  ;;  %v1379_v16 = vshll.u32 %v6035_v47, 16  ;;  %v523_v5 = vrot.slane %v521_v60, 7 }
  0xc7   : > { %v1372_v55 = vshrl.u32 %v4198_v48, 16  ;;  %v1374_v11 = vshll.u32 %v4198_v48, 16  ;;  %v742_v29 = vsel %vm5724_vm3, %v511_v35, %v741_v50  ;;  %v513_v6 = vshrl.u32 %v343_v40, 16  ;;  %v6045_v62 = vld [vmem:[#allocation2 + $0x58] sm:$0xf] }
  0xc8   : > { %743 = vst [vmem:[#allocation2 + $0x74] sm:$0x1] %v742_v29  ;;  %v516_v59 = vshll.u32 %v343_v40, 16  ;;  %v1381_v1 = vrot.slane %v1379_v16, 1  ;;  %v6048_v2 = vcombine.low %v1013_v58, %v6045_v62  ;;  %v991_v4 = vld [vmem:[#allocation2 + $0x48] sm:$0xe]  ;;  %v526_v28 = vor.u32 %v524_v56, %v523_v5 }
  0xc9   : > { %v1376_v0 = vrot.slane %v1374_v11, 1  ;;  %v515_v8 = vrot.slane %v513_v6, 7  ;;  %v4228_v12 = vcombine.low %v991_v4, %v5958_v15  ;;  %v1551_v17 = vrot.slane %v5964_v26, 1  ;;  %v744_v38 = vld [vmem:[#allocation2 + $0x78] sm:$0xf] }
  0xca   : > { %v528_v31 = vrot.slane %v523_v5, 4  ;;  %v748_v53 = vld [vmem:[#allocation2 + $0x80] sm:$0x1]  ;;  %v257_v34 = vld [vmem:[#allocation2 + $0x84] sm:$0x1] }
  0xcb   : > { %v1377_v13 = vor.u32 %v1376_v0, %v1372_v55  ;;  %v955_v19 = vld [vmem:[#allocation2 + $0x6c] sm:$0xf]  ;;  %v518_v23 = vor.u32 %v516_v59, %v515_v8  ;;  %v519_v27 = vrot.slane %v515_v8, 4  ;;  %v1550_v63 = vrot.slane %v4228_v12, 1  ;;  %v345_v55 = vld [vmem:[%s5712_s23 + $0x50] sm:$0xf] }
  0xcc   : > { %v6053_v22 = vld [vmem:[#allocation2 + $0x70] sm:$0xf]  ;;  %v749_v57 = vsel %vm5724_vm3, %v528_v31, %v748_v53  ;;  %v258_v40 = vsel %vm5724_vm3, 0, %v257_v34  ;;  %v307_v54 = vld [vmem:[#allocation2 + $0x8c] sm:$0x1]  ;;  %v530_v29 = vshrl.u32 %v345_v55, 16 }
  0xcd   : > { %3190 = vmatmul.mubr.bf16.gmra.mxu1 %v1549_v49  ;;  %v1382_v35 = vsel %vm1274_vm5, %v1377_v13, %v1381_v1  ;;  %v4199_v37 = vcombine.low %v955_v19, %v6053_v22  ;;  %v527_v15 = vsel %vm5752_vm8, %v519_v27, %v526_v28  ;;  %v745_v26 = vsel %vm5758_vm9, %v518_v23, %v744_v38  ;;  %v346_v16 = vld [vmem:[%s5712_s23 + $0x54] sm:$0xf]  ;;  %v1015_v60 = vld [vmem:[#allocation2 + $0x60] sm:$0xf]  ;;  %v6073_v1 = vld [vmem:[#allocation2 + $0x64] sm:$0xf] }
  0xce   : > { %3197 = vmatprep.mubr.bf16.mxu1 %v6048_v2  ;;  %3052 = vmatprep.mubr.bf16.mxu0 %v1382_v35  ;;  %746 = vst [vmem:[#allocation2 + $0x78] sm:$0xf] %v745_v26  ;;  %747 = vst [vmem:[#allocation2 + $0x7c] sm:$0xf] %v527_v15  ;;  %v1552_v46 = vsel %vm1531_vm10, %v1550_v63, %v1551_v17  ;;  %v308_v11 = vsel %vm5737_vm6, 0, %v307_v54  ;;  %v533_v58 = vshll.u32 %v345_v55, 16 }
  0xcf   : > { %3053 = vmatmul.mubr.bf16.gmra.mxu0 %v4198_v48  ;;  %v6063_v39 = vld [vmem:[#allocation2 + $0x74] ss:$0 sps:$4 sm:$0x11]   ;;  %750 = vst [vmem:[#allocation2 + $0x80] sm:$0x1] %v749_v57  ;;  %v1384_v41 = vshrl.u32 %v4199_v37, 16  ;;  %v6076_v8 = vcombine.low %v1015_v60, %v6073_v1 }
  0xd0   : > { %v1386_v49 = vshll.u32 %v4199_v37, 16  ;;  %v1391_v50 = vshll.u32 %v6063_v39, 16  ;;  %259 = vst [vmem:[#allocation2 + $0x84] sm:$0x1] %v258_v40  ;;  %309 = vst [vmem:[#allocation2 + $0x8c] sm:$0x1] %v308_v11 }
  0xd1   : > { %v538_v6 = vshrl.u32 %v346_v16, 16  ;;  %v541_v59 = vshll.u32 %v346_v16, 16  ;;  %v532_v0 = vrot.slane %v530_v29, 7  ;;  %v992_v5 = vld [vmem:[#allocation2 + $0x54] sm:$0xe]  ;;  %v1554_v12 = vrot.slane %v5998_v44, 1 }
  0xd2   : > { %v1388_v48 = vrot.slane %v1386_v49, 1  ;;  %v1393_v52 = vrot.slane %v1391_v50, 1  ;;  %v1017_v13 = vld [vmem:[#allocation2 + $0x6c] sm:$0xf]  ;;  %v4229_v28 = vcombine.low %v992_v5, %v5993_v33  ;;  %v6087_v15 = vld [vmem:[#allocation2 + $0x70] sm:$0xf] }
  0xd3   : > { %v540_v4 = vrot.slane %v538_v6, 7  ;;  %v535_v27 = vor.u32 %v533_v58, %v532_v0  ;;  %v536_v38 = vrot.slane %v532_v0, 4  ;;  %v5306_v49 = vld [vmem:[#allocation6 + $0x190] sm:$0xff]   ;;  %v993_v54 = vld [vmem:[#allocation2 + $0x60] sm:$0xe]  ;;  %v1557_v58 = vrot.slane %v6035_v47, 1 }
  0xd4   : > { %v1389_v56 = vor.u32 %v1388_v48, %v1384_v41  ;;  %v1553_v44 = vrot.slane %v4229_v28, 1  ;;  %v4230_v16 = vcombine.low %v993_v54, %v6026_v32  ;;  %v5315_v29 = vld [vmem:[#allocation6 + $0x1c8] sm:$0xff]   ;;  %4921 = vmatpush3.bf16.msra.mxu1 %v5306_v49 }
  0xd5   : > { %3198 = vmatmul.mubr.bf16.gmra.mxu1 %v1552_v46  ;;  %v957_v19 = vld [vmem:[#allocation2 + $0x78] sm:$0xf]  ;;  %v6080_v23 = vld [vmem:[#allocation2 + $0x7c] sm:$0xf]  ;;  %v543_v53 = vor.u32 %v541_v59, %v540_v4  ;;  %v545_v63 = vrot.slane %v540_v4, 4  ;;  %4922 = vmatprep.subr.bf16.mxu1 %v5315_v29  ;;  %v5317_v4 = vld [vmem:[#allocation6 + $0x188] sm:$0xff]  }
  0xd6   : > { %v1394_v17 = vsel %vm1274_vm5, %v1389_v56, %v1393_v52  ;;  %v4200_v31 = vcombine.low %v957_v19, %v6080_v23  ;;  %v6084_v35 = vld [vmem:[#allocation2 + $0x80] ss:$0 sps:$4 sm:$0x11]   ;;  %3205 = vmatprep.mubr.bf16.mxu1 %v6076_v8  ;;  %v1555_v40 = vsel %vm1531_vm10, %v1553_v44, %v1554_v12  ;;  %v1049_v52 = vld [vmem:[#allocation2 + $0xc] sm:$0xe]  ;;  %v1556_v59 = vrot.slane %v4230_v16, 1 }
  0xd7   : > { %3060 = vmatprep.mubr.bf16.mxu0 %v1394_v17  ;;  %v1403_v46 = vshll.u32 %v6084_v35, 16  ;;  %v544_v33 = vsel %vm5752_vm8, %v536_v38, %v543_v53  ;;  %v751_v41 = vld [vmem:[#allocation2 + $0x84] sm:$0xf]  ;;  %v755_v50 = vld [vmem:[#allocation2 + $0x8c] sm:$0x1]  ;;  %v4270_v17 = vcombine.low %v1049_v52, %v5871_v3  ;;  %v5326_v3 = vld [vmem:[#allocation6 + $0x1c0] sm:$0xff]  }
  0xd8   : > { %3061 = vmatmul.mubr.bf16.gmra.mxu0 %v4199_v37  ;;  %v1396_v26 = vshrl.u32 %v4200_v31, 16  ;;  %v1398_v57 = vshll.u32 %v4200_v31, 16  ;;  %v752_v34 = vsel %vm5758_vm9, %v535_v27, %v751_v41  ;;  %754 = vst [vmem:[#allocation2 + $0x88] sm:$0xf] %v544_v33  ;;  %v6096_v37 = vcombine.low %v1017_v13, %v6087_v15  ;;  %v1019_v56 = vld [vmem:[#allocation2 + $0x78] sm:$0xf]  ;;  %4923 = vmatpush3.bf16.msra.mxu1 %v5317_v4 }
  0xd9   : > { %v1405_v48 = vrot.slane %v1403_v46, 1  ;;  %753 = vst [vmem:[#allocation2 + $0x84] sm:$0xf] %v752_v34  ;;  %v756_v11 = vsel %vm5724_vm3, %v545_v63, %v755_v50  ;;  %v6104_v0 = vld [vmem:[#allocation2 + $0x7c] sm:$0xf]  ;;  %v1558_v32 = vsel %vm1531_vm10, %v1556_v59, %v1557_v58  ;;  %v1560_v63 = vrot.slane %v6063_v39, 1  ;;  %4924 = vmatprep.subr.bf16.mxu1 %v5326_v3 }
  0xda   : > { %v1400_v55 = vrot.slane %v1398_v57, 1  ;;  %757 = vst [vmem:[#allocation2 + $0x8c] sm:$0x1] %v756_v11  ;;  %v6108_v5 = vcombine.low %v1019_v56, %v6104_v0  ;;  %v994_v12 = vld [vmem:[#allocation2 + $0x6c] sm:$0xe]  ;;  %v1743_v46 = vshll.u32 %v5882_v24, 16 }
  0xdb   : > { %v4231_v13 = vcombine.low %v994_v12, %v6053_v22  ;;  %v5291_v27 = vld [vmem:[#allocation2 + $0x14] ss:$0 sps:$4 sm:$0x11]   ;;  %v1996_v33 = vrot.slane %v4270_v17, 1  ;;  %v995_v49 = vld [vmem:[#allocation2 + $0x78] sm:$0xe] }
  0xdc   : > { %v1401_v6 = vor.u32 %v1400_v55, %v1396_v26  ;;  %v1997_v41 = vrot.slane %v5291_v27, 1  ;;  %v4232_v55 = vcombine.low %v995_v49, %v6080_v23  ;;  %v1741_v11 = vshrl.u32 %v5882_v24, 16  ;;  %v5298_v59 = vld [vmem:[#allocation2 + $0x20] ss:$0 sps:$4 sm:$0x11]  }
  0xdd   : > { %3206 = vmatmul.mubr.bf16.gmra.mxu1 %v1555_v40  ;;  %v1559_v53 = vrot.slane %v4231_v13, 1  ;;  %v1050_v40 = vld [vmem:[#allocation2 + $0x18] sm:$0xe]  ;;  %v1745_v16 = vrot.slane %v1743_v46, 1  ;;  %v1748_v29 = vshll.u32 %v5291_v27, 16  ;;  %v1563_v56 = vrot.slane %v6084_v35, 1 }
  0xde   : > { %3213 = vmatprep.mubr.bf16.mxu1 %v6096_v37  ;;  %v1406_v60 = vsel %vm1274_vm5, %v1401_v6, %v1405_v48  ;;  %v4271_v58 = vcombine.low %v1050_v40, %v5894_v43  ;;  %v1998_v6 = vsel %vm1531_vm10, %v1996_v33, %v1997_v41  ;;  %v1023_v23 = vld [vmem:[#allocation2 + $0x90] sm:$0xf]  ;;  %v6134_v4 = vld [vmem:[#allocation2 + $0x94] sm:$0xf]  ;;  %v5328_v13 = vld [vmem:[#allocation6 + $0x180] sm:$0xff]   ;;  %v2000_v27 = vrot.slane %v5298_v59, 1 }
  0xdf   : > { %3068 = vmatprep.mubr.bf16.mxu0 %v1406_v60  ;;  %v6110_v47 = vld [vmem:[#allocation2 + $0x88] sm:$0xf]  ;;  %v1561_v54 = vsel %vm1531_vm10, %v1559_v53, %v1560_v63  ;;  %v1562_v60 = vrot.slane %v4232_v55, 1  ;;  %v1746_v43 = vor.u32 %v1745_v16, %v1741_v11  ;;  %v1750_v12 = vrot.slane %v1748_v29, 1  ;;  %v1051_v17 = vld [vmem:[#allocation2 + $0x24] sm:$0xe]  ;;  %4925 = vmatpush3.bf16.msra.mxu1 %v5328_v13 }
  0xe0   : > { %3069 = vmatmul.mubr.bf16.gmra.mxu0 %v4200_v31  ;;  %v959_v19 = vld [vmem:[#allocation2 + $0x84] sm:$0xf]  ;;  %v6119_v44 = vld [vmem:[#allocation2 + $0x88] sm:$0xf]  ;;  %v1052_v53 = vld [vmem:[#allocation2 + $0x30] sm:$0xe]  ;;  %v6139_v35 = vcombine.low %v1023_v23, %v6134_v4  ;;  %v4272_v46 = vcombine.low %v1051_v17, %v5921_v14 }
  0xe1   : > { %v4201_v28 = vcombine.low %v959_v19, %v6110_v47  ;;  %v6115_v38 = vld [vmem:[#allocation2 + $0x8c] ss:$0 sps:$4 sm:$0x11]   ;;  %v1021_v31 = vld [vmem:[#allocation2 + $0x84] sm:$0xf]  ;;  %v1999_v19 = vrot.slane %v4271_v58, 1 }
  0xe2   : > { %v1415_v57 = vshll.u32 %v6115_v38, 16  ;;  %v6125_v39 = vcombine.low %v1021_v31, %v6119_v44  ;;  %v996_v24 = vld [vmem:[#allocation2 + $0x84] sm:$0xe]  ;;  %v5302_v63 = vld [vmem:[#allocation2 + $0x2c] ss:$0 sps:$4 sm:$0x11]   ;;  %v1564_v31 = vsel %vm1531_vm10, %v1562_v60, %v1563_v56 }
  0xe3   : > { %v1408_v26 = vshrl.u32 %v4201_v28, 16  ;;  %v1410_v22 = vshll.u32 %v4201_v28, 16  ;;  %v1760_v3 = vshll.u32 %v5298_v59, 16  ;;  %v2001_v33 = vsel %vm1531_vm10, %v1999_v19, %v2000_v27  ;;  %v5305_v41 = vld [vmem:[#allocation6 + $0x230] sm:$0xff]   ;;  %v1025_v40 = vld [vmem:[#allocation2 + $0x9c] sm:$0xf] }
  0xe4   : > { %v1417_v50 = vrot.slane %v1415_v57, 1  ;;  %v1767_v49 = vshll.u32 %v5929_v51, 16  ;;  %v5309_v11 = vld [vmem:[#allocation2 + $0x38] ss:$0 sps:$4 sm:$0x11]   ;;  %v2002_v16 = vrot.slane %v4272_v46, 1 }
  0xe5   : > { %3214 = vmatmul.mubr.bf16.gmra.mxu1 %v1558_v32  ;;  %v1412_v34 = vrot.slane %v1410_v22, 1  ;;  %v1755_v32 = vshll.u32 %v5905_v61, 16  ;;  %v1751_v22 = vsel %vm1274_vm5, %v1746_v43, %v1750_v12  ;;  %v1762_v55 = vrot.slane %v1760_v3, 1  ;;  %v5393_v58 = vld [vmem:[#allocation2 + $0x94] sm:$0xf] }
  0xe6   : > { %3221 = vmatprep.mubr.bf16.mxu1 %v6108_v5  ;;  %v2003_v29 = vrot.slane %v5302_v63, 1  ;;  %v1053_v60 = vld [vmem:[#allocation2 + $0x3c] sm:$0xe]  ;;  %v1769_v56 = vrot.slane %v1767_v49, 1  ;;  %v2006_v12 = vrot.slane %v5309_v11, 1 }
  0xe7   : > { %v1413_v48 = vor.u32 %v1412_v34, %v1408_v26  ;;  %v1753_v26 = vshrl.u32 %v5905_v61, 16  ;;  %v1757_v57 = vrot.slane %v1755_v32, 1  ;;  %v4273_v61 = vcombine.low %v1052_v53, %v5950_v20  ;;  %v5394_v19 = vld [vmem:[#allocation2 + $0x98] ss:$0 sps:$4 sm:$0x11]  }
  0xe8   : > { %v2004_v13 = vsel %vm1531_vm10, %v2002_v16, %v2003_v29  ;;  %v1569_v27 = vrot.slane %v5394_v19, 1  ;;  %v1027_v53 = vld [vmem:[#allocation2 + $0xa8] sm:$0xf]  ;;  %v355_v3 = vld [vmem:[%s5712_s23 + $0x78] sm:$0xf]  ;;  %v1777_v29 = vshrl.u32 %v5956_v30, 16 }
  0xe9   : > { %v1418_v52 = vsel %vm1274_vm5, %v1413_v48, %v1417_v50  ;;  %v997_v50 = vld [vmem:[#allocation2 + $0x90] sm:$0xe]  ;;  %v1758_v14 = vor.u32 %v1757_v57, %v1753_v26  ;;  %v1772_v48 = vshll.u32 %v5302_v63, 16  ;;  %v2005_v23 = vrot.slane %v4273_v61, 1  ;;  %v356_v46 = vld [vmem:[%s5712_s23 + $0x7c] sm:$0xf] }
  0xea   : > { %3076 = vmatprep.mubr.bf16.mxu0 %v1418_v52  ;;  %v4234_v52 = vcombine.low %v997_v50, %v5393_v58  ;;  %v4274_v26 = vcombine.low %v1053_v60, %v5985_v21  ;;  %v623_v49 = vshrl.u32 %v356_v46, 16  ;;  %v5395_v21 = vld [vmem:[#allocation2 + $0xa0] sm:$0xf] }
  0xeb   : > { %3077 = vmatmul.mubr.bf16.gmra.mxu0 %v4201_v28  ;;  %v4233_v28 = vcombine.low %v996_v24, %v6110_v47  ;;  %v1566_v47 = vrot.slane %v6115_v38, 1  ;;  %v5316_v38 = vld [vmem:[#allocation6 + $0x228] sm:$0xff]   ;;  %v5327_v24 = vld [vmem:[#allocation6 + $0x220] sm:$0xff]   ;;  %v1763_v32 = vsel %vm1274_vm5, %v1758_v14, %v1762_v55  ;;  %v1774_v43 = vrot.slane %v1772_v48, 1 }
  0xec   : > { %3310 = vmatprep.mubr.bf16.mxu0 %v1998_v6  ;;  %v1779_v6 = vshll.u32 %v5956_v30, 16  ;;  %v1568_v17 = vrot.slane %v4234_v52, 1  ;;  %v1791_v14 = vshll.u32 %v5990_v25, 16  ;;  %v2007_v16 = vsel %vm1531_vm10, %v2005_v23, %v2006_v12  ;;  %v1029_v23 = vld [vmem:[#allocation2 + $0xb4] sm:$0xf] }
  0xed   : > { %3222 = vmatmul.mubr.bf16.gmra.mxu1 %v1561_v54  ;;  %v1565_v34 = vrot.slane %v4233_v28, 1  ;;  %v6150_v54 = vld [vmem:[#allocation2 + $0xa0] sm:$0xf]  ;;  %v2008_v52 = vrot.slane %v4274_v26, 1  ;;  %v6181_v30 = vld [vmem:[#allocation2 + $0xb8] sm:$0xf] }
  0xee   : > { %3229 = vmatprep.mubr.bf16.mxu1 %v6125_v39  ;;  %v6156_v59 = vcombine.low %v1025_v40, %v6150_v54  ;;  %v272_v28 = vld [vmem:[#allocation2 + $0xc0] sm:$0x1]  ;;  %v626_v40 = vshll.u32 %v356_v46, 16  ;;  %v1781_v58 = vrot.slane %v1779_v6, 1  ;;  %v999_v6 = vld [vmem:[#allocation2 + $0xa8] sm:$0xe]  ;;  %v6191_v36 = vcombine.low %v1029_v23, %v6181_v30 }
  0xef   : > { %v1567_v20 = vsel %vm1531_vm10, %v1565_v34, %v1566_v47  ;;  %v273_v57 = vsel %vm5724_vm3, 0, %v272_v28  ;;  %v5336_v34 = vld [vmem:[#allocation6 + $0x218] sm:$0xff]   ;;  %v1570_v47 = vsel %vm1531_vm10, %v1568_v17, %v1569_v27  ;;  %v1066_v12 = vld [vmem:[#allocation2 + $0x18] sm:$0xf]  ;;  %v5350_v28 = vld [vmem:[#allocation6 + $0x208] sm:$0xff]   ;;  %v1793_v45 = vrot.slane %v1791_v14, 1 }
  0xf0   : > { %274 = vst [vmem:[#allocation2 + $0xc0] sm:$0x1] %v273_v57  ;;  %v1782_v19 = vor.u32 %v1781_v58, %v1777_v29  ;;  %v1054_v26 = vld [vmem:[#allocation2 + $0x48] sm:$0xe]  ;;  %v5397_v57 = vld [vmem:[#allocation2 + $0xac] sm:$0xf] }
  0xf1   : > { %v1000_v14 = vld [vmem:[#allocation2 + $0xb4] sm:$0xe]  ;;  %v5399_v23 = vld [vmem:[#allocation2 + $0xb8] sm:$0xf] }
  0xf3   : > { %3311 = vmatmul.mubr.bf16.vlgmr.msra.gmra.mxu0 %v1751_v22  ;;  %v1784_v22 = vshll.u32 %v5309_v11, 16  ;;  %v6175_v11 = vrot.slane %v623_v49, 7 }
  0xf4   : > { %5047 = vmatpush3.bf16.msra.mxu0 %v6012_v42  ;;  %3318 = vmatprep.mubr.bf16.mxu0 %v2001_v33  ;;  %v1765_v42 = vshrl.u32 %v5929_v51, 16  ;;  %v6162_v51 = vld [vmem:[#allocation2 + $0xac] sm:$0xf]  ;;  %v615_v33 = vshrl.u32 %v355_v3, 16 }
  0xf5   : > { %3230 = vmatmul.mubr.bf16.gmra.mxu1 %v1564_v31  ;;  %5048 = vmatprep.subr.bf16.mxu0 %v5305_v41  ;;  %v998_v31 = vld [vmem:[#allocation2 + $0x9c] sm:$0xe]  ;;  %v6171_v50 = vcombine.low %v1027_v53, %v6162_v51 }
  0xf6   : > { %3237 = vmatprep.mubr.bf16.mxu1 %v6139_v35  ;;  %v1770_v63 = vor.u32 %v1769_v56, %v1765_v42  ;;  %v4235_v61 = vcombine.low %v998_v31, %v5395_v21  ;;  %v617_v48 = vrot.slane %v615_v33, 7  ;;  %v628_v56 = vor.u32 %v626_v40, %v6175_v11  ;;  %v6185_v53 = vld [vmem:[#allocation2 + $0x1c] sm:$0xf]  ;;  %v5320_v21 = vld [vmem:[#allocation2 + $0x50] ss:$0 sps:$4 sm:$0x11]  }
  0xf7   : > { %v786_v27 = vld [vmem:[#allocation2 + $0xc0] sm:$0xf]  ;;  %v6194_v46 = vcombine.low %v1066_v12, %v6185_v53 }
  0xf8   : > { %5049 = vmatpush3.bf16.msra.mxu0 %v5305_v41  ;;  %v618_v41 = vshll.u32 %v355_v3, 16  ;;  %v1775_v55 = vsel %vm1274_vm5, %v1770_v63, %v1774_v43  ;;  %v621_v42 = vrot.slane %v617_v48, 4  ;;  %v1571_v43 = vrot.slane %v4235_v61, 1  ;;  %v5398_v61 = vld [vmem:[#allocation2 + $0xb0] ss:$0 sps:$4 sm:$0x11]  }
  0xf9   : > { %5050 = vmatprep.subr.bf16.mxu0 %v5316_v38  ;;  %v4236_v3 = vcombine.low %v999_v6, %v5397_v57  ;;  %v1575_v40 = vrot.slane %v5398_v61, 1  ;;  %v2207_v29 = vshll.u32 %v6194_v46, 16  ;;  %v4237_v6 = vcombine.low %v1000_v14, %v5399_v23  ;;  %v1056_v14 = vld [vmem:[#allocation2 + $0x60] sm:$0xe] }
  0xfa   : > { %v620_v60 = vor.u32 %v618_v41, %v617_v48  ;;  %v1789_v41 = vshrl.u32 %v5990_v25, 16  ;;  %v2205_v12 = vshrl.u32 %v6194_v46, 16 }
  0xfb   : > { %3319 = vmatmul.mubr.bf16.gmra.mxu0 %v1763_v32  ;;  %v5343_v32 = vld [vmem:[#allocation6 + $0x210] sm:$0xff]   ;;  %v1574_v48 = vrot.slane %v4236_v3, 1  ;;  %v5324_v3 = vld [vmem:[#allocation2 + $0x5c] ss:$0 sps:$4 sm:$0x11]  }
  0xfc   : > { %3326 = vmatprep.mubr.bf16.mxu0 %v2004_v13  ;;  %5051 = vmatpush3.bf16.msra.mxu0 %v5316_v38  ;;  %v1786_v38 = vrot.slane %v1784_v22, 1  ;;  %v5396_v13 = vld [vmem:[#allocation2 + $0xa4] ss:$0 sps:$4 sm:$0x11]   ;;  %v787_v31 = vsel %vm5758_vm9, %v620_v60, %v786_v27  ;;  %v1794_v58 = vor.u32 %v1793_v45, %v1789_v41  ;;  %v1577_v41 = vrot.slane %v4237_v6, 1 }
  0xfd   : > { %3238 = vmatmul.mubr.bf16.gmra.mxu1 %v1567_v20  ;;  %5052 = vmatprep.subr.bf16.mxu0 %v5327_v24  ;;  %v5313_v20 = vld [vmem:[#allocation2 + $0x44] ss:$0 sps:$4 sm:$0x11]   ;;  %v1572_v17 = vrot.slane %v5396_v13, 1  ;;  %788 = vst [vmem:[#allocation2 + $0xc0] sm:$0xf] %v787_v31  ;;  %v1576_v13 = vsel %vm1531_vm10, %v1574_v48, %v1575_v40 }
  0xfe   : > { %3245 = vmatprep.mubr.bf16.mxu1 %v6156_v59  ;;  %v2009_v63 = vrot.slane %v5313_v20, 1  ;;  %v1787_v33 = vsel %vm1274_vm5, %v1782_v19, %v1786_v38  ;;  %v1796_v49 = vshll.u32 %v5313_v20, 16  ;;  %v1068_v38 = vld [vmem:[#allocation2 + $0x24] sm:$0xf]  ;;  %v6207_v20 = vld [vmem:[#allocation2 + $0x28] sm:$0xf] }
  0xff   : > { %v1573_v22 = vsel %vm1531_vm10, %v1571_v43, %v1572_v17  ;;  %v1055_v43 = vld [vmem:[#allocation2 + $0x54] sm:$0xe]  ;;  %v2209_v19 = vrot.slane %v2207_v29, 1  ;;  %v6216_v27 = vcombine.low %v1068_v38, %v6207_v20  ;;  %v1801_v31 = vshrl.u32 %v6020_v9, 16 }
 0x100   : > { %5053 = vmatpush3.bf16.msra.mxu0 %v5327_v24  ;;  %v629_v24 = vsel %vm5752_vm8, %v621_v42, %v628_v56  ;;  %v2012_v42 = vrot.slane %v5320_v21, 1  ;;  %v1808_v56 = vshll.u32 %v5320_v21, 16  ;;  %v5400_v45 = vld [vmem:[#allocation2 + $0xbc] ss:$0 sps:$4 sm:$0x11]   ;;  %v2015_v48 = vrot.slane %v5324_v3, 1 }
 0x101   : > { %5054 = vmatprep.subr.bf16.mxu0 %v5336_v34  ;;  %789 = vst [vmem:[#allocation2 + $0xc4] sm:$0xf] %v629_v24  ;;  %v2219_v21 = vshll.u32 %v6216_v27, 16  ;;  %v6227_v40 = vld [vmem:[#allocation2 + $0x34] sm:$0xf] }
 0x102   : > { %v5331_v6 = vld [vmem:[#allocation2 + $0x68] ss:$0 sps:$4 sm:$0x11]  }
 0x103   : > { %3327 = vmatmul.mubr.bf16.gmra.mxu0 %v1775_v55  ;;  %v5357_v55 = vld [vmem:[#allocation6 + $0x200] sm:$0xff]  }
 0x104   : > { %3334 = vmatprep.mubr.bf16.mxu0 %v2007_v16  ;;  %5055 = vmatpush3.bf16.msra.mxu0 %v5336_v34  ;;  %v4275_v34 = vcombine.low %v1054_v26, %v6016_v7  ;;  %v6201_v16 = vld [vmem:[#allocation2 + $0x20] ss:$0 sps:$4 sm:$0x11]   ;;  %v1803_v7 = vshll.u32 %v6020_v9, 16  ;;  %v1815_v26 = vshll.u32 %v6048_v2, 16 }
 0x105   : > { %3246 = vmatmul.mubr.bf16.gmra.mxu1 %v1570_v47  ;;  %5056 = vmatprep.subr.bf16.mxu0 %v5343_v32  ;;  %v2010_v47 = vsel %vm1531_vm10, %v2008_v52, %v2009_v63  ;;  %v1798_v52 = vrot.slane %v1796_v49, 1  ;;  %v2212_v24 = vshll.u32 %v6201_v16, 16  ;;  %v1578_v49 = vrot.slane %v5400_v45, 1  ;;  %v6224_v9 = vld [vmem:[#allocation2 + $0x2c] ss:$0 sps:$4 sm:$0x11]  }
 0x106   : > { %3253 = vmatprep.mubr.bf16.mxu1 %v6171_v50  ;;  %v2011_v60 = vrot.slane %v4275_v34, 1  ;;  %v2224_v38 = vshll.u32 %v6224_v9, 16 }
 0x107   : > { %v1799_v63 = vsel %vm1274_vm5, %v1794_v58, %v1798_v52  ;;  %v2214_v34 = vrot.slane %v2212_v24, 1  ;;  %v1579_v29 = vsel %vm1531_vm10, %v1577_v41, %v1578_v49  ;;  %v2221_v52 = vrot.slane %v2219_v21, 1 }
 0x108   : > { %5057 = vmatpush3.bf16.msra.mxu0 %v5343_v32  ;;  %v6203_v25 = vld [vmem:[#allocation2 + $0xc4] sm:$0xf]  ;;  %v1031_v32 = vld [vmem:[#allocation2 + $0xc0] sm:$0xf]  ;;  %v2013_v57 = vsel %vm1531_vm10, %v2011_v60, %v2012_v42  ;;  %v1827_v24 = vshll.u32 %v6076_v8, 16  ;;  %v1825_v41 = vshrl.u32 %v6076_v8, 16 }
 0x109   : > { %5058 = vmatprep.subr.bf16.mxu0 %v5350_v28  ;;  %v6211_v17 = vcombine.low %v1031_v32, %v6203_v25  ;;  %v1817_v32 = vrot.slane %v1815_v26, 1  ;;  %v1832_v49 = vshll.u32 %v5331_v6, 16 }
 0x10a   : > { %v1829_v45 = vrot.slane %v1827_v24, 1 }
 0x10b   : > { %3335 = vmatmul.mubr.bf16.gmra.mxu0 %v1787_v33  ;;  %v1810_v33 = vrot.slane %v1808_v56, 1  ;;  %v1813_v56 = vshrl.u32 %v6048_v2, 16  ;;  %v6244_v2 = vld [vmem:[#allocation2 + $0x40] sm:$0xf] }
 0x10c   : > { %3342 = vmatprep.mubr.bf16.mxu0 %v2010_v47  ;;  %5059 = vmatpush3.bf16.msra.mxu0 %v5350_v28  ;;  %v1805_v28 = vrot.slane %v1803_v7, 1  ;;  %v2210_v47 = vor.u32 %v2209_v19, %v2205_v12  ;;  %v2217_v7 = vshrl.u32 %v6216_v27, 16  ;;  %v6241_v12 = vld [vmem:[#allocation2 + $0x38] ss:$0 sps:$4 sm:$0x11]  }
 0x10d   : > { %3254 = vmatmul.mubr.bf16.gmra.mxu1 %v1573_v22  ;;  %5060 = vmatprep.subr.bf16.mxu0 %v5357_v55  ;;  %v4276_v22 = vcombine.low %v1055_v43, %v6045_v62  ;;  %v1070_v62 = vld [vmem:[#allocation2 + $0x30] sm:$0xf]  ;;  %v1820_v43 = vshll.u32 %v5324_v3, 16  ;;  %v1818_v26 = vor.u32 %v1817_v32, %v1813_v56  ;;  %v2018_v3 = vrot.slane %v5331_v6, 1  ;;  %v6263_v32 = vld [vmem:[#allocation2 + $0x4c] sm:$0xf] }
 0x10e   : > { %3261 = vmatprep.mubr.bf16.mxu1 %v6191_v36  ;;  %v1806_v61 = vor.u32 %v1805_v28, %v1801_v31  ;;  %v2215_v58 = vsel %vm1274_vm5, %v2210_v47, %v2214_v34  ;;  %v6234_v60 = vcombine.low %v1070_v62, %v6227_v40  ;;  %v2222_v19 = vor.u32 %v2221_v52, %v2217_v7  ;;  %v1072_v28 = vld [vmem:[#allocation2 + $0x3c] sm:$0xf]  ;;  %v1058_v47 = vld [vmem:[#allocation2 + $0x78] sm:$0xe]  ;;  %v322_v6 = vld [vmem:[#allocation2 + $0xc8] sm:$0x1] }
 0x10f   : > { %v6248_v34 = vcombine.low %v1072_v28, %v6244_v2  ;;  %v5333_v7 = vld [vmem:[#allocation2 + $0x74] ss:$0 sps:$4 sm:$0x11]   ;;  %v4279_v24 = vcombine.low %v1058_v47, %v6104_v0  ;;  %v1837_v28 = vshrl.u32 %v6096_v37, 16 }
 0x110   : > { %5061 = vmatpush3.bf16.msra.mxu0 %v5357_v55  ;;  %v2014_v55 = vrot.slane %v4276_v22, 1  ;;  %v1811_v42 = vsel %vm1274_vm5, %v1806_v61, %v1810_v33  ;;  %v2231_v31 = vshll.u32 %v6234_v60, 16  ;;  %v1057_v22 = vld [vmem:[#allocation2 + $0x6c] sm:$0xe]  ;;  %v2229_v61 = vshrl.u32 %v6234_v60, 16 }
 0x111   : > { %v2243_v56 = vshll.u32 %v6248_v34, 16  ;;  %v2023_v18 = vrot.slane %v4279_v24, 1 }
 0x112   : > { %v2016_v23 = vsel %vm1531_vm10, %v2014_v55, %v2015_v48  ;;  %v2233_v62 = vrot.slane %v2231_v31, 1  ;;  %v2236_v55 = vshll.u32 %v6241_v12, 16  ;;  %v6266_v31 = vld [vmem:[#allocation2 + $0x80] ss:$0 sps:$4 sm:$0x11]  }
 0x113   : > { %3343 = vmatmul.mubr.bf16.gmra.mxu0 %v1799_v63  ;;  %v2226_v63 = vrot.slane %v2224_v38, 1  ;;  %v6260_v38 = vld [vmem:[#allocation2 + $0x44] ss:$0 sps:$4 sm:$0x11]   ;;  %v2245_v0 = vrot.slane %v2243_v56, 1 }
 0x114   : > { %3350 = vmatprep.mubr.bf16.mxu0 %v2013_v57 }
 0x115   : > { %3262 = vmatmul.mubr.bf16.gmra.mxu1 %v1576_v13  ;;  %v4277_v13 = vcombine.low %v1056_v14, %v6073_v1  ;;  %v1822_v1 = vrot.slane %v1820_v43, 1  ;;  %v2227_v21 = vsel %vm1274_vm5, %v2222_v19, %v2226_v63  ;;  %v4278_v14 = vcombine.low %v1057_v22, %v6087_v15 }
 0x116   : > { %3269 = vmatprep.mubr.bf16.mxu1 %v6211_v17  ;;  %v1830_v15 = vor.u32 %v1829_v45, %v1825_v41  ;;  %v1834_v43 = vrot.slane %v1832_v49, 1  ;;  %v2021_v63 = vrot.slane %v5333_v7, 1  ;;  %v323_v22 = vsel %vm5737_vm6, 0, %v322_v6  ;;  %v1059_v41 = vld [vmem:[#allocation2 + $0x84] sm:$0xe] }
 0x117   : > { %v2017_v57 = vrot.slane %v4277_v13, 1  ;;  %v2234_v13 = vor.u32 %v2233_v62, %v2229_v61  ;;  %v2020_v19 = vrot.slane %v4278_v14, 1  ;;  %324 = vst [vmem:[#allocation2 + $0xc8] sm:$0x1] %v323_v22  ;;  %v1863_v45 = vshll.u32 %v6125_v39, 16 }
 0x118   : > { %v1835_v49 = vsel %vm1274_vm5, %v1830_v15, %v1834_v43  ;;  %v2024_v61 = vrot.slane %v6266_v31, 1  ;;  %v1849_v62 = vshrl.u32 %v6108_v5, 16  ;;  %v6285_v14 = vld [vmem:[#allocation2 + $0x50] ss:$0 sps:$4 sm:$0x11]   ;;  %v2461_v6 = vrot.slane %v6201_v16, 1 }
 0x119   : > { %v2019_v52 = vsel %vm1531_vm10, %v2017_v57, %v2018_v3  ;;  %v1851_v57 = vshll.u32 %v6108_v5, 16  ;;  %v2241_v3 = vshrl.u32 %v6248_v34, 16  ;;  %v1115_v15 = vld [vmem:[#allocation2 + $0x24] sm:$0xe]  ;;  %v1856_v16 = vshll.u32 %v6266_v31, 16 }
 0x11a   : > { %v4319_v24 = vcombine.low %v1115_v15, %v6207_v20  ;;  %v2467_v31 = vrot.slane %v6241_v12, 1 }
 0x11b   : > { %3351 = vmatmul.mubr.bf16.gmra.mxu0 %v1811_v42  ;;  %v1074_v42 = vld [vmem:[#allocation2 + $0x48] sm:$0xf] }
 0x11c   : > { %3358 = vmatprep.mubr.bf16.mxu0 %v2016_v23  ;;  %v2238_v23 = vrot.slane %v2236_v55, 1  ;;  %v2022_v55 = vsel %vm1531_vm10, %v2020_v19, %v2021_v63  ;;  %v4280_v19 = vcombine.low %v1059_v41, %v6119_v44  ;;  %v1076_v63 = vld [vmem:[#allocation2 + $0x54] sm:$0xf]  ;;  %v1117_v41 = vld [vmem:[#allocation2 + $0x3c] sm:$0xe] }
 0x11d   : > { %3270 = vmatmul.mubr.bf16.gmra.mxu1 %v1579_v29  ;;  %v1823_v29 = vsel %vm1274_vm5, %v1818_v26, %v1822_v1  ;;  %v6270_v1 = vcombine.low %v1074_v42, %v6263_v32  ;;  %v2246_v42 = vor.u32 %v2245_v0, %v2241_v3  ;;  %v2463_v0 = vrot.slane %v4319_v24, 1 }
 0x11e   : > { %3471 = vmatprep.mubr.bf16.mxu1 %v2215_v58  ;;  %v1839_v58 = vshll.u32 %v6096_v37, 16  ;;  %v630_v37 = vrot.slane %v6175_v11, 4  ;;  %v2239_v47 = vsel %vm1274_vm5, %v2234_v13, %v2238_v23 }
 0x11f   : > { %v2253_v43 = vshrl.u32 %v6270_v1, 16 }
 0x120   : > { %v1841_v26 = vrot.slane %v1839_v58, 1  ;;  %v2464_v58 = vrot.slane %v6224_v9, 1 }
 0x123   : > { %3359 = vmatmul.mubr.bf16.gmra.mxu0 %v1823_v29  ;;  %v2255_v29 = vshll.u32 %v6270_v1, 16 }
 0x124   : > { %3366 = vmatprep.mubr.bf16.mxu0 %v2019_v52  ;;  %v1853_v52 = vrot.slane %v1851_v57, 1  ;;  %v790_v57 = vld [vmem:[#allocation2 + $0xc8] sm:$0x1] }
 0x125   : > { %3472 = vmatmul.mubr.bf16.vlgmr.msra.gmra.mxu1 %v6194_v46  ;;  %v1844_v46 = vshll.u32 %v5333_v7, 16  ;;  %v1114_v7 = vld [vmem:[#allocation2 + $0x18] sm:$0xe]  ;;  %v791_v44 = vsel %vm5724_vm3, %v630_v37, %v790_v57  ;;  %v4321_v37 = vcombine.low %v1117_v41, %v6244_v2 }
 0x126   : > { %3479 = vmatprep.mubr.bf16.mxu1 %v2227_v21  ;;  %792 = vst [vmem:[#allocation2 + $0xc8] sm:$0x1] %v791_v44  ;;  %v1854_v2 = vor.u32 %v1853_v52, %v1849_v62 }
 0x127   : > { %v1846_v21 = vrot.slane %v1844_v46, 1  ;;  %v1077_v46 = vld [vmem:[#allocation2 + $0x58] sm:$0xf] }
 0x12b   : > { %3367 = vmatmul.mubr.bf16.gmra.mxu0 %v1835_v49 }
 0x12c   : > { %3374 = vmatprep.mubr.bf16.mxu0 %v2022_v55  ;;  %v6306_v55 = vcombine.low %v1076_v63, %v1077_v46  ;;  %v6327_v63 = vld [vmem:[#allocation2 + $0x64] sm:$0xf] }
 0x12d   : > { %3480 = vmatmul.mubr.bf16.gmra.mxu1 %v6216_v27  ;;  %v4318_v27 = vcombine.low %v1114_v7, %v6185_v53  ;;  %v2470_v7 = vrot.slane %v6260_v38, 1 }
 0x12e   : > { %v4590_v33 = vpop.f32.mrf.mxu0  ;;  %3487 = vmatprep.mubr.bf16.mxu1 %v2239_v47 }
 0x12f   : > { %v2460_v3 = vrot.slane %v4318_v27, 1  ;;  %v1119_v27 = vld [vmem:[#allocation2 + $0x54] sm:$0xe] }
 0x130   : > { %v4591_v48 = vpop.f32.mrf.mxu0  ;;  %v4662_v11 = vpop.f32.mrf.mxu1 }
 0x131   : > { %v6255_v8 = vadd.f32 %v4591_v48, %v4590_v33  ;;  %v2248_v33 = vshll.u32 %v6260_v38, 16  ;;  %v1842_v48 = vor.u32 %v1841_v26, %v1837_v28  ;;  %v2257_v28 = vrot.slane %v2255_v29, 1  ;;  %v5353_v38 = vld [vmem:[#allocation2 + $0x5c] ss:$0 sps:$4 sm:$0x11]  }
 0x132   : > { %v4663_v13 = vpop.f32.mrf.mxu1  ;;  %v6290_v23 = vpop.f32.mrf.mxu0  ;;  %v2260_v26 = vshll.u32 %v6285_v14, 16  ;;  %v6309_v29 = vsel %vm1531_vm10, %v2460_v3, %v2461_v6  ;;  %v2469_v6 = vrot.slane %v4321_v37, 1  ;;  %v2476_v57 = vrot.slane %v5353_v38, 1  ;;  %v1060_v3 = vld [vmem:[#allocation2 + $0x90] sm:$0xe] }
 0x133   : > { %v2250_v56 = vrot.slane %v2248_v33, 1  ;;  %v6296_v9 = vadd.f32 %v4663_v13, %v4662_v11  ;;  %v1847_v53 = vsel %vm1274_vm5, %v1842_v48, %v1846_v21  ;;  %v1116_v33 = vld [vmem:[#allocation2 + $0x30] sm:$0xe]  ;;  %v6312_v21 = vsel %vm1531_vm10, %v2463_v0, %v2464_v58  ;;  %v5340_v48 = vld [vmem:[#allocation2 + $0x8c] ss:$0 sps:$4 sm:$0x11]  }
 0x134   : > { %v4665_v22 = vpop.f32.mrf.mxu1  ;;  %v6304_v49 = vpop.f32.mrf.mxu0  ;;  %v4320_v10 = vcombine.low %v1116_v33, %v6227_v40  ;;  %v2258_v15 = vor.u32 %v2257_v28, %v2253_v43  ;;  %v2262_v13 = vrot.slane %v2260_v26, 1  ;;  %v1118_v58 = vld [vmem:[#allocation2 + $0x48] sm:$0xe]  ;;  %v2473_v40 = vrot.slane %v6285_v14, 1  ;;  %3375 = vmatmul.mubr.bf16.gmra.mxu0 %v1847_v53 }
 0x135   : > { %v2251_v20 = vsel %vm1274_vm5, %v2246_v42, %v2250_v56  ;;  %v2025_v42 = vsel %vm1531_vm10, %v2023_v18, %v2024_v61  ;;  %v2026_v56 = vrot.slane %v4280_v19, 1  ;;  %3488 = vmatmul.mubr.bf16.gmra.mxu1 %v6234_v60  ;;  %v4322_v24 = vcombine.low %v1118_v58, %v6263_v32  ;;  %v1078_v19 = vld [vmem:[#allocation2 + $0x60] sm:$0xf] }
 0x136   : > { %v4666_v47 = vpop.f32.mrf.mxu1  ;;  %3495 = vmatprep.mubr.bf16.mxu1 %v2251_v20  ;;  %v2466_v12 = vrot.slane %v4320_v10, 1  ;;  %v2267_v18 = vshll.u32 %v6306_v55, 16  ;;  %v4323_v60 = vcombine.low %v1119_v27, %v1077_v46  ;;  %3382 = vmatprep.mubr.bf16.mxu0 %v2025_v42  ;;  %v1858_v43 = vrot.slane %v1856_v16, 1 }
 0x137   : > { %v6315_v11 = vadd.f32 %v4666_v47, %v4665_v22  ;;  %v6333_v32 = vsel %vm1531_vm10, %v2469_v6, %v2470_v7  ;;  %v2472_v14 = vrot.slane %v4322_v24, 1  ;;  %v2027_v26 = vrot.slane %v5340_v48, 1  ;;  %v6360_v24 = vld [vmem:[#allocation2 + $0x68] ss:$0 sps:$4 sm:$0x11]  }
 0x138   : > { %v6330_v28 = vsel %vm1531_vm10, %v2466_v12, %v2467_v31  ;;  %v1868_v5 = vshll.u32 %v5340_v48, 16  ;;  %v2475_v22 = vrot.slane %v4323_v60, 1  ;;  %v2263_v46 = vsel %vm1274_vm5, %v2258_v15, %v2262_v13  ;;  %v5344_v15 = vld [vmem:[#allocation2 + $0x98] ss:$0 sps:$4 sm:$0x11]  }
 0x139   : > { %v2265_v0 = vshrl.u32 %v6306_v55, 16  ;;  %v6340_v16 = vsel %vm1531_vm10, %v2472_v14, %v2473_v40  ;;  %v2269_v20 = vrot.slane %v2267_v18, 1  ;;  %v2272_v44 = vshll.u32 %v5353_v38, 16 }
 0x13a   : > { %v6343_v41 = vcombine.low %v1078_v19, %v6327_v63  ;;  %v6346_v47 = vsel %vm1531_vm10, %v2475_v22, %v2476_v57  ;;  %v1859_v31 = vsel %vm1274_vm5, %v1854_v2, %v1858_v43  ;;  %v1861_v48 = vshrl.u32 %v6125_v39, 16  ;;  %v6365_v2 = vld [vmem:[#allocation2 + $0x70] sm:$0xf] }
 0x13b   : > { %v1865_v10 = vrot.slane %v1863_v45, 1  ;;  %v4281_v7 = vcombine.low %v1060_v3, %v6134_v4  ;;  %v2028_v42 = vsel %vm1531_vm10, %v2026_v56, %v2027_v26  ;;  %v1875_v58 = vshll.u32 %v6139_v35, 16 }
 0x13c   : > { %v4668_v62 = vpop.f32.mrf.mxu1  ;;  %3383 = vmatmul.mubr.bf16.gmra.mxu0 %v1859_v31  ;;  %v1870_v12 = vrot.slane %v1868_v5, 1  ;;  %v2270_v6 = vor.u32 %v2269_v20, %v2265_v0  ;;  %v2274_v39 = vrot.slane %v2272_v44, 1  ;;  %v2279_v4 = vshll.u32 %v6343_v41, 16  ;;  %v5347_v0 = vld [vmem:[#allocation2 + $0xa4] ss:$0 sps:$4 sm:$0x11]  }
 0x13d   : > { %v4596_v61 = vpop.f32.mrf.mxu0  ;;  %3496 = vmatmul.mubr.bf16.gmra.mxu1 %v6248_v34  ;;  %3390 = vmatprep.mubr.bf16.mxu0 %v2028_v42  ;;  %v1866_v56 = vor.u32 %v1865_v10, %v1861_v48  ;;  %v1080_v34 = vld [vmem:[#allocation2 + $0x6c] sm:$0xf]  ;;  %v2029_v38 = vrot.slane %v4281_v7, 1  ;;  %v2030_v18 = vrot.slane %v5344_v15, 1  ;;  %v1880_v60 = vshll.u32 %v5344_v15, 16 }
 0x13e   : > { %v4669_v33 = vpop.f32.mrf.mxu1  ;;  %3503 = vmatprep.mubr.bf16.mxu1 %v2263_v46  ;;  %v2277_v19 = vshrl.u32 %v6343_v41, 16  ;;  %v2275_v14 = vsel %vm1274_vm5, %v2270_v6, %v2274_v39  ;;  %v2281_v26 = vrot.slane %v2279_v4, 1  ;;  %v2284_v5 = vshll.u32 %v6360_v24, 16  ;;  %v6381_v10 = vld [vmem:[#allocation2 + $0x74] ss:$0 sps:$4 sm:$0x11]  }
 0x13f   : > { %v4597_v52 = vpop.f32.mrf.mxu0  ;;  %v6352_v37 = vadd.f32 %v4669_v33, %v4668_v62  ;;  %v6373_v62 = vcombine.low %v1080_v34, %v6365_v2  ;;  %v1873_v22 = vshrl.u32 %v6139_v35, 16  ;;  %v1877_v57 = vrot.slane %v1875_v58, 1  ;;  %v1082_v42 = vld [vmem:[#allocation2 + $0x78] sm:$0xf]  ;;  %v6384_v15 = vld [vmem:[#allocation2 + $0x7c] sm:$0xf] }
 0x140   : > { %v6337_v53 = vadd.f32 %v4597_v52, %v4596_v61  ;;  %v4671_v13 = vpop.f32.mrf.mxu1  ;;  %v1061_v61 = vld [vmem:[#allocation2 + $0x9c] sm:$0xe]  ;;  %v1871_v52 = vsel %vm1274_vm5, %v1866_v56, %v1870_v12  ;;  %v2031_v46 = vsel %vm1531_vm10, %v2029_v38, %v2030_v18  ;;  %v1887_v20 = vshll.u32 %v6156_v59, 16  ;;  %v1062_v12 = vld [vmem:[#allocation2 + $0xa8] sm:$0xe] }
 0x141   : > { %v6358_v27 = vpop.f32.mrf.mxu0  ;;  %v4282_v3 = vcombine.low %v1061_v61, %v6150_v54  ;;  %v1882_v33 = vrot.slane %v1880_v60, 1  ;;  %v2282_v31 = vor.u32 %v2281_v26, %v2277_v19  ;;  %v2286_v48 = vrot.slane %v2284_v5, 1  ;;  %v5351_v5 = vld [vmem:[#allocation2 + $0xb0] ss:$0 sps:$4 sm:$0x11]  }
 0x142   : > { %v4672_v45 = vpop.f32.mrf.mxu1  ;;  %v2291_v35 = vshll.u32 %v6373_v62, 16  ;;  %v1878_v7 = vor.u32 %v1877_v57, %v1873_v22  ;;  %v2289_v39 = vshrl.u32 %v6373_v62, 16  ;;  %v2296_v56 = vshll.u32 %v6381_v10, 16 }
 0x143   : > { %v6363_v40 = vadd.f32 %v4672_v45, %v4671_v13  ;;  %v6367_v43 = vpop.f32.mrf.mxu0  ;;  %v2032_v13 = vrot.slane %v4282_v3, 1  ;;  %v2287_v45 = vsel %vm1274_vm5, %v2282_v31, %v2286_v48  ;;  %v6392_v34 = vcombine.low %v1082_v42, %v6384_v15  ;;  %v6407_v31 = vld [vmem:[#allocation2 + $0x88] sm:$0xf] }
 0x144   : > { %3391 = vmatmul.mubr.bf16.gmra.mxu0 %v1871_v52  ;;  %v2293_v4 = vrot.slane %v2291_v35, 1  ;;  %v1883_v38 = vsel %vm1274_vm5, %v1878_v7, %v1882_v33  ;;  %v1885_v18 = vshrl.u32 %v6156_v59, 16  ;;  %v1889_v61 = vrot.slane %v1887_v20, 1 }
 0x145   : > { %3504 = vmatmul.mubr.bf16.gmra.mxu1 %v6270_v1  ;;  %3398 = vmatprep.mubr.bf16.mxu0 %v2031_v46  ;;  %v2033_v1 = vrot.slane %v5347_v0, 1  ;;  %v1892_v60 = vshll.u32 %v5347_v0, 16  ;;  %v2298_v46 = vrot.slane %v2296_v56, 1  ;;  %v2303_v59 = vshll.u32 %v6392_v34, 16 }
 0x146   : > { %3511 = vmatprep.mubr.bf16.mxu1 %v2275_v14  ;;  %v4283_v14 = vcombine.low %v1062_v12, %v6162_v51  ;;  %v2294_v3 = vor.u32 %v2293_v4, %v2289_v39  ;;  %v1899_v0 = vshll.u32 %v6171_v50, 16  ;;  %v1890_v51 = vor.u32 %v1889_v61, %v1885_v18 }
 0x147   : > { %v2034_v26 = vsel %vm1531_vm10, %v2032_v13, %v2033_v1  ;;  %v1894_v20 = vrot.slane %v1892_v60, 1  ;;  %v2036_v35 = vrot.slane %v5351_v5, 1  ;;  %v1897_v42 = vshrl.u32 %v6171_v50, 16  ;;  %v5354_v60 = vld [vmem:[#allocation2 + $0xbc] ss:$0 sps:$4 sm:$0x11]  }
 0x148   : > { %v4602_v44 = vpop.f32.mrf.mxu0  ;;  %v2035_v48 = vrot.slane %v4283_v14, 1  ;;  %v2301_v13 = vshrl.u32 %v6392_v34, 16  ;;  %v2299_v12 = vsel %vm1274_vm5, %v2294_v3, %v2298_v46  ;;  %v1901_v56 = vrot.slane %v1899_v0, 1  ;;  %v1086_v0 = vld [vmem:[#allocation2 + $0x90] sm:$0xf] }
 0x149   : > { %v1895_v4 = vsel %vm1274_vm5, %v1890_v51, %v1894_v20  ;;  %v6428_v51 = vld [vmem:[#allocation2 + $0x94] sm:$0xf]  ;;  %v2039_v20 = vrot.slane %v5354_v60, 1 }
 0x14a   : > { %v4603_v54 = vpop.f32.mrf.mxu0  ;;  %v2037_v50 = vsel %vm1531_vm10, %v2035_v48, %v2036_v35  ;;  %v1902_v46 = vor.u32 %v1901_v56, %v1897_v42  ;;  %v1064_v48 = vld [vmem:[#allocation2 + $0xc0] sm:$0xe]  ;;  %v1909_v35 = vshrl.u32 %v6191_v36, 16  ;;  %v1916_v56 = vshll.u32 %v5354_v60, 16 }
 0x14b   : > { %v6386_v58 = vadd.f32 %v4603_v54, %v4602_v44  ;;  %v6401_v44 = vld [vmem:[#allocation2 + $0x80] ss:$0 sps:$4 sm:$0x11]   ;;  %v1063_v54 = vld [vmem:[#allocation2 + $0xb4] sm:$0xe] }
 0x14c   : > { %v4605_v6 = vpop.f32.mrf.mxu0  ;;  %3399 = vmatmul.mubr.bf16.gmra.mxu0 %v1883_v38  ;;  %v2308_v39 = vshll.u32 %v6401_v44, 16  ;;  %v1904_v38 = vshll.u32 %v5351_v5, 16  ;;  %v4284_v61 = vcombine.low %v1063_v54, %v6181_v30  ;;  %v1911_v5 = vshll.u32 %v6191_v36, 16 }
 0x14d   : > { %3512 = vmatmul.mubr.bf16.gmra.mxu1 %v6306_v55  ;;  %3406 = vmatprep.mubr.bf16.mxu0 %v2034_v26  ;;  %v1084_v55 = vld [vmem:[#allocation2 + $0x84] sm:$0xf]  ;;  %v4285_v36 = vcombine.low %v1064_v48, %v6203_v25 }
 0x14e   : > { %v4606_v19 = vpop.f32.mrf.mxu0  ;;  %3519 = vmatprep.mubr.bf16.mxu1 %v2287_v45  ;;  %v6414_v45 = vcombine.low %v1084_v55, %v6407_v31  ;;  %v1906_v30 = vrot.slane %v1904_v38, 1 }
 0x14f   : > { %v4674_v52 = vpop.f32.mrf.mxu1  ;;  %v6399_v22 = vadd.f32 %v4606_v19, %v4605_v6  ;;  %v2305_v6 = vrot.slane %v2303_v59, 1 }
 0x150   : > { %v2315_v3 = vshll.u32 %v6414_v45, 16  ;;  %v2313_v54 = vshrl.u32 %v6414_v45, 16 }
 0x151   : > { %v4675_v57 = vpop.f32.mrf.mxu1  ;;  %v2306_v26 = vor.u32 %v2305_v6, %v2301_v13  ;;  %v6435_v6 = vcombine.low %v1086_v0, %v6428_v51 }
 0x152   : > { %v6405_v33 = vadd.f32 %v4675_v57, %v4674_v52  ;;  %v2310_v52 = vrot.slane %v2308_v39, 1  ;;  %v6422_v57 = vld [vmem:[#allocation2 + $0x8c] ss:$0 sps:$4 sm:$0x11]   ;;  %v1907_v39 = vsel %vm1274_vm5, %v1902_v46, %v1906_v30  ;;  %v1923_v46 = vshll.u32 %v6211_v17, 16 }
 0x153   : > { %v4677_v7 = vpop.f32.mrf.mxu1  ;;  %v2320_v42 = vshll.u32 %v6422_v57, 16  ;;  %v2327_v60 = vshll.u32 %v6435_v6, 16  ;;  %v1918_v30 = vrot.slane %v1916_v56, 1 }
 0x154   : > { %3407 = vmatmul.mubr.bf16.gmra.mxu0 %v1895_v4  ;;  %v1913_v4 = vrot.slane %v1911_v5, 1 }
 0x155   : > { %v4678_v1 = vpop.f32.mrf.mxu1  ;;  %3520 = vmatmul.mubr.bf16.gmra.mxu1 %v6343_v41  ;;  %3414 = vmatprep.mubr.bf16.mxu0 %v2037_v50  ;;  %v2038_v41 = vrot.slane %v4284_v61, 1  ;;  %v2322_v5 = vrot.slane %v2320_v42, 1 }
 0x156   : > { %v6417_v18 = vadd.f32 %v4678_v1, %v4677_v7  ;;  %3527 = vmatprep.mubr.bf16.mxu1 %v2299_v12  ;;  %v2311_v1 = vsel %vm1274_vm5, %v2306_v26, %v2310_v52  ;;  %v2317_v12 = vrot.slane %v2315_v3, 1  ;;  %v6445_v52 = vld [vmem:[#allocation2 + $0x98] ss:$0 sps:$4 sm:$0x11]   ;;  %v1914_v25 = vor.u32 %v1913_v4, %v1909_v35 }
 0x157   : > { %v2040_v50 = vsel %vm1531_vm10, %v2038_v41, %v2039_v20  ;;  %v1088_v41 = vld [vmem:[#allocation2 + $0x9c] sm:$0xf]  ;;  %v6449_v20 = vld [vmem:[#allocation2 + $0xa0] sm:$0xf]  ;;  %v1925_v4 = vrot.slane %v1923_v46, 1 }
 0x158   : > { %v4608_v19 = vpop.f32.mrf.mxu0  ;;  %v2318_v3 = vor.u32 %v2317_v12, %v2313_v54  ;;  %v2329_v12 = vrot.slane %v2327_v60, 1  ;;  %v6457_v42 = vcombine.low %v1088_v41, %v6449_v20  ;;  %v1919_v35 = vsel %vm1274_vm5, %v1914_v25, %v1918_v30  ;;  %v6469_v46 = vld [vmem:[#allocation2 + $0xac] sm:$0xf] }
 0x15a   : > { %v4609_v14 = vpop.f32.mrf.mxu0  ;;  %v2323_v54 = vsel %vm1274_vm5, %v2318_v3, %v2322_v5  ;;  %v6463_v3 = vld [vmem:[#allocation2 + $0xa4] ss:$0 sps:$4 sm:$0x11]  }
 0x15b   : > { %v6426_v59 = vadd.f32 %v4609_v14, %v4608_v19  ;;  %v5358_v19 = vld [vmem:[#allocation2 + $0xc8] ss:$0 sps:$4 sm:$0x11]  }
 0x15c   : > { %v4611_v55 = vpop.f32.mrf.mxu0  ;;  %3415 = vmatmul.mubr.bf16.gmra.mxu0 %v1907_v39  ;;  %v1921_v39 = vshrl.u32 %v6211_v17, 16  ;;  %v1928_v56 = vshll.u32 %v5358_v19, 16  ;;  %v2339_v17 = vshll.u32 %v6457_v42, 16 }
 0x15d   : > { %v4680_v7 = vpop.f32.mrf.mxu1  ;;  %3528 = vmatmul.mubr.bf16.gmra.mxu1 %v6373_v62  ;;  %3422 = vmatprep.mubr.bf16.mxu0 %v2040_v50  ;;  %v2041_v62 = vrot.slane %v4285_v36, 1 }
 0x15e   : > { %v4612_v13 = vpop.f32.mrf.mxu0  ;;  %3535 = vmatprep.mubr.bf16.mxu1 %v2311_v1  ;;  %v2325_v1 = vshrl.u32 %v6435_v6, 16 }
 0x15f   : > { %v4681_v38 = vpop.f32.mrf.mxu1  ;;  %v6438_v61 = vadd.f32 %v4612_v13, %v4611_v55  ;;  %v2042_v55 = vrot.slane %v5358_v19, 1  ;;  %v2332_v13 = vshll.u32 %v6445_v52, 16  ;;  %v1090_v19 = vld [vmem:[#allocation2 + $0xa8] sm:$0xf] }
 0x160   : > { %v6443_v14 = vadd.f32 %v4681_v38, %v4680_v7  ;;  %v2330_v25 = vor.u32 %v2329_v12, %v2325_v1  ;;  %v2344_v1 = vshll.u32 %v6463_v3, 16 }
 0x161   : > { %v4683_v26 = vpop.f32.mrf.mxu1  ;;  %v2043_v36 = vsel %vm1531_vm10, %v2041_v62, %v2042_v55  ;;  %v2334_v30 = vrot.slane %v2332_v13, 1  ;;  %v4595_v62 = vadd.f32 %v6304_v49, %v6290_v23  ;;  %v6477_v13 = vcombine.low %v1090_v19, %v6469_v46 }
 0x162   : > { %7093 = vst [vmem:[#allocation15_spill] sm:$0xff] %v6443_v14 }
 0x163   : > { %v4684_v0 = vpop.f32.mrf.mxu1  ;;  %v2351_v19 = vshll.u32 %v6477_v13, 16 }
 0x164   : > { %v6451_v48 = vadd.f32 %v4684_v0, %v4683_v26  ;;  %3423 = vmatmul.mubr.bf16.gmra.mxu0 %v1919_v35  ;;  %v1926_v0 = vor.u32 %v1925_v4, %v1921_v39  ;;  %v2335_v39 = vsel %vm1274_vm5, %v2330_v25, %v2334_v30  ;;  %v2337_v4 = vshrl.u32 %v6457_v42, 16 }
 0x165   : > { %v4702_v7 = vpop.f32.mrf.mxu1  ;;  %3536 = vmatmul.mubr.bf16.gmra.mxu1 %v6392_v34  ;;  %3430 = vmatprep.mubr.bf16.mxu0 %v2043_v36  ;;  %v1930_v34 = vrot.slane %v1928_v56, 1  ;;  %v2341_v56 = vrot.slane %v2339_v17, 1  ;;  %v2346_v17 = vrot.slane %v2344_v1, 1 }
 0x166   : > { %7094 = vst [vmem:[#allocation16_spill] sm:$0xff] %v6451_v48  ;;  %3543 = vmatprep.mubr.bf16.mxu1 %v2323_v54 }
 0x167   : > { %v4703_v38 = vpop.f32.mrf.mxu1  ;;  %v1931_v23 = vsel %vm1274_vm5, %v1926_v0, %v1930_v34  ;;  %v2342_v30 = vor.u32 %v2341_v56, %v2337_v4  ;;  %v1092_v34 = vld [vmem:[#allocation2 + $0xb4] sm:$0xf] }
 0x168   : > { %v4704_v50 = vadd.f32 %v4703_v38, %v4702_v7  ;;  %v4614_v5 = vpop.f32.mrf.mxu0 }
 0x169   : > { %v4705_v26 = vpop.f32.mrf.mxu1  ;;  %v2347_v1 = vsel %vm1274_vm5, %v2342_v30, %v2346_v17  ;;  %v1094_v17 = vld [vmem:[#allocation2 + $0xc0] sm:$0xf] }
 0x16a   : > { %v6466_v60 = vadd.f32 %v4704_v50, %v6255_v8  ;;  %v4615_v55 = vpop.f32.mrf.mxu0 }
 0x16b   : > { %v4706_v41 = vpop.f32.mrf.mxu1  ;;  %v6473_v54 = vadd.f32 %v4615_v55, %v4614_v5  ;;  %v6487_v5 = vld [vmem:[#allocation2 + $0xb0] ss:$0 sps:$4 sm:$0x11]  }
 0x16c   : > { %v4707_v7 = vadd.f32 %v4706_v41, %v4705_v26  ;;  %v4617_v12 = vpop.f32.mrf.mxu0  ;;  %3431 = vmatmul.mubr.bf16.gmra.mxu0 %v1931_v23  ;;  %v4601_v41 = vadd.f32 %v6367_v43, %v6358_v27 }
 0x16d   : > { %v4708_v8 = vpop.f32.mrf.mxu1  ;;  %3544 = vmatmul.mubr.bf16.gmra.mxu1 %v6414_v45  ;;  %5062 = vmatprep.mubr.bf16.mxu0 %v6309_v29  ;;  %v6494_v45 = vld [vmem:[#allocation2 + $0xb8] sm:$0xf] }
 0x16e   : > { %v6479_v35 = vadd.f32 %v4707_v7, %v4595_v62  ;;  %v4618_v38 = vpop.f32.mrf.mxu0  ;;  %3551 = vmatprep.mubr.bf16.mxu1 %v2335_v39  ;;  %v2349_v7 = vshrl.u32 %v6477_v13, 16  ;;  %v6504_v29 = vcombine.low %v1092_v34, %v6494_v45 }
 0x16f   : > { %v4709_v49 = vpop.f32.mrf.mxu1  ;;  %v6485_v50 = vadd.f32 %v4618_v38, %v4617_v12  ;;  %v2356_v12 = vshll.u32 %v6487_v5, 16  ;;  %v6507_v38 = vld [vmem:[#allocation2 + $0xbc] ss:$0 sps:$4 sm:$0x11]  }
 0x170   : > { %v4710_v36 = vadd.f32 %v4709_v49, %v4708_v8  ;;  %v2353_v8 = vrot.slane %v2351_v19, 1  ;;  %v2363_v19 = vshll.u32 %v6504_v29, 16 }
 0x171   : > { %v4711_v26 = vpop.f32.mrf.mxu1  ;;  %v2358_v49 = vrot.slane %v2356_v12, 1 }
 0x172   : > { %v6491_v25 = vadd.f32 %v4710_v36, %v6337_v53  ;;  %v2354_v23 = vor.u32 %v2353_v8, %v2349_v7  ;;  %v2361_v7 = vshrl.u32 %v6504_v29, 16 }
 0x173   : > { %v4712_v0 = vpop.f32.mrf.mxu1  ;;  %v4620_v39 = vpop.f32.mrf.mxu0 }
 0x174   : > { %v4713_v62 = vadd.f32 %v4712_v0, %v4711_v26  ;;  %5063 = vmatmul.mubr.bf16.vlgmr.msra.gmra.mxu0 %v6312_v21  ;;  %v6517_v0 = vld [vmem:[#allocation2 + $0xc4] sm:$0xf]  ;;  %v2359_v21 = vsel %vm1274_vm5, %v2354_v23, %v2358_v49 }
 0x175   : > { %v4714_v55 = vpop.f32.mrf.mxu1  ;;  %3552 = vmatmul.mubr.bf16.gmra.mxu1 %v6435_v6  ;;  %v4621_v27 = vpop.f32.mrf.mxu0  ;;  %5066 = vmatprep.mubr.bf16.mxu0 %v6330_v28  ;;  %v2365_v28 = vrot.slane %v2363_v19, 1 }
 0x176   : > { %v6500_v53 = vadd.f32 %v4713_v62, %v4601_v41  ;;  %3559 = vmatprep.mubr.bf16.mxu1 %v2347_v1  ;;  %v6510_v36 = vadd.f32 %v4621_v27, %v4620_v39  ;;  %v1120_v62 = vld [vmem:[#allocation2 + $0x60] sm:$0xe]  ;;  %v6528_v1 = vcombine.low %v1094_v17, %v6517_v0 }
 0x177   : > { %v4715_v4 = vpop.f32.mrf.mxu1  ;;  %v4623_v6 = vpop.f32.mrf.mxu0 }
 0x178   : > { %v4716_v56 = vadd.f32 %v4715_v4, %v4714_v55  ;;  %v2375_v17 = vshll.u32 %v6528_v1, 16 }
 0x179   : > { %v4717_v43 = vpop.f32.mrf.mxu1  ;;  %v4624_v41 = vpop.f32.mrf.mxu0 }
 0x17a   : > { %v6513_v26 = vadd.f32 %v4716_v56, %v6386_v58  ;;  %v2368_v58 = vshll.u32 %v6507_v38, 16  ;;  %v6522_v8 = vadd.f32 %v4624_v41, %v4623_v6  ;;  %v4324_v56 = vcombine.low %v1120_v62, %v6327_v63  ;;  %v6532_v6 = vld [vmem:[#allocation2 + $0xc8] ss:$0 sps:$4 sm:$0x11]   ;;  %v1096_v63 = vld [vmem:[#allocation2 + $0xcc] sm:$0xf] }
 0x17b   : > { %v4718_v30 = vpop.f32.mrf.mxu1  ;;  %v4626_v39 = vpop.f32.mrf.mxu0 }
 0x17c   : > { %v4719_v34 = vadd.f32 %v4718_v30, %v4717_v43  ;;  %v2370_v49 = vrot.slane %v2368_v58, 1  ;;  %5067 = vmatmul.mubr.bf16.gmra.mxu0 %v6333_v32  ;;  %v2366_v30 = vor.u32 %v2365_v28, %v2361_v7  ;;  %v2478_v62 = vrot.slane %v4324_v56, 1 }
 0x17d   : > { %v4720_v55 = vpop.f32.mrf.mxu1  ;;  %3560 = vmatmul.mubr.bf16.gmra.mxu1 %v6457_v42  ;;  %v4627_v43 = vpop.f32.mrf.mxu0  ;;  %5070 = vmatprep.mubr.bf16.mxu0 %v6340_v16  ;;  %v2380_v7 = vshll.u32 %v6532_v6, 16 }
 0x17e   : > { %v6525_v12 = vadd.f32 %v4719_v34, %v6399_v22  ;;  %3567 = vmatprep.mubr.bf16.mxu1 %v2359_v21  ;;  %v6535_v22 = vadd.f32 %v4627_v43, %v4626_v39  ;;  %v6541_v34 = vld [vmem:[#allocation2 + $0xd0] sm:$0xf]  ;;  %v1121_v21 = vld [vmem:[#allocation2 + $0x6c] sm:$0xe]  ;;  %v1122_v39 = vld [vmem:[#allocation2 + $0x78] sm:$0xe]  ;;  %v2371_v56 = vsel %vm1274_vm5, %v2366_v30, %v2370_v49 }
 0x17f   : > { %v4721_v4 = vpop.f32.mrf.mxu1  ;;  %v4629_v42 = vpop.f32.mrf.mxu0  ;;  %v6548_v28 = vcombine.low %v1096_v63, %v6541_v34  ;;  %v4325_v43 = vcombine.low %v1121_v21, %v6365_v2  ;;  %v4326_v48 = vcombine.low %v1122_v39, %v6384_v15  ;;  %v2382_v2 = vrot.slane %v2380_v7, 1 }
 0x180   : > { %v4722_v27 = vadd.f32 %v4721_v4, %v4720_v55  ;;  %v2479_v55 = vrot.slane %v6360_v24, 1  ;;  %v2377_v24 = vrot.slane %v2375_v17, 1  ;;  %v2482_v15 = vrot.slane %v6381_v10, 1 }
 0x181   : > { %v4723_v23 = vpop.f32.mrf.mxu1  ;;  %v4630_v58 = vpop.f32.mrf.mxu0  ;;  %v2387_v17 = vshll.u32 %v6548_v28, 16  ;;  %v2484_v21 = vrot.slane %v4326_v48, 1  ;;  %v2385_v10 = vshrl.u32 %v6548_v28, 16 }
 0x182   : > { %v6538_v19 = vadd.f32 %v4722_v27, %v6426_v59  ;;  %v2373_v59 = vshrl.u32 %v6528_v1, 16  ;;  %v6550_v27 = vadd.f32 %v4630_v58, %v4629_v42  ;;  %v6560_v42 = vld [vmem:[#allocation2 + $0xd4] ss:$0 sps:$4 sm:$0x11]   ;;  %v1123_v58 = vld [vmem:[#allocation2 + $0x84] sm:$0xe] }
 0x183   : > { %v4724_v41 = vpop.f32.mrf.mxu1 }
 0x184   : > { %v4725_v32 = vadd.f32 %v4724_v41, %v4723_v23  ;;  %v2480_v41 = vsel %vm1531_vm10, %v2478_v62, %v2479_v55  ;;  %5071 = vmatmul.mubr.bf16.gmra.mxu0 %v6346_v47  ;;  %v2378_v30 = vor.u32 %v2377_v24, %v2373_v59  ;;  %v2481_v62 = vrot.slane %v4325_v43, 1 }
 0x185   : > { %v4726_v4 = vpop.f32.mrf.mxu1  ;;  %3568 = vmatmul.mubr.bf16.gmra.mxu1 %v6477_v13  ;;  %5074 = vmatprep.mubr.bf16.mxu0 %v2480_v41  ;;  %v2389_v24 = vrot.slane %v2387_v17, 1 }
 0x186   : > { %v6553_v16 = vadd.f32 %v4725_v32, %v6438_v61  ;;  %3575 = vmatprep.mubr.bf16.mxu1 %v2371_v56  ;;  %v4632_v61 = vpop.f32.mrf.mxu0  ;;  %v2485_v32 = vrot.slane %v6401_v44, 1  ;;  %v2383_v56 = vsel %vm1274_vm5, %v2378_v30, %v2382_v2  ;;  %v2483_v48 = vsel %vm1531_vm10, %v2481_v62, %v2482_v15 }
 0x187   : > { %v4727_v23 = vpop.f32.mrf.mxu1  ;;  %v4327_v44 = vcombine.low %v1123_v58, %v6407_v31  ;;  %v2390_v2 = vor.u32 %v2389_v24, %v2385_v10  ;;  %v2488_v62 = vrot.slane %v6422_v57, 1  ;;  %v1126_v58 = vld [vmem:[#allocation2 + $0xa8] sm:$0xe] }
 0x188   : > { %v4728_v14 = vadd.f32 %v4727_v23, %v4726_v4  ;;  %v4633_v55 = vpop.f32.mrf.mxu0  ;;  %v1124_v4 = vld [vmem:[#allocation2 + $0x90] sm:$0xe]  ;;  %v2486_v41 = vsel %vm1531_vm10, %v2484_v21, %v2485_v32  ;;  %v1125_v21 = vld [vmem:[#allocation2 + $0x9c] sm:$0xe]  ;;  %v4330_v24 = vcombine.low %v1126_v58, %v6469_v46  ;;  %v1127_v46 = vld [vmem:[#allocation2 + $0xb4] sm:$0xe] }
 0x189   : > { %v4729_v63 = vpop.f32.mrf.mxu1  ;;  %v6569_v47 = vadd.f32 %v4633_v55, %v4632_v61  ;;  %v2487_v31 = vrot.slane %v4327_v44, 1  ;;  %v4329_v57 = vcombine.low %v1125_v21, %v6449_v20  ;;  %v2494_v20 = vrot.slane %v6463_v3, 1 }
 0x18a   : > { %v6564_v49 = vadd.f32 %v4728_v14, %v6473_v54  ;;  %v2392_v54 = vshll.u32 %v6560_v42, 16  ;;  %v4635_v59 = vpop.f32.mrf.mxu0  ;;  %v2500_v58 = vrot.slane %v6507_v38, 1 }
 0x18b   : > { %v4730_v13 = vpop.f32.mrf.mxu1 }
 0x18c   : > { %v4731_v39 = vadd.f32 %v4730_v13, %v4729_v63  ;;  %v4636_v23 = vpop.f32.mrf.mxu0  ;;  %v4328_v63 = vcombine.low %v1124_v4, %v6428_v51  ;;  %5075 = vmatmul.mubr.bf16.gmra.mxu0 %v2483_v48  ;;  %v2394_v17 = vrot.slane %v2392_v54, 1  ;;  %v2489_v54 = vsel %vm1531_vm10, %v2487_v31, %v2488_v62 }
 0x18d   : > { %v4732_v14 = vpop.f32.mrf.mxu1  ;;  %3576 = vmatmul.mubr.bf16.gmra.mxu1 %v6504_v29  ;;  %5078 = vmatprep.mubr.bf16.mxu0 %v2486_v41  ;;  %v2491_v29 = vrot.slane %v6445_v52, 1  ;;  %v2493_v41 = vrot.slane %v4329_v57, 1 }
 0x18e   : > { %v6573_v7 = vadd.f32 %v4731_v39, %v6485_v50  ;;  %v6582_v50 = vadd.f32 %v4636_v23, %v4635_v59  ;;  %3583 = vmatprep.mubr.bf16.mxu1 %v2383_v56  ;;  %v2490_v51 = vrot.slane %v4328_v63, 1 }
 0x18f   : > { %v4733_v43 = vpop.f32.mrf.mxu1  ;;  %v4638_v55 = vpop.f32.mrf.mxu0  ;;  %v2495_v62 = vsel %vm1531_vm10, %v2493_v41, %v2494_v20 }
 0x190   : > { %v4734_v61 = vadd.f32 %v4733_v43, %v4732_v14  ;;  %v2492_v52 = vsel %vm1531_vm10, %v2490_v51, %v2491_v29 }
 0x191   : > { %v4735_v13 = vpop.f32.mrf.mxu1  ;;  %v4639_v4 = vpop.f32.mrf.mxu0 }
 0x192   : > { %v6585_v30 = vadd.f32 %v4734_v61, %v6510_v36  ;;  %v2395_v36 = vsel %vm1274_vm5, %v2390_v2, %v2394_v17  ;;  %v6594_v59 = vadd.f32 %v4639_v4, %v4638_v55  ;;  %v2496_v61 = vrot.slane %v4330_v24, 1  ;;  %v1128_v17 = vld [vmem:[#allocation2 + $0xc0] sm:$0xe] }
 0x193   : > { %v4736_v15 = vpop.f32.mrf.mxu1  ;;  %v4641_v10 = vpop.f32.mrf.mxu0  ;;  %v4332_v3 = vcombine.low %v1128_v17, %v6517_v0 }
 0x194   : > { %v4737_v32 = vadd.f32 %v4736_v15, %v4735_v13  ;;  %5079 = vmatmul.mubr.bf16.gmra.mxu0 %v2489_v54  ;;  %v2497_v13 = vrot.slane %v6487_v5, 1  ;;  %v4331_v15 = vcombine.low %v1127_v46, %v6494_v45  ;;  %v2503_v45 = vrot.slane %v6532_v6, 1  ;;  %v1129_v54 = vld [vmem:[#allocation2 + $0xcc] sm:$0xe] }
 0x195   : > { %v4738_v39 = vpop.f32.mrf.mxu1  ;;  %3584 = vmatmul.mubr.bf16.gmra.mxu1 %v6528_v1  ;;  %5082 = vmatprep.mubr.bf16.mxu0 %v2492_v52  ;;  %v4333_v52 = vcombine.low %v1129_v54, %v6541_v34 }
 0x196   : > { %v6590_v14 = vadd.f32 %v4737_v32, %v6522_v8  ;;  %3591 = vmatprep.mubr.bf16.mxu1 %v2395_v36  ;;  %v4642_v8 = vpop.f32.mrf.mxu0  ;;  %v2498_v51 = vsel %vm1531_vm10, %v2496_v61, %v2497_v13  ;;  %v2502_v36 = vrot.slane %v4332_v3, 1 }
 0x197   : > { %v4739_v56 = vpop.f32.mrf.mxu1  ;;  %v4643_v23 = vadd.f32 %v4642_v8, %v4641_v10 }
 0x198   : > { %v4740_v48 = vadd.f32 %v4739_v56, %v4738_v39  ;;  %v4644_v1 = vpop.f32.mrf.mxu0  ;;  %v2504_v38 = vsel %vm1531_vm10, %v2502_v36, %v2503_v45 }
 0x199   : > { %v4741_v44 = vpop.f32.mrf.mxu1 }
 0x19a   : > { %v6601_v43 = vadd.f32 %v4740_v48, %v6535_v22  ;;  %v4645_v22 = vpop.f32.mrf.mxu0 }
 0x19b   : > { %v4742_v63 = vpop.f32.mrf.mxu1  ;;  %v4646_v55 = vadd.f32 %v4645_v22, %v4644_v1 }
 0x19c   : > { %v4743_v2 = vadd.f32 %v4742_v63, %v4741_v44  ;;  %v4647_v5 = vpop.f32.mrf.mxu0  ;;  %5083 = vmatmul.mubr.bf16.gmra.mxu0 %v2495_v62  ;;  %v2506_v63 = vrot.slane %v6560_v42, 1 }
 0x19d   : > { %v4744_v29 = vpop.f32.mrf.mxu1  ;;  %3592 = vmatmul.mubr.bf16.gmra.mxu1 %v6548_v28  ;;  %5086 = vmatprep.mubr.bf16.mxu0 %v2498_v51 }
 0x19e   : > { %v6606_v31 = vadd.f32 %v4743_v2, %v6550_v27  ;;  %v4648_v32 = vpop.f32.mrf.mxu0  ;;  %v2499_v27 = vrot.slane %v4331_v15, 1 }
 0x19f   : > { %v4745_v21 = vpop.f32.mrf.mxu1  ;;  %v4649_v4 = vadd.f32 %v4648_v32, %v4647_v5 }
 0x1a0   : > { %v4746_v39 = vadd.f32 %v4745_v21, %v4744_v29  ;;  %v4650_v56 = vpop.f32.mrf.mxu0  ;;  %v2501_v10 = vsel %vm1531_vm10, %v2499_v27, %v2500_v58 }
 0x1a1   : > { %v4747_v57 = vpop.f32.mrf.mxu1 }
 0x1a2   : > { %v6616_v0 = vadd.f32 %v4746_v39, %v6569_v47  ;;  %v4651_v48 = vpop.f32.mrf.mxu0  ;;  %v2505_v47 = vrot.slane %v4333_v52, 1 }
 0x1a3   : > { %v4748_v28 = vpop.f32.mrf.mxu1  ;;  %v4652_v8 = vadd.f32 %v4651_v48, %v4650_v56 }
 0x1a4   : > { %v4749_v24 = vadd.f32 %v4748_v28, %v4747_v57  ;;  %5087 = vmatmul.mubr.bf16.gmra.mxu0 %v2501_v10  ;;  %v4653_v6 = vpop.f32.mrf.mxu0  ;;  %v2507_v17 = vsel %vm1531_vm10, %v2505_v47, %v2506_v63 }
 0x1a5   : > { %v4750_v44 = vpop.f32.mrf.mxu1  ;;  %5090 = vmatprep.mubr.bf16.mxu0 %v2504_v38 }
 0x1a6   : > { %v6622_v41 = vadd.f32 %v4749_v24, %v6582_v50  ;;  %v4654_v13 = vpop.f32.mrf.mxu0 }
 0x1a7   : > { %v4751_v20 = vpop.f32.mrf.mxu1  ;;  %v4655_v34 = vadd.f32 %v4654_v13, %v4653_v6 }
 0x1a8   : > { %v4752_v61 = vadd.f32 %v4751_v20, %v4750_v44 }
 0x1a9   : > { %v4753_v46 = vpop.f32.mrf.mxu1 }
 0x1aa   : > { %v6626_v2 = vadd.f32 %v4752_v61, %v6594_v59 }
 0x1ab   : > { %v4754_v1 = vpop.f32.mrf.mxu1  ;;  %v4656_v15 = vpop.f32.mrf.mxu0 }
 0x1ac   : > { %v4755_v62 = vadd.f32 %v4754_v1, %v4753_v46  ;;  %5091 = vmatmul.mubr.bf16.gmra.mxu0 %v2507_v17 }
 0x1ad   : > { %v4756_v50 = vpop.f32.mrf.mxu1  ;;  %v4657_v29 = vpop.f32.mrf.mxu0 }
 0x1ae   : > { %v6629_v22 = vadd.f32 %v4755_v62, %v4643_v23  ;;  %v4658_v5 = vadd.f32 %v4657_v29, %v4656_v15 }
 0x1af   : > { %v4757_v51 = vpop.f32.mrf.mxu1  ;;  %v4659_v32 = vpop.f32.mrf.mxu0 }
 0x1b0   : > { %v4758_v3 = vadd.f32 %v4757_v51, %v4756_v50 }
 0x1b1   : > { %v4759_v42 = vpop.f32.mrf.mxu1  ;;  %v4660_v58 = vpop.f32.mrf.mxu0 }
 0x1b2   : > { %v6631_v21 = vadd.f32 %v4758_v3, %v4646_v55  ;;  %v4661_v36 = vadd.f32 %v4660_v58, %v4659_v32 }
 0x1b3   : > { %v4760_v27 = vpop.f32.mrf.mxu1  ;;  %v4814_v54 = vpop.f32.mrf.mxu0 }
 0x1b4   : > { %v4761_v59 = vadd.f32 %v4760_v27, %v4759_v42 }
 0x1b5   : > { %v4762_v39 = vpop.f32.mrf.mxu1  ;;  %v4815_v56 = vpop.f32.mrf.mxu0 }
 0x1b6   : > { %v6633_v45 = vadd.f32 %v4761_v59, %v4649_v4  ;;  %v4816_v10 = vadd.f32 %v4815_v56, %v4814_v54 }
 0x1b7   : > { %v4763_v23 = vpop.f32.mrf.mxu1  ;;  %v4817_v24 = vpop.f32.mrf.mxu0 }
 0x1b8   : > { %v4764_v57 = vadd.f32 %v4763_v23, %v4762_v39  ;;  %v6638_v55 = vadd.f32 %v4816_v10, %v6466_v60 }
 0x1b9   : > { %v4765_v28 = vpop.f32.mrf.mxu1  ;;  %v4818_v44 = vpop.f32.mrf.mxu0 }
 0x1ba   : > { %v6635_v52 = vadd.f32 %v4764_v57, %v4652_v8  ;;  %v4819_v20 = vadd.f32 %v4818_v44, %v4817_v24 }
 0x1bb   : > { %v4766_v48 = vpop.f32.mrf.mxu1  ;;  %v4820_v4 = vpop.f32.mrf.mxu0 }
 0x1bc   : > { %v4767_v38 = vadd.f32 %v4766_v48, %v4765_v28  ;;  %v6643_v61 = vadd.f32 %v4819_v20, %v6479_v35 }
 0x1bd   : > { %v4768_v6 = vpop.f32.mrf.mxu1  ;;  %v4821_v46 = vpop.f32.mrf.mxu0 }
 0x1be   : > { %v6640_v47 = vadd.f32 %v4767_v38, %v4655_v34  ;;  %v4822_v1 = vadd.f32 %v4821_v46, %v4820_v4 }
 0x1bf   : > { %v4769_v63 = vpop.f32.mrf.mxu1  ;;  %v4823_v62 = vpop.f32.mrf.mxu0 }
 0x1c0   : > { %v4770_v13 = vadd.f32 %v4769_v63, %v4768_v6  ;;  %v6648_v50 = vadd.f32 %v4822_v1, %v6491_v25 }
 0x1c1   : > { %v4771_v8 = vpop.f32.mrf.mxu1  ;;  %v4824_v51 = vpop.f32.mrf.mxu0 }
 0x1c2   : > { %v6645_v17 = vadd.f32 %v4770_v13, %v4658_v5  ;;  %v4825_v3 = vadd.f32 %v4824_v51, %v4823_v62 }
 0x1c3   : > { %v4772_v60 = vpop.f32.mrf.mxu1  ;;  %v4826_v42 = vpop.f32.mrf.mxu0 }
 0x1c4   : > { %v4773_v15 = vadd.f32 %v4772_v60, %v4771_v8  ;;  %v6653_v32 = vadd.f32 %v4825_v3, %v6500_v53 }
 0x1c5   : > { %v4774_v34 = vpop.f32.mrf.mxu1  ;;  %v4827_v59 = vpop.f32.mrf.mxu0 }
 0x1c6   : > { %v6650_v29 = vadd.f32 %v4773_v15, %v4661_v36  ;;  %v4828_v58 = vadd.f32 %v4827_v59, %v4826_v42 }
 0x1c7   : > { %v4775_v35 = vpop.f32.mrf.mxu1  ;;  %v4829_v25 = vpop.f32.mrf.mxu0 }
 0x1c8   : > { %v4776_v27 = vadd.f32 %v4775_v35, %v4774_v34  ;;  %v6659_v23 = vadd.f32 %v4828_v58, %v6513_v26 }
 0x1c9   : > { %v4777_v5 = vpop.f32.mrf.mxu1  ;;  %v4830_v36 = vpop.f32.mrf.mxu0 }
 0x1ca   : > { %v6656_v39 = vadd.f32 %v4776_v27, %v6296_v9  ;;  %v4831_v28 = vadd.f32 %v4830_v36, %v4829_v25 }
 0x1cb   : > { %v4778_v54 = vpop.f32.mrf.mxu1  ;;  %v4832_v53 = vpop.f32.mrf.mxu0 }
 0x1cc   : > { %v4779_v57 = vadd.f32 %v4778_v54, %v4777_v5  ;;  %v6665_v48 = vadd.f32 %v4831_v28, %v6525_v12  ;;  %v7095_v28 = vld [vmem:[#allocation15_spill] sm:$0xff] }
 0x1cd   : > { %v4780_v56 = vpop.f32.mrf.mxu1  ;;  %v4833_v9 = vpop.f32.mrf.mxu0 }
 0x1ce   : > { %v6662_v10 = vadd.f32 %v4779_v57, %v6315_v11  ;;  %v4834_v6 = vadd.f32 %v4833_v9, %v4832_v53 }
 0x1cf   : > { %v4781_v24 = vpop.f32.mrf.mxu1  ;;  %v4835_v26 = vpop.f32.mrf.mxu0 }
 0x1d0   : > { %v4782_v38 = vadd.f32 %v4781_v24, %v4780_v56  ;;  %v6671_v63 = vadd.f32 %v4834_v6, %v6538_v19 }
 0x1d1   : > { %v4783_v44 = vpop.f32.mrf.mxu1  ;;  %v4836_v11 = vpop.f32.mrf.mxu0 }
 0x1d2   : > { %v6668_v20 = vadd.f32 %v4782_v38, %v6352_v37  ;;  %v4837_v8 = vadd.f32 %v4836_v11, %v4835_v26  ;;  %v7097_v26 = vld [vmem:[#allocation16_spill] sm:$0xff] }
 0x1d3   : > { %v4784_v4 = vpop.f32.mrf.mxu1  ;;  %v4838_v12 = vpop.f32.mrf.mxu0 }
 0x1d4   : > { %v4785_v13 = vadd.f32 %v4784_v4, %v4783_v44  ;;  %v6677_v60 = vadd.f32 %v4837_v8, %v6553_v16 }
 0x1d5   : > { %v4786_v46 = vpop.f32.mrf.mxu1  ;;  %v4839_v37 = vpop.f32.mrf.mxu0 }
 0x1d6   : > { %v6674_v1 = vadd.f32 %v4785_v13, %v6363_v40  ;;  %v4840_v34 = vadd.f32 %v4839_v37, %v4838_v12 }
 0x1d7   : > { %v4787_v62 = vpop.f32.mrf.mxu1  ;;  %v4841_v19 = vpop.f32.mrf.mxu0 }
 0x1d8   : > { %v4788_v15 = vadd.f32 %v4787_v62, %v4786_v46  ;;  %v6683_v35 = vadd.f32 %v4840_v34, %v6564_v49 }
 0x1d9   : > { %v4789_v51 = vpop.f32.mrf.mxu1  ;;  %v4842_v40 = vpop.f32.mrf.mxu0 }
 0x1da   : > { %v6680_v3 = vadd.f32 %v4788_v15, %v6405_v33  ;;  %v4843_v5 = vadd.f32 %v4842_v40, %v4841_v19 }
 0x1db   : > { %v4790_v42 = vpop.f32.mrf.mxu1  ;;  %v4844_v16 = vpop.f32.mrf.mxu0 }
 0x1dc   : > { %v4791_v27 = vadd.f32 %v4790_v42, %v4789_v51  ;;  %v6689_v54 = vadd.f32 %v4843_v5, %v6573_v7 }
 0x1dd   : > { %v4792_v59 = vpop.f32.mrf.mxu1  ;;  %v4845_v33 = vpop.f32.mrf.mxu0 }
 0x1de   : > { %v6686_v58 = vadd.f32 %v4791_v27, %v6417_v18  ;;  %v4846_v56 = vadd.f32 %v4845_v33, %v4844_v16 }
 0x1df   : > { %v4793_v25 = vpop.f32.mrf.mxu1  ;;  %v4847_v49 = vpop.f32.mrf.mxu0 }
 0x1e0   : > { %v4794_v57 = vadd.f32 %v4793_v25, %v4792_v59  ;;  %v6695_v38 = vadd.f32 %v4846_v56, %v6585_v30 }
 0x1e1   : > { %v4795_v36 = vpop.f32.mrf.mxu1  ;;  %v4848_v18 = vpop.f32.mrf.mxu0 }
 0x1e2   : > { %v6692_v53 = vadd.f32 %v4794_v57, %v7095_v28  ;;  %v4849_v6 = vadd.f32 %v4848_v18, %v4847_v49 }
 0x1e3   : > { %v4796_v24 = vpop.f32.mrf.mxu1  ;;  %v4850_v7 = vpop.f32.mrf.mxu0 }
 0x1e4   : > { %7096 = vst [vmem:[#allocation15_spill] sm:$0xff] %v6692_v53  ;;  %v4797_v9 = vadd.f32 %v4796_v24, %v4795_v36  ;;  %v6701_v11 = vadd.f32 %v4849_v6, %v6590_v14 }
 0x1e5   : > { %v4926_v44 = vpop.f32.mrf.mxu1  ;;  %v4851_v8 = vpop.f32.mrf.mxu0 }
 0x1e6   : > { %v6698_v4 = vadd.f32 %v4797_v9, %v7097_v26  ;;  %v4852_v62 = vadd.f32 %v4851_v8, %v4850_v7 }
 0x1e7   : > { %v4927_v13 = vpop.f32.mrf.mxu1  ;;  %v4853_v30 = vpop.f32.mrf.mxu0 }
 0x1e8   : > { %7098 = vst [vmem:[#allocation16_spill] sm:$0xff] %v6698_v4  ;;  %v4928_v46 = vadd.f32 %v4927_v13, %v4926_v44  ;;  %v6707_v51 = vadd.f32 %v4852_v62, %v6601_v43 }
 0x1e9   : > { %v4929_v12 = vpop.f32.mrf.mxu1  ;;  %v4854_v19 = vpop.f32.mrf.mxu0 }
 0x1ea   : > { %v6704_v15 = vadd.f32 %v4928_v46, %v6638_v55  ;;  %v4855_v27 = vadd.f32 %v4854_v19, %v4853_v30 }
 0x1eb   : > { %v4930_v37 = vpop.f32.mrf.mxu1  ;;  %v4856_v40 = vpop.f32.mrf.mxu0 }
 0x1ec   : > { %v4931_v34 = vadd.f32 %v4930_v37, %v4929_v12  ;;  %v6717_v5 = vadd.f32 %v4855_v27, %v6606_v31 }
 0x1ed   : > { %v6709_v42 = vpop.f32.mrf.mxu1  ;;  %v4857_v55 = vpop.f32.mrf.mxu0 }
 0x1ee   : > { %v6712_v14 = vadd.f32 %v4931_v34, %v6643_v61  ;;  %v4858_v25 = vadd.f32 %v4857_v55, %v4856_v40 }
 0x1ef   : > { %v6714_v59 = vpop.f32.mrf.mxu1  ;;  %v4859_v43 = vpop.f32.mrf.mxu0 }
 0x1f0   : > { %v6724_v33 = vadd.f32 %v4858_v25, %v6616_v0 }
 0x1f1   : > { %v6719_v16 = vpop.f32.mrf.mxu1  ;;  %v4860_v36 = vpop.f32.mrf.mxu0 }
 0x1f2   : > { %v4861_v61 = vadd.f32 %v4860_v36, %v4859_v43 }
 0x1f3   : > { %v6721_v57 = vpop.f32.mrf.mxu1 }
 0x1f4   : > { %v4862_v28 = vpop.f32.mrf.mxu0  ;;  %v6731_v31 = vadd.f32 %v4861_v61, %v6622_v41 }
 0x1f5   : > { %v6726_v56 = vpop.f32.mrf.mxu1 }
 0x1f6   : > { %v4863_v24 = vpop.f32.mrf.mxu0 }
 0x1f7   : > { %v6728_v49 = vpop.f32.mrf.mxu1  ;;  %v4864_v18 = vadd.f32 %v4863_v24, %v4862_v28 }
 0x1f8   : > { %v4865_v44 = vpop.f32.mrf.mxu0 }
 0x1f9   : > { %v6733_v9 = vpop.f32.mrf.mxu1  ;;  %v6738_v0 = vadd.f32 %v4864_v18, %v6626_v2 }
 0x1fa   : > { %v4866_v26 = vpop.f32.mrf.mxu0 }
 0x1fb   : > { %v6735_v6 = vpop.f32.mrf.mxu1  ;;  %v4867_v13 = vadd.f32 %v4866_v26, %v4865_v44 }
 0x1fc   : > { %v4868_v46 = vpop.f32.mrf.mxu0 }
 0x1fd   : > { %v6740_v7 = vpop.f32.mrf.mxu1  ;;  %v6745_v41 = vadd.f32 %v4867_v13, %v6629_v22 }
 0x1fe   : > { %v4869_v12 = vpop.f32.mrf.mxu0 }
 0x1ff   : > { %v6742_v8 = vpop.f32.mrf.mxu1  ;;  %7099 = vst [vmem:[#allocation17_spill] sm:$0xff] %v6745_v41  ;;  %v4870_v30 = vadd.f32 %v4869_v12, %v4868_v46 }
 0x200   : > { %v4871_v37 = vpop.f32.mrf.mxu0 }
 0x201   : > { %v6747_v62 = vpop.f32.mrf.mxu1  ;;  %v6752_v2 = vadd.f32 %v4870_v30, %v6631_v21 }
 0x202   : > { %v4872_v19 = vpop.f32.mrf.mxu0 }
 0x203   : > { %v6749_v34 = vpop.f32.mrf.mxu1  ;;  %7100 = vst [vmem:[#allocation18_spill] sm:$0xff] %v6752_v2  ;;  %v4873_v40 = vadd.f32 %v4872_v19, %v4871_v37 }
 0x204   : > { %v4874_v55 = vpop.f32.mrf.mxu0 }
 0x205   : > { %v6754_v27 = vpop.f32.mrf.mxu1  ;;  %v6759_v22 = vadd.f32 %v4873_v40, %v6633_v45 }
 0x206   : > { %v4875_v43 = vpop.f32.mrf.mxu0 }
 0x207   : > { %v6756_v25 = vpop.f32.mrf.mxu1  ;;  %7101 = vst [vmem:[#allocation19_spill] sm:$0xff] %v6759_v22  ;;  %v4876_v61 = vadd.f32 %v4875_v43, %v4874_v55 }
 0x208   : > { %v4877_v28 = vpop.f32.mrf.mxu0 }
 0x209   : > { %v6761_v36 = vpop.f32.mrf.mxu1  ;;  %v6766_v21 = vadd.f32 %v4876_v61, %v6635_v52 }
 0x20a   : > { %v4878_v18 = vpop.f32.mrf.mxu0 }
 0x20b   : > { %v6763_v24 = vpop.f32.mrf.mxu1  ;;  %7102 = vst [vmem:[#allocation20_spill] sm:$0xff] %v6766_v21  ;;  %v4879_v26 = vadd.f32 %v4878_v18, %v4877_v28 }
 0x20c   : > { %v4880_v13 = vpop.f32.mrf.mxu0 }
 0x20d   : > { %v6768_v44 = vpop.f32.mrf.mxu1  ;;  %v6773_v45 = vadd.f32 %v4879_v26, %v6640_v47 }
 0x20e   : > { %v4881_v12 = vpop.f32.mrf.mxu0 }
 0x20f   : > { %v6770_v46 = vpop.f32.mrf.mxu1  ;;  %7103 = vst [vmem:[#allocation21_spill] sm:$0xff] %v6773_v45  ;;  %v4882_v37 = vadd.f32 %v4881_v12, %v4880_v13 }
 0x210   : > { %v4883_v19 = vpop.f32.mrf.mxu0 }
 0x211   : > { %v6775_v30 = vpop.f32.mrf.mxu1  ;;  %v6780_v52 = vadd.f32 %v4882_v37, %v6645_v17 }
 0x212   : > { %v4884_v55 = vpop.f32.mrf.mxu0 }
 0x213   : > { %v6777_v40 = vpop.f32.mrf.mxu1  ;;  %7104 = vst [vmem:[#allocation22_spill] sm:$0xff] %v6780_v52  ;;  %v4885_v61 = vadd.f32 %v4884_v55, %v4883_v19 }
 0x214   : > { %v4886_v28 = vpop.f32.mrf.mxu0 }
 0x215   : > { %v6782_v43 = vpop.f32.mrf.mxu1  ;;  %v6787_v47 = vadd.f32 %v4885_v61, %v6650_v29 }
 0x216   : > { %v4887_v26 = vpop.f32.mrf.mxu0 }
 0x217   : > { %v6784_v18 = vpop.f32.mrf.mxu1  ;;  %7105 = vst [vmem:[#allocation23_spill] sm:$0xff] %v6787_v47  ;;  %v4888_v13 = vadd.f32 %v4887_v26, %v4886_v28 }
 0x218   : > { %v4889_v12 = vpop.f32.mrf.mxu0 }
 0x219   : > { %v6789_v4 = vpop.f32.mrf.mxu1  ;;  %v6794_v17 = vadd.f32 %v4888_v13, %v6656_v39 }
 0x21a   : > { %v4890_v37 = vpop.f32.mrf.mxu0 }
 0x21b   : > { %v6791_v53 = vpop.f32.mrf.mxu1  ;;  %7106 = vst [vmem:[#allocation24_spill] sm:$0xff] %v6794_v17  ;;  %v4891_v19 = vadd.f32 %v4890_v37, %v4889_v12 }
 0x21c   : > { %v4892_v55 = vpop.f32.mrf.mxu0 }
 0x21d   : > { %v6796_v45 = vpop.f32.mrf.mxu1  ;;  %v6801_v29 = vadd.f32 %v4891_v19, %v6662_v10 }
 0x21e   : > { %v4893_v61 = vpop.f32.mrf.mxu0 }
 0x21f   : > { %v6798_v52 = vpop.f32.mrf.mxu1  ;;  %7107 = vst [vmem:[#allocation25_spill] sm:$0xff] %v6801_v29  ;;  %v4894_v28 = vadd.f32 %v4893_v61, %v4892_v55 }
 0x220   : > { %v4895_v26 = vpop.f32.mrf.mxu0 }
 0x221   : > { %v6803_v47 = vpop.f32.mrf.mxu1  ;;  %v6808_v39 = vadd.f32 %v4894_v28, %v6668_v20 }
 0x222   : > { %v4896_v13 = vpop.f32.mrf.mxu0 }
 0x223   : > { %v6805_v21 = vpop.f32.mrf.mxu1  ;;  %7108 = vst [vmem:[#allocation26_spill] sm:$0xff] %v6808_v39  ;;  %v4897_v12 = vadd.f32 %v4896_v13, %v4895_v26 }
 0x224   : > { %v4898_v37 = vpop.f32.mrf.mxu0 }
 0x225   : > { %v6810_v17 = vpop.f32.mrf.mxu1  ;;  %v6815_v10 = vadd.f32 %v4897_v12, %v6674_v1 }
 0x226   : > { %v4899_v19 = vpop.f32.mrf.mxu0 }
 0x227   : > { %v6812_v41 = vpop.f32.mrf.mxu1  ;;  %7109 = vst [vmem:[#allocation27_spill] sm:$0xff] %v6815_v10  ;;  %v4900_v55 = vadd.f32 %v4899_v19, %v4898_v37 }
 0x228   : > { %v4901_v61 = vpop.f32.mrf.mxu0 }
 0x229   : > { %v6817_v29 = vpop.f32.mrf.mxu1  ;;  %v6822_v20 = vadd.f32 %v4900_v55, %v6680_v3 }
 0x22a   : > { %v4902_v28 = vpop.f32.mrf.mxu0 }
 0x22b   : > { %v6819_v22 = vpop.f32.mrf.mxu1  ;;  %7110 = vst [vmem:[#allocation28_spill] sm:$0xff] %v6822_v20  ;;  %v4903_v26 = vadd.f32 %v4902_v28, %v4901_v61  ;;  %v4934_v61 = vadd.f32 %v6714_v59, %v6709_v42  ;;  %v4937_v28 = vadd.f32 %v6721_v57, %v6719_v16  ;;  %v4946_v57 = vadd.f32 %v6742_v8, %v6740_v7 }
 0x22c   : > { %v6826_v13 = vpop.f32.mrf.mxu0 }
 0x22d   : > { %v6824_v39 = vpop.f32.mrf.mxu1  ;;  %7111 = vst [vmem:[#allocation29_spill] sm:$0xff] %v6826_v13  ;;  %v6831_v1 = vadd.f32 %v4903_v26, %v6686_v58 }
 0x22e   : > { %v6833_v12 = vpop.f32.mrf.mxu0 }
 0x22f   : > { %v6828_v2 = vpop.f32.mrf.mxu1  ;;  %7112 = vst [vmem:[#allocation30_spill] sm:$0xff] %v6831_v1  ;;  %7113 = vst [vmem:[#allocation31_spill] sm:$0xff] %v6833_v12  ;;  %v3485_v12 = vadd.f32 %v4937_v28, %v6653_v32 }
 0x230   : > { %v6837_v19 = vpop.f32.mrf.mxu0 }
 0x231   : > { %v6835_v37 = vpop.f32.mrf.mxu1  ;;  %7114 = vst [vmem:[#allocation32_spill] sm:$0xff] %v6837_v19  ;;  %v3482_v19 = vadd.f32 %v4934_v61, %v6648_v50 }
 0x232   : > { %v6841_v3 = vpop.f32.mrf.mxu0 }
 0x233   : > { %v6839_v10 = vpop.f32.mrf.mxu1  ;;  %7115 = vst [vmem:[#allocation33_spill] sm:$0xff] %v6841_v3  ;;  %v4940_v3 = vadd.f32 %v6728_v49, %v6726_v56 }
 0x234   : > { %v5064_v58 = vpop.f32.mrf.mxu0 }
 0x235   : > { %v6843_v55 = vpop.f32.mrf.mxu1  ;;  %v3643_v42 = vadd.f32 %v5064_v58, %v3482_v19  ;;  %v3490_v28 = vadd.f32 %v4940_v3, %v6659_v23 }
 0x236   : > { %7116 = vst [vmem:[#allocation34_spill] sm:$0xff] %v6843_v55  ;;  %v3634_v1 = vpop.f32.mrf.mxu0 }
 0x237   : > { %v6849_v26 = vpop.f32.mrf.mxu1  ;;  %v3635_v59 = vadd.f32 %v3634_v1, %v6704_v15  ;;  %v3961_v1 = vmul.f32 %v3643_v42, %v3643_v42 }
 0x238   : > { %v5065_v13 = vpop.f32.mrf.mxu0 }
 0x239   : > { %v6851_v20 = vpop.f32.mrf.mxu1  ;;  %v3646_v16 = vadd.f32 %v5065_v13, %v3485_v12  ;;  %v3959_v19 = vmul.f32 %v3635_v59, %v3635_v59 }
 0x23a   : > { %7117 = vst [vmem:[#allocation35_spill] sm:$0xff] %v6851_v20  ;;  %v4949_v20 = vadd.f32 %v6749_v34, %v6747_v62  ;;  %v3637_v50 = vpop.f32.mrf.mxu0  ;;  %v4943_v62 = vadd.f32 %v6735_v6, %v6733_v9  ;;  %v4961_v6 = vadd.f32 %v6777_v40, %v6775_v30 }
 0x23b   : > { %v6857_v55 = vpop.f32.mrf.mxu1  ;;  %v4487_v32 = vpack.c.bf16 %v3646_v16, %v3643_v42  ;;  %v3638_v56 = vadd.f32 %v3637_v50, %v6712_v14  ;;  %v3498_v14 = vadd.f32 %v4946_v57, %v6671_v63  ;;  %v3962_v50 = vmul.f32 %v3646_v16, %v3646_v16 }
 0x23c   : > { %7118 = vst [vmem:[#allocation36_spill] sm:$0xff] %v6857_v55  ;;  %v5068_v49 = vpop.f32.mrf.mxu0  ;;  %v3501_v23 = vadd.f32 %v4949_v20, %v6677_v60  ;;  %v4952_v63 = vadd.f32 %v6756_v25, %v6754_v27  ;;  %v4958_v60 = vadd.f32 %v6770_v46, %v6768_v44  ;;  %v3493_v20 = vadd.f32 %v4943_v62, %v6665_v48 }
 0x23d   : > { %v6864_v61 = vpop.f32.mrf.mxu1  ;;  %4559 = vst [vmem:[%s6872_s18 + $0x8] sm:$0xff] %v4487_v32   ;;  %v4482_v15 = vpack.c.bf16 %v3638_v56, %v3635_v59  ;;  %v3921_v7 = vadd.f32 %v3638_v56, %v3635_v59  ;;  %v3960_v8 = vmul.f32 %v3638_v56, %v3638_v56  ;;  %v3659_v56 = vadd.f32 %v5068_v49, %v3498_v14 }
 0x23e   : > { %7119 = vst [vmem:[#allocation37_spill] sm:$0xff] %v6864_v61  ;;  %v3650_v34 = vpop.f32.mrf.mxu0  ;;  %v4955_v27 = vadd.f32 %v6763_v24, %v6761_v36  ;;  %v3506_v30 = vadd.f32 %v4952_v63, %v6683_v35  ;;  %v3514_v62 = vadd.f32 %v4958_v60, %v6695_v38  ;;  %v3517_v14 = vadd.f32 %v4961_v6, %v6701_v11 }
 0x23f   : > { %v6868_v55 = vpop.f32.mrf.mxu1  ;;  %4483 = vst [vmem:[%s6872_s18] sm:$0xff] %v4482_v15   ;;  %v3922_v12 = vadd.f32 %v3921_v7, %v3643_v42  ;;  %v3991_v3 = vadd.f32 %v3960_v8, %v3959_v19  ;;  %v3651_v58 = vadd.f32 %v3650_v34, %v3490_v28  ;;  %v3965_v34 = vmul.f32 %v3659_v56, %v3659_v56 }
 0x240   : > { %7120 = vst [vmem:[#allocation38_spill] sm:$0xff] %v6868_v55  ;;  %v5069_v32 = vpop.f32.mrf.mxu0  ;;  %v4964_v35 = vadd.f32 %v6784_v18, %v6782_v43  ;;  %v4973_v60 = vadd.f32 %v6805_v21, %v6803_v47 }
 0x241   : > { %v6879_v13 = vpop.f32.mrf.mxu1  ;;  %v3992_v59 = vadd.f32 %v3991_v3, %v3961_v1  ;;  %v3923_v61 = vadd.f32 %v3922_v12, %v3646_v16  ;;  %v3662_v9 = vadd.f32 %v5069_v32, %v3501_v23  ;;  %v3963_v19 = vmul.f32 %v3651_v58, %v3651_v58 }
 0x242   : > { %v3653_v42 = vpop.f32.mrf.mxu0 }
 0x243   : > { %v6882_v55 = vpop.f32.mrf.mxu1  ;;  %v3924_v28 = vadd.f32 %v3923_v61, %v3651_v58  ;;  %v3993_v49 = vadd.f32 %v3992_v59, %v3962_v50  ;;  %v4497_v16 = vpack.c.bf16 %v3662_v9, %v3659_v56  ;;  %v3654_v15 = vadd.f32 %v3653_v42, %v3493_v20 }
 0x244   : > { %v5072_v7 = vpop.f32.mrf.mxu0  ;;  %v3509_v50 = vadd.f32 %v4955_v27, %v6689_v54  ;;  %v3966_v32 = vmul.f32 %v3662_v9, %v3662_v9 }
 0x245   : > { %v6891_v57 = vpop.f32.mrf.mxu1  ;;  %v3994_v25 = vadd.f32 %v3993_v49, %v3963_v19  ;;  %4561 = vst [vmem:[%s6872_s18 + $0x18] sm:$0xff] %v4497_v16   ;;  %v4492_v44 = vpack.c.bf16 %v3654_v15, %v3651_v58  ;;  %v3925_v46 = vadd.f32 %v3924_v28, %v3654_v15  ;;  %v3964_v48 = vmul.f32 %v3654_v15, %v3654_v15 }
 0x246   : > { %v3666_v40 = vpop.f32.mrf.mxu0  ;;  %v3675_v3 = vadd.f32 %v5072_v7, %v3514_v62  ;;  %v3533_v7 = vadd.f32 %v4973_v60, %v6731_v31 }
 0x247   : > { %v6893_v8 = vpop.f32.mrf.mxu1  ;;  %4560 = vst [vmem:[%s6872_s18 + $0x10] sm:$0xff] %v4492_v44   ;;  %v3926_v23 = vadd.f32 %v3925_v46, %v3659_v56  ;;  %v3995_v1 = vadd.f32 %v3994_v25, %v3964_v48  ;;  %v3667_v12 = vadd.f32 %v3666_v40, %v3506_v30  ;;  %v4970_v56 = vadd.f32 %v6798_v52, %v6796_v45 }
 0x248   : > { %v5073_v36 = vpop.f32.mrf.mxu0  ;;  %v3522_v52 = vadd.f32 %v4964_v35, %v6707_v51  ;;  %v3969_v27 = vmul.f32 %v3675_v3, %v3675_v3  ;;  %v4976_v51 = vadd.f32 %v6812_v41, %v6810_v17 }
 0x249   : > { %v6899_v61 = vpop.f32.mrf.mxu1  ;;  %v3678_v58 = vadd.f32 %v5073_v36, %v3517_v14  ;;  %v3996_v38 = vadd.f32 %v3995_v1, %v3965_v34  ;;  %v3927_v59 = vadd.f32 %v3926_v23, %v3662_v9  ;;  %v3967_v42 = vmul.f32 %v3667_v12, %v3667_v12 }
 0x24a   : > { %v3669_v11 = vpop.f32.mrf.mxu0  ;;  %v4967_v9 = vadd.f32 %v6791_v53, %v6789_v4  ;;  %v3530_v15 = vadd.f32 %v4970_v56, %v6724_v33  ;;  %v4982_v23 = vadd.f32 %v6828_v2, %v6824_v39  ;;  %v4985_v1 = vadd.f32 %v6839_v10, %v6835_v37  ;;  %v7122_v56 = vld [vmem:[#allocation19_spill] sm:$0xff] }
 0x24b   : > { %v6904_v24 = vpop.f32.mrf.mxu1  ;;  %v4507_v6 = vpack.c.bf16 %v3678_v58, %v3675_v3  ;;  %v3670_v20 = vadd.f32 %v3669_v11, %v3509_v50  ;;  %v3928_v54 = vadd.f32 %v3927_v59, %v3667_v12  ;;  %v3997_v28 = vadd.f32 %v3996_v38, %v3966_v32  ;;  %v7121_v59 = vld [vmem:[#allocation18_spill] sm:$0xff] }
 0x24c   : > { %v5076_v43 = vpop.f32.mrf.mxu0  ;;  %v3525_v40 = vadd.f32 %v4967_v9, %v6717_v5  ;;  %v3970_v62 = vmul.f32 %v3678_v58, %v3678_v58  ;;  %v3538_v39 = vadd.f32 %v4976_v51, %v6738_v0  ;;  %v3546_v11 = vadd.f32 %v4982_v23, %v7121_v59  ;;  %v7123_v9 = vld [vmem:[#allocation17_spill] sm:$0xff]  ;;  %v7124_v0 = vld [vmem:[#allocation34_spill] sm:$0xff] }
 0x24d   : > { %v6909_v63 = vpop.f32.mrf.mxu1  ;;  %4563 = vst [vmem:[%s6872_s18 + $0x28] sm:$0xff] %v4507_v6   ;;  %v4502_v19 = vpack.c.bf16 %v3670_v20, %v3667_v12  ;;  %v3968_v49 = vmul.f32 %v3670_v20, %v3670_v20  ;;  %v3998_v16 = vadd.f32 %v3997_v28, %v3967_v42  ;;  %v3929_v45 = vadd.f32 %v3928_v54, %v3670_v20 }
 0x24e   : > { %v3682_v21 = vpop.f32.mrf.mxu0  ;;  %v3691_v48 = vadd.f32 %v5076_v43, %v3530_v15  ;;  %v3549_v60 = vadd.f32 %v4985_v1, %v7122_v56 }
 0x24f   : > { %v6915_v18 = vpop.f32.mrf.mxu1  ;;  %4562 = vst [vmem:[%s6872_s18 + $0x20] sm:$0xff] %v4502_v19   ;;  %v3930_v25 = vadd.f32 %v3929_v45, %v3675_v3  ;;  %v3999_v44 = vadd.f32 %v3998_v16, %v3968_v49  ;;  %v3683_v46 = vadd.f32 %v3682_v21, %v3522_v52  ;;  %v4988_v49 = vadd.f32 %v6849_v26, %v7124_v0  ;;  %v7127_v26 = vld [vmem:[#allocation35_spill] sm:$0xff] }
 0x250   : > { %v5077_v53 = vpop.f32.mrf.mxu0  ;;  %v3973_v6 = vmul.f32 %v3691_v48, %v3691_v48 }
 0x251   : > { %v6921_v47 = vpop.f32.mrf.mxu1  ;;  %v3694_v30 = vadd.f32 %v5077_v53, %v3533_v7  ;;  %v4000_v14 = vadd.f32 %v3999_v44, %v3969_v27  ;;  %v3931_v33 = vadd.f32 %v3930_v25, %v3678_v58  ;;  %v3971_v3 = vmul.f32 %v3683_v46, %v3683_v46  ;;  %v7125_v7 = vld [vmem:[#allocation37_spill] sm:$0xff]  ;;  %v7126_v27 = vld [vmem:[#allocation38_spill] sm:$0xff] }
 0x252   : > { %v3685_v34 = vpop.f32.mrf.mxu0  ;;  %v4979_v58 = vadd.f32 %v6819_v22, %v6817_v29  ;;  %v4994_v25 = vadd.f32 %v7126_v27, %v7125_v7  ;;  %v4997_v44 = vadd.f32 %v6882_v55, %v6879_v13  ;;  %v7130_v55 = vld [vmem:[#allocation22_spill] sm:$0xff]  ;;  %v7135_v27 = vld [vmem:[#allocation24_spill] sm:$0xff] }
 0x253   : > { %v6926_v4 = vpop.f32.mrf.mxu1  ;;  %v4517_v12 = vpack.c.bf16 %v3694_v30, %v3691_v48  ;;  %v3686_v36 = vadd.f32 %v3685_v34, %v3525_v40  ;;  %v3932_v5 = vadd.f32 %v3931_v33, %v3683_v46  ;;  %v4001_v50 = vadd.f32 %v4000_v14, %v3970_v62  ;;  %v7128_v14 = vld [vmem:[#allocation36_spill] sm:$0xff] }
 0x254   : > { %v5080_v41 = vpop.f32.mrf.mxu0  ;;  %v3541_v19 = vadd.f32 %v4979_v58, %v7123_v9  ;;  %v3974_v16 = vmul.f32 %v3694_v30, %v3694_v30  ;;  %v4991_v33 = vadd.f32 %v7128_v14, %v7127_v26  ;;  %v3562_v13 = vadd.f32 %v4994_v25, %v7130_v55 }
 0x255   : > { %v6931_v31 = vpop.f32.mrf.mxu1  ;;  %4565 = vst [vmem:[%s6872_s18 + $0x38] sm:$0xff] %v4517_v12   ;;  %v4512_v35 = vpack.c.bf16 %v3686_v36, %v3683_v46  ;;  %v3972_v32 = vmul.f32 %v3686_v36, %v3686_v36  ;;  %v4002_v38 = vadd.f32 %v4001_v50, %v3971_v3  ;;  %v3933_v2 = vadd.f32 %v3932_v5, %v3686_v36  ;;  %v7129_v12 = vld [vmem:[#allocation20_spill] sm:$0xff]  ;;  %v7131_v50 = vld [vmem:[#allocation23_spill] sm:$0xff] }
 0x256   : > { %v3698_v10 = vpop.f32.mrf.mxu0  ;;  %v3707_v28 = vadd.f32 %v5080_v41, %v3546_v11  ;;  %v3554_v36 = vadd.f32 %v4988_v49, %v7129_v12  ;;  %v3565_v41 = vadd.f32 %v4997_v44, %v7131_v50  ;;  %v7132_v11 = vld [vmem:[#allocation21_spill] sm:$0xff]  ;;  %v7136_v44 = vld [vmem:[#allocation32_spill] sm:$0xff] }
 0x257   : > { %v6937_v17 = vpop.f32.mrf.mxu1  ;;  %4564 = vst [vmem:[%s6872_s18 + $0x30] sm:$0xff] %v4512_v35   ;;  %v3934_v20 = vadd.f32 %v3933_v2, %v3691_v48  ;;  %v4003_v54 = vadd.f32 %v4002_v38, %v3972_v32  ;;  %v3699_v42 = vadd.f32 %v3698_v10, %v3538_v39  ;;  %v5000_v39 = vadd.f32 %v6893_v8, %v6891_v57 }
 0x258   : > { %v5081_v22 = vpop.f32.mrf.mxu0  ;;  %v3977_v58 = vmul.f32 %v3707_v28, %v3707_v28  ;;  %v3557_v56 = vadd.f32 %v4991_v33, %v7132_v11  ;;  %v5009_v57 = vadd.f32 %v6926_v4, %v6921_v47  ;;  %v7137_v47 = vld [vmem:[#allocation33_spill] sm:$0xff] }
 0x259   : > { %v6943_v37 = vpop.f32.mrf.mxu1  ;;  %v3710_v43 = vadd.f32 %v5081_v22, %v3549_v60  ;;  %v4004_v45 = vadd.f32 %v4003_v54, %v3973_v6  ;;  %v3935_v52 = vadd.f32 %v3934_v20, %v3694_v30  ;;  %v3975_v40 = vmul.f32 %v3699_v42, %v3699_v42 }
 0x25a   : > { %v3701_v21 = vpop.f32.mrf.mxu0  ;;  %v5003_v6 = vadd.f32 %v6904_v24, %v6899_v61  ;;  %v7133_v24 = vld [vmem:[#allocation29_spill] sm:$0xff]  ;;  %v4909_v4 = vadd.f32 %v7137_v47, %v7136_v44 }
 0x25b   : > { %v6948_v29 = vpop.f32.mrf.mxu1  ;;  %v4527_v46 = vpack.c.bf16 %v3710_v43, %v3707_v28  ;;  %v3702_v53 = vadd.f32 %v3701_v21, %v3541_v19  ;;  %v3936_v48 = vadd.f32 %v3935_v52, %v3699_v42  ;;  %v4005_v51 = vadd.f32 %v4004_v45, %v3974_v16 }
 0x25c   : > { %v5084_v62 = vpop.f32.mrf.mxu0  ;;  %v3978_v60 = vmul.f32 %v3710_v43, %v3710_v43 }
 0x25d   : > { %v6953_v15 = vpop.f32.mrf.mxu1  ;;  %4567 = vst [vmem:[%s6872_s18 + $0x48] sm:$0xff] %v4527_v46   ;;  %v4522_v30 = vpack.c.bf16 %v3702_v53, %v3699_v42  ;;  %v3976_v34 = vmul.f32 %v3702_v53, %v3702_v53  ;;  %v4006_v23 = vadd.f32 %v4005_v51, %v3975_v40  ;;  %v3937_v1 = vadd.f32 %v3936_v48, %v3702_v53  ;;  %v7138_v46 = vld [vmem:[#allocation26_spill] sm:$0xff]  ;;  %v7139_v48 = vld [vmem:[#allocation27_spill] sm:$0xff]  ;;  %v7140_v51 = vld [vmem:[#allocation25_spill] sm:$0xff] }
 0x25e   : > { %v3714_v5 = vpop.f32.mrf.mxu0  ;;  %v3723_v10 = vadd.f32 %v5084_v62, %v3562_v13  ;;  %v3581_v40 = vadd.f32 %v5009_v57, %v7139_v48  ;;  %v3573_v62 = vadd.f32 %v5003_v6, %v7140_v51  ;;  %v5012_v13 = vadd.f32 %v6937_v17, %v6931_v31 }
 0x25f   : > { %v5017_v3 = vpop.f32.mrf.mxu1  ;;  %4566 = vst [vmem:[%s6872_s18 + $0x40] sm:$0xff] %v4522_v30   ;;  %v3938_v35 = vadd.f32 %v3937_v1, %v3707_v28  ;;  %v4007_v32 = vadd.f32 %v4006_v23, %v3976_v34  ;;  %v3715_v38 = vadd.f32 %v3714_v5, %v3554_v36  ;;  %v5006_v28 = vadd.f32 %v6915_v18, %v6909_v63 }
 0x260   : > { %v5085_v2 = vpop.f32.mrf.mxu0  ;;  %v3570_v63 = vadd.f32 %v5000_v39, %v7135_v27  ;;  %v3981_v26 = vmul.f32 %v3723_v10, %v3723_v10  ;;  %v5018_v12 = vadd.f32 %v5017_v3, %v6953_v15  ;;  %v5015_v15 = vadd.f32 %v6948_v29, %v6943_v37 }
 0x261   : > { %v3726_v59 = vadd.f32 %v5085_v2, %v3565_v41  ;;  %v4008_v20 = vadd.f32 %v4007_v32, %v3977_v58  ;;  %v3939_v54 = vadd.f32 %v3938_v35, %v3710_v43  ;;  %v5019_v22 = vpop.f32.mrf.mxu1  ;;  %v3979_v0 = vmul.f32 %v3715_v38, %v3715_v38  ;;  %v7134_v43 = vld [vmem:[#allocation31_spill] sm:$0xff]  ;;  %v7142_v32 = vld [vmem:[#allocation16_spill] sm:$0xff] }
 0x262   : > { %v3717_v42 = vpop.f32.mrf.mxu0  ;;  %v4906_v52 = vadd.f32 %v7134_v43, %v7133_v24  ;;  %v3578_v53 = vadd.f32 %v5006_v28, %v7138_v46  ;;  %v7141_v58 = vld [vmem:[#allocation15_spill] sm:$0xff] }
 0x263   : > { %v4537_v9 = vpack.c.bf16 %v3726_v59, %v3723_v10  ;;  %v3718_v8 = vadd.f32 %v3717_v42, %v3557_v56  ;;  %v3940_v19 = vadd.f32 %v3939_v54, %v3715_v38  ;;  %v4009_v49 = vadd.f32 %v4008_v20, %v3978_v60  ;;  %v5020_v25 = vpop.f32.mrf.mxu1  ;;  %v7143_v54 = vld [vmem:[#allocation28_spill] sm:$0xff] }
 0x264   : > { %v5088_v16 = vpop.f32.mrf.mxu0  ;;  %v5021_v36 = vadd.f32 %v5020_v25, %v5019_v22  ;;  %v3982_v5 = vmul.f32 %v3726_v59, %v3726_v59  ;;  %v3433_v35 = vadd.f32 %v4906_v52, %v7141_v58  ;;  %v3586_v42 = vadd.f32 %v5012_v13, %v7143_v54 }
 0x265   : > { %4569 = vst [vmem:[%s6872_s18 + $0x58] sm:$0xff] %v4537_v9   ;;  %v4532_v45 = vpack.c.bf16 %v3718_v8, %v3715_v38  ;;  %v3980_v61 = vmul.f32 %v3718_v8, %v3718_v8  ;;  %v4010_v21 = vadd.f32 %v4009_v49, %v3979_v0  ;;  %v3941_v7 = vadd.f32 %v3940_v19, %v3718_v8  ;;  %v7144_v0 = vld [vmem:[#allocation30_spill] sm:$0xff] }
 0x266   : > { %v3730_v18 = vpop.f32.mrf.mxu0  ;;  %v3739_v23 = vadd.f32 %v5088_v16, %v3578_v53  ;;  %v3436_v38 = vadd.f32 %v4909_v4, %v7142_v32  ;;  %v3594_v31 = vadd.f32 %v5018_v12, %v3433_v35  ;;  %v3589_v49 = vadd.f32 %v5015_v15, %v7144_v0 }
 0x267   : > { %4568 = vst [vmem:[%s6872_s18 + $0x50] sm:$0xff] %v4532_v45   ;;  %v3942_v14 = vadd.f32 %v3941_v7, %v3723_v10  ;;  %v4011_v33 = vadd.f32 %v4010_v21, %v3980_v61  ;;  %v3731_v30 = vadd.f32 %v3730_v18, %v3570_v63 }
 0x268   : > { %v5089_v34 = vpop.f32.mrf.mxu0  ;;  %v3597_v17 = vadd.f32 %v5021_v36, %v3436_v38  ;;  %v3985_v28 = vmul.f32 %v3739_v23, %v3739_v23 }
 0x269   : > { %v3742_v1 = vadd.f32 %v5089_v34, %v3581_v40  ;;  %v4012_v55 = vadd.f32 %v4011_v33, %v3981_v26  ;;  %v3943_v50 = vadd.f32 %v3942_v14, %v3726_v59  ;;  %v3983_v11 = vmul.f32 %v3731_v30, %v3731_v30 }
 0x26a   : > { %v3733_v41 = vpop.f32.mrf.mxu0 }
 0x26b   : > { %v4547_v2 = vpack.c.bf16 %v3742_v1, %v3739_v23  ;;  %v3734_v39 = vadd.f32 %v3733_v41, %v3573_v62  ;;  %v3944_v10 = vadd.f32 %v3943_v50, %v3731_v30  ;;  %v4013_v56 = vadd.f32 %v4012_v55, %v3982_v5 }
 0x26c   : > { %v5092_v3 = vpop.f32.mrf.mxu0  ;;  %v3986_v16 = vmul.f32 %v3742_v1, %v3742_v1 }
 0x26d   : > { %4571 = vst [vmem:[%s6872_s18 + $0x68] sm:$0xff] %v4547_v2   ;;  %v4542_v60 = vpack.c.bf16 %v3734_v39, %v3731_v30  ;;  %v3984_v6 = vmul.f32 %v3734_v39, %v3734_v39  ;;  %v4014_v59 = vadd.f32 %v4013_v56, %v3983_v11  ;;  %v3945_v20 = vadd.f32 %v3944_v10, %v3734_v39 }
 0x26e   : > { %v3746_v22 = vpop.f32.mrf.mxu0  ;;  %v3755_v37 = vadd.f32 %v5092_v3, %v3594_v31 }
 0x26f   : > { %4570 = vst [vmem:[%s6872_s18 + $0x60] sm:$0xff] %v4542_v60   ;;  %v3946_v9 = vadd.f32 %v3945_v20, %v3739_v23  ;;  %v4015_v57 = vadd.f32 %v4014_v59, %v3984_v6  ;;  %v3747_v8 = vadd.f32 %v3746_v22, %v3586_v42 }
 0x270   : > { %v5093_v19 = vpop.f32.mrf.mxu0  ;;  %v3989_v47 = vmul.f32 %v3755_v37, %v3755_v37 }
 0x271   : > { %v3758_v29 = vadd.f32 %v5093_v19, %v3597_v17  ;;  %v4016_v45 = vadd.f32 %v4015_v57, %v3985_v28  ;;  %v3947_v61 = vadd.f32 %v3946_v9, %v3742_v1  ;;  %v3987_v7 = vmul.f32 %v3747_v8, %v3747_v8 }
 0x272   : > { %v3749_v24 = vpop.f32.mrf.mxu0 }
 0x273   : > { %v4557_v43 = vpack.c.bf16 %v3758_v29, %v3755_v37  ;;  %v3750_v52 = vadd.f32 %v3749_v24, %v3589_v49  ;;  %v3948_v21 = vadd.f32 %v3947_v61, %v3747_v8  ;;  %v4017_v27 = vadd.f32 %v4016_v45, %v3986_v16 }
 0x274   : > { %v3990_v4 = vmul.f32 %v3758_v29, %v3758_v29 }
 0x275   : > { %4573 = vst [vmem:[%s6872_s18 + $0x78] sm:$0xff] %v4557_v43   ;;  %v4552_v63 = vpack.c.bf16 %v3750_v52, %v3747_v8  ;;  %v3988_v18 = vmul.f32 %v3750_v52, %v3750_v52  ;;  %v4018_v25 = vadd.f32 %v4017_v27, %v3987_v7  ;;  %v3949_v44 = vadd.f32 %v3948_v21, %v3750_v52 }
 0x277   : > { %4572 = vst [vmem:[%s6872_s18 + $0x70] sm:$0xff] %v4552_v63   ;;  %v3950_v46 = vadd.f32 %v3949_v44, %v3755_v37  ;;  %v4019_v53 = vadd.f32 %v4018_v25, %v3988_v18 }
 0x278   : > { %5468 = shalt.err (!%p5465_p0)
}
 0x279   : > { %s5469_s10 = scalar_lea.hbm %s7001_s22, 2048  ;;  %s5473_s27 = scalar_lea.hbm %s7068_s2, 4096 }
 0x27a   : > { %p5470_p5 = scmp.ne.s32.totalorder %s7001_s22, %s5469_s10  ;;  %p5474_p4 = scmp.lt.s32.totalorder %s7001_s22, %s7068_s2 }
 0x27b   : > { %p5475_p6 = scmp.lt.s32.totalorder %s5473_s27, %s5469_s10 }
 0x27c   : > { %p5471_p2 = pnand %p5470_p5, %p7145_p11 }
 0x27d   : > { %p5476_p8 = por %p5475_p6, %p5474_p4 }
 0x27e   : > { %p5472_p1 = pneg %p5471_p2 }
 0x280   : > { %p5477_p3 = pnand %p5476_p8, %p5472_p1 }
 0x282   : > { %5480 = shalt.err (!%p5477_p3)
}
 0x283   : > { %s5561_s18 = smov 64   ;;  %s5562_s20 = smov 4   ;;  %v3951_v48 = vadd.f32 %v3950_v46, %v3758_v29  ;;  %v4020_v40 = vadd.f32 %v4019_v53, %v3989_v47 }
 0x284   : > { %5116 = dma.vmem_to_hbm [thread:$0]  (%p7145_p11), %s7003_s28, 2048, %s7001_s22, %s4032_s25, %s5561_s18, %s5561_s18, %s5562_s20  }
 0x285   : > { %v3952_v51 = vrot.slane %v3951_v48, 4  ;;  %v4021_v62 = vadd.f32 %v4020_v40, %v3990_v4  ;;  %s4189_s29 = sshll.u32 %s5706_s26, 1  ;;  %s4442_s17 = sshll.u32 %s5605_s16, 5 }
 0x286   : > { %s214_s4 = scalar_lea.vmem [#allocation9], %s4189_s29  ;;  %s4064_s25 = scalar_lea.hbm %s7069_s3, %s4442_s17 }
 0x287   : > { %v3953_v26 = vadd.f32 %v3952_v51, %v3951_v48  ;;  %v4022_v14 = vrot.slane %v4021_v62, 4  ;;  %s4066_s8 = sshll.u32 %s214_s4, 4  ;;  %s4037_s9 = scalar_lea.sflag [#allocation10], %s5706_s26  ;;  %s4067_s8 = int_to_ptr.vmem [resolvable:$true] %s4066_s8 }
 0x288   : > { %s5481_s7 = scalar_lea.vmem %s4067_s8, 32  ;;  %s5563_s10 = smov [#allocation9]  }
 0x289   : > { %v3954_v33 = vrot.slane %v3953_v26, 2  ;;  %v4023_v30 = vadd.f32 %v4022_v14, %v4021_v62  ;;  %p5482_p7 = scmp.ne.s32.totalorder %s4067_s8, %s5481_s7  ;;  %s5485_s16 = sshll.u32 %s5563_s10, 4  ;;  %s5486_s16 = int_to_ptr.vmem [resolvable:$false] %s5485_s16 }
 0x28a   : > { %s5487_s11 = scalar_lea.vmem %s5486_s16, 64  ;;  %p5488_p12 = scmp.lt.s32.totalorder %s4067_s8, %s5486_s16 }
 0x28b   : > { %v3955_v34 = vadd.f32 %v3954_v33, %v3953_v26  ;;  %v4024_v23 = vrot.slane %v4023_v30, 2  ;;  %p5483_p9 = pnand %p5482_p7, %p7145_p11  ;;  %p5489_p13 = scmp.lt.s32.totalorder %s5487_s11, %s5481_s7 }
 0x28d   : > { %v3956_v1 = vrot.slane %v3955_v34, 1  ;;  %v4025_v12 = vadd.f32 %v4024_v23, %v4023_v30  ;;  %p5484_p10 = pneg %p5483_p9  ;;  %p5490_p0 = por %p5489_p13, %p5488_p12 }
 0x28f   : > { %v3957_v36 = vadd.f32 %v3956_v1, %v3955_v34  ;;  %v4026_v5 = vrot.slane %v4025_v12, 1  ;;  %p5491_p5 = pnand %p5490_p0, %p5484_p10 }
 0x291   : > { %v4027_v55 = vadd.f32 %v4026_v5, %v4025_v12  ;;  %4029 = vst [vmem:[%s214_s4] sm:$0x1] %v3957_v36 }
 0x293   : > { %4030 = vst [vmem:[%s214_s4 + $0x1] sm:$0x1] %v4027_v55 }
 0x294   : > { %5494 = shalt.err (!%p5491_p5)
}
 0x295   : > { %s5495_s21 = scalar_lea.hbm %s4064_s25, 32  ;;  %s5499_s30 = scalar_lea.hbm %s7069_s3, 64 }
 0x296   : > { %p5496_p2 = scmp.ne.s32.totalorder %s4064_s25, %s5495_s21  ;;  %p5500_p6 = scmp.lt.s32.totalorder %s4064_s25, %s7069_s3 }
 0x297   : > { %p5501_p8 = scmp.lt.s32.totalorder %s5499_s30, %s5495_s21 }
 0x298   : > { %p5497_p1 = pnand %p5496_p2, %p7145_p11 }
 0x299   : > { %p5502_p3 = por %p5501_p8, %p5500_p6 }
 0x29a   : > { %p5498_p4 = pneg %p5497_p1 }
 0x29c   : > { %p5503_p7 = pnand %p5502_p3, %p5498_p4 }
 0x29e   : > { %5506 = shalt.err (!%p5503_p7)
}
 0x29f   : > { %5117 = dma.vmem_to_hbm [thread:$0]  (%p7145_p11), %s4067_s8, 32, %s4064_s25, %s4037_s9  }
 0x2a0 PF: > { %s4078_s20 = sand.u32 1, %s5541_s12   ;;  %p7146_p9 = scmp.ne.s32.totalorder %s7075_s19, 0 }
 0x2a1   : > { %p7147_p10 = scmp.ge.s32.totalorder %s5553_s15, 2  ;;  %s4079_s29 = scalar_lea.sflag [#allocation5], %s4078_s20 }
 0x2a3   : > { %p5129_p12 = pnand %p7147_p10, %p7146_p9 }
 0x2a5   : > { %p5130_p13 = pneg %p5129_p12 }
 0x2a7   : > { %5532 = dma.done.wait (%p5130_p13), %s4079_s29, 2048  }
 0x2a8   : > { %5534 = vsyncadd (%p5130_p13), %s4079_s29, 4294965248  ;;  %s4088_s17 = scalar_lea.sflag [#allocation10], %s4078_s20 }
 0x2a9   : > { %5536 = dma.done.wait (%p5130_p13), %s4088_s17, 32  }
 0x2aa   : > { %5538 = vsyncadd (%p5130_p13), %s4088_s17, 4294967264  ;;  %p21_p11 = scmp.ge.s32.totalorder %s5638_s24, 4   ;;  %s7148_s12 = smov %s5545_s13 }
 0x2ab   : > { %s7149_s13 = smov %s5549_s14  ;;  %s7150_s14 = smov %s5658_s5 }
 0x2ac   : > { %s7151_s15 = smov %s5638_s24  ;;  %23 = sbr.rel (!%p21_p11) target bundleno = 8 (0x8), region = 97 }
 0x2b1   :  { %4093 = vsyncpa [#allocation4], 1 }
 0x2b2   :  { %4095 = vsyncpa [#allocation4 + $0x1], 1 }
 0x2b3   :  { %4096 = vsyncpa [#allocation7], 1 }
 0x2b4   :  { %4097 = vsyncpa [#allocation5], 1 }
 0x2b5   :  { %4099 = vsyncpa [#allocation5 + $0x1], 1 }
 0x2b6   :  { %4100 = vsyncpa [#allocation10], 1 }
 0x2b7   :  { %4102 = vsyncpa [#allocation10 + $0x1], 1 }

</bundles_post_ra>
